<compile_context>
chip_gen: v6e
topology: v6e:2x2x1
jax: 0.10.0
libtpu: 0.0.40
codegen_flags: <defaults>
</compile_context>

<pallas_src>
import math
import functools

import jax
import jax.numpy as jnp
import numpy as np
from jax.experimental import pallas as pl
from jax.experimental.pallas import tpu as pltpu

_NCORES = 2          # leading "parallel" grid axis of kernel A (megacore on v7x)
_BN_EPS = 1e-5


def _round_up(x, m):
    return ((x + m - 1) // m) * m


def _gelu_exact(h):
    # 0.5 * x * (1 + erf(x / sqrt(2)))  -- exact (erf) GELU, as in the module.
    return 0.5 * h * (1.0 + jax.lax.erf(h / math.sqrt(2.0)))


# ----------------------------- VMEM budgeting -------------------------------
def _kernel_a_vmem_bytes(tn, d_pad, h_pad):
    x_tiles = 2 * tn * d_pad * 4            # f32 input tile, double-buffered
    y_tiles = 2 * tn * d_pad * 2            # bf16 output tile, double-buffered
    weights = 2 * d_pad * h_pad * 2         # w1 + w2 bf16, single-buffered
    biases = 2 * 2 * (h_pad + d_pad) * 4
    stats = 2 * 2 * 2 * d_pad * 4           # per-core sum / sumsq blocks
    inter = tn * h_pad * (4 + 2)            # f32 GELU intermediate + bf16 copy
    return x_tiles + y_tiles + weights + biases + stats + inter


def _kernel_b_vmem_bytes(tn, d_pad):
    # y (bf16) + x (f32) tiles in, out (f32) tile, all double-buffered + consts.
    return 2 * tn * d_pad * (2 + 4 + 4) + 4 * 2 * d_pad * 4


def _vmem_cap_bytes():
    phys = 64 << 20                         # safe default (v7x per-core VMEM)
    try:
        phys = int(getattr(pltpu.get_tpu_info(), "vmem_capacity_bytes", phys))
    except Exception:
        pass
    return (phys * 3) // 4                  # leave compiler-scratch headroom


def _vmem_limit(need_bytes, cap):
    return int(min(max(int(need_bytes) * 3 // 2, 16 << 20), cap))


def _choose_row_tile(n, d_pad, h_pad, cap):
    tn = 128
    for cand in (512, 384, 256, 128):
        need = max(_kernel_a_vmem_bytes(cand, d_pad, h_pad),
                   _kernel_b_vmem_bytes(cand, d_pad))
        if need * 3 // 2 <= cap:
            tn = cand
            break
    if n < _NCORES * tn:                    # small batch: keep both cores busy
        tn = max(8, _round_up(-(-n // _NCORES), 8))
    return tn


# ---------------------------------------------------------------------------
# Kernel A: y = fc2(gelu(fc1(x))) per batch tile (y stored bf16) plus
# per-core partial per-feature sum / sum-of-squares accumulated into the
# (core, 1, D) output blocks.  Grid: (cores "parallel", tiles "arbitrary").
# ---------------------------------------------------------------------------
def _ffn_stats_kernel(x_ref, w1_ref, b1_ref, w2_ref, b2_ref,       # inputs
                      y_ref, psum_ref, psq_ref,                    # outputs
                      *, n_valid, tn, tiles_per_core):
    c = pl.program_id(0)
    i = pl.program_id(1)

    @pl.when(i == 0)
    def _():
        psum_ref[...] = jnp.zeros_like(psum_ref)
        psq_ref[...] = jnp.zeros_like(psq_ref)

    x = x_ref[...]                                                  # [tn, D]
    # fc1 + exact GELU (bf16 MXU inputs, f32 accumulation)
    h = jnp.dot(x.astype(jnp.bfloat16), w1_ref[...],
                preferred_element_type=jnp.float32)
    h = _gelu_exact(h + b1_ref[...])                                # [tn, H]
    # fc2
    y = jnp.dot(h.astype(jnp.bfloat16), w2_ref[...],
                preferred_element_type=jnp.float32) + b2_ref[...]   # [tn, D]
    y_ref[...] = y.astype(y_ref.dtype)                              # bf16 store

    row0 = (c * tiles_per_core + i) * tn

    # Full tile: unmasked statistics (no iota/cmp/select on the VPU).
    @pl.when(row0 + tn <= n_valid)
    def _():
        psum_ref[...] += jnp.sum(y, axis=0, keepdims=True)[None]
        psq_ref[...] += jnp.sum(y * y, axis=0, keepdims=True)[None]

    # Ragged tile: mask zero-padded rows out of the statistics.
    @pl.when(row0 + tn > n_valid)
    def _():
        rows = row0 + jax.lax.broadcasted_iota(jnp.int32, y.shape, 0)
        ym = jnp.where(rows < n_valid, y, 0.0)
        psum_ref[...] += jnp.sum(ym, axis=0, keepdims=True)[None]
        psq_ref[...] += jnp.sum(ym * ym, axis=0, keepdims=True)[None]


# ---------------------------------------------------------------------------
# Kernel B: folded BatchNorm + residual + softplus, pure streaming.
# Grid: (N_pad // tn,) over the batch axis ("parallel": megacore-friendly).
# ---------------------------------------------------------------------------
def _bn_res_softplus_kernel(y_ref, x_ref, scale_ref, shift_ref, out_ref):
    z = (y_ref[...].astype(jnp.float32) * scale_ref[...]
         + shift_ref[...] + x_ref[...])
    out_ref[...] = jnp.logaddexp(z, 0.0)                            # softplus


# ---------------------------------------------------------------------------
# Wrappers
# ---------------------------------------------------------------------------
def prepare_branch_params(w1, b1, w2, b2, gamma, beta):
    """Pad feature dims to lane multiples and cast weights to bf16 — ONCE."""
    D, H = w1.shape
    D_pad, H_pad = _round_up(D, 128), _round_up(H, 128)

    def pad2(a, shape, dt):
        return jnp.zeros(shape, dt).at[:a.shape[0], :a.shape[1]].set(a.astype(dt))

    return {
        "w1": pad2(w1, (D_pad, H_pad), jnp.bfloat16),
        "b1": pad2(b1, (1, H_pad), jnp.float32),
        "w2": pad2(w2, (H_pad, D_pad), jnp.bfloat16),
        "b2": pad2(b2, (1, D_pad), jnp.float32),
        "gamma": pad2(gamma, (1, D_pad), jnp.float32),
        "beta": pad2(beta, (1, D_pad), jnp.float32),
    }


def ffn_branch(x, prep):
    """One FFN + BatchNorm(train) + residual + Softplus branch. x: [N, D]."""
    N, D = x.shape
    D_pad = prep["gamma"].shape[1]
    H_pad = prep["w1"].shape[1]

    cap = _vmem_cap_bytes()
    tn = _choose_row_tile(N, D_pad, H_pad, cap)

    grid_n = -(-N // tn)
    tiles_per_core = -(-grid_n // _NCORES)
    N_pad = _NCORES * tiles_per_core * tn

    x = x.astype(jnp.float32)
    aligned = (N_pad == N) and (D_pad == D)
    if aligned:
        xp = x                                       # no extra HBM pass
    else:
        xp = jnp.zeros((N_pad, D_pad), jnp.float32).at[:N, :D].set(x)

    vmem_a = _vmem_limit(_kernel_a_vmem_bytes(tn, D_pad, H_pad), cap)
    vmem_b = _vmem_limit(_kernel_b_vmem_bytes(tn, D_pad), cap)

    row_tile_a = lambda c, i: (c * tiles_per_core + i, 0)
    const_a = lambda c, i: (0, 0)

    # ---- pass 1: per-tile FFN + per-core sum / sumsq partials --------------
    y_pad, psum, psq = pl.pallas_call(
        functools.partial(_ffn_stats_kernel, n_valid=N, tn=tn,
                          tiles_per_core=tiles_per_core),
        grid=(_NCORES, tiles_per_core),
        in_specs=[
            pl.BlockSpec((tn, D_pad), row_tile_a),                   # x tile
            pl.BlockSpec((D_pad, H_pad), const_a,
                         pipeline_mode=pl.Buffered(1)),              # w1 (resident)
            pl.BlockSpec((1, H_pad), const_a),                       # b1
            pl.BlockSpec((H_pad, D_pad), const_a,
                         pipeline_mode=pl.Buffered(1)),              # w2 (resident)
            pl.BlockSpec((1, D_pad), const_a),                       # b2
        ],
        out_specs=[
            pl.BlockSpec((tn, D_pad), row_tile_a),                   # y (bf16)
            pl.BlockSpec((1, 1, D_pad), lambda c, i: (c, 0, 0)),     # per-core sum
            pl.BlockSpec((1, 1, D_pad), lambda c, i: (c, 0, 0)),     # per-core sumsq
        ],
        out_shape=[
            jax.ShapeDtypeStruct((N_pad, D_pad), jnp.bfloat16),
            jax.ShapeDtypeStruct((_NCORES, 1, D_pad), jnp.float32),
            jax.ShapeDtypeStruct((_NCORES, 1, D_pad), jnp.float32),
        ],
        compiler_params=pltpu.CompilerParams(
            dimension_semantics=("parallel", "arbitrary"),
            vmem_limit_bytes=vmem_a,
        ),
    )(xp, prep["w1"], prep["b1"], prep["w2"], prep["b2"])

    # ---- tiny (1, D) finalize: combine per-core partials, fold BN ----------
    inv_n = 1.0 / float(N)
    mean = jnp.sum(psum, axis=0) * inv_n
    var = jnp.maximum(jnp.sum(psq, axis=0) * inv_n - mean * mean, 0.0)  # biased
    invstd = jax.lax.rsqrt(var + _BN_EPS)
    scale = prep["gamma"] * invstd
    shift = prep["beta"] - mean * scale

    row_tile_b = lambda i: (i, 0)
    const_b = lambda i: (0, 0)

    # ---- pass 2: softplus(y*scale + shift + x), embarrassingly parallel ----
    out_pad = pl.pallas_call(
        _bn_res_softplus_kernel,
        grid=(N_pad // tn,),
        in_specs=[
            pl.BlockSpec((tn, D_pad), row_tile_b),    # y tile (bf16)
            pl.BlockSpec((tn, D_pad), row_tile_b),    # x tile (residual)
            pl.BlockSpec((1, D_pad), const_b),        # scale
            pl.BlockSpec((1, D_pad), const_b),        # shift
        ],
        out_specs=pl.BlockSpec((tn, D_pad), row_tile_b),
        out_shape=jax.ShapeDtypeStruct((N_pad, D_pad), jnp.float32),
        compiler_params=pltpu.CompilerParams(
            dimension_semantics=("parallel",),
            vmem_limit_bytes=vmem_b,
        ),
    )(y_pad, xp, scale, shift)

    return out_pad if aligned else out_pad[:N, :D]


@jax.jit
def poswise_ffn_forward(x, e, prep_n, prep_e):
    """Equivalent of PoswiseFeedForwardNetwork.forward(x, e)."""
    # TODO(synk): PyTorch training-mode BatchNorm1d also updates
    # running_mean/running_var as a side effect; not modeled (not needed for
    # the forward outputs).
    return ffn_branch(x, prep_n), ffn_branch(e, prep_e)


# ---------------- pure-JAX reference for verification -----------------------
def _branch_ref(x, w1, b1, w2, b2, gamma, beta):
    h = _gelu_exact(x @ w1 + b1)
    y = h @ w2 + b2
    mean = jnp.mean(y, axis=0, keepdims=True)
    var = jnp.mean((y - mean) ** 2, axis=0, keepdims=True)
    y_bn = (y - mean) / jnp.sqrt(var + _BN_EPS) * gamma + beta
    return jnp.logaddexp(y_bn + x, 0.0)


def make_params(key, d_model, edge_dim):
    ks = jax.random.split(key, 8)
    s = 0.05
    return {
        # node branch (fcn1: d_model -> 4*d_model, fcn2: 4*d_model -> d_model)
        "w_n1": s * jax.random.normal(ks[0], (d_model, 4 * d_model), jnp.float32),
        "b_n1": s * jax.random.normal(ks[1], (1, 4 * d_model), jnp.float32),
        "w_n2": s * jax.random.normal(ks[2], (4 * d_model, d_model), jnp.float32),
        "b_n2": s * jax.random.normal(ks[3], (1, d_model), jnp.float32),
        "gamma_n": jnp.ones((1, d_model), jnp.float32),
        "beta_n": jnp.zeros((1, d_model), jnp.float32),
        # edge branch (fce1: edge_dim -> 4*edge_dim, fce2: 4*edge_dim -> edge_dim)
        "w_e1": s * jax.random.normal(ks[4], (edge_dim, 4 * edge_dim), jnp.float32),
        "b_e1": s * jax.random.normal(ks[5], (1, 4 * edge_dim), jnp.float32),
        "w_e2": s * jax.random.normal(ks[6], (4 * edge_dim, edge_dim), jnp.float32),
        "b_e2": s * jax.random.normal(ks[7], (1, edge_dim), jnp.float32),
        "gamma_e": jnp.ones((1, edge_dim), jnp.float32),
        "beta_e": jnp.zeros((1, edge_dim), jnp.float32),
    }


if __name__ == "__main__":
    # Small but lane/MXU-aware shapes; n_nodes exercises the ragged masked tile,
    # edge_dim exercises feature-dim padding.
    d_model, edge_dim = 128, 64
    n_nodes, n_edges = 200, 256

    key = jax.random.PRNGKey(0)
    kx, ke, kp = jax.random.split(key, 3)
    x = jax.random.normal(kx, (n_nodes, d_model), jnp.float32)
    e = jax.random.normal(ke, (n_edges, edge_dim), jnp.float32)
    params = make_params(kp, d_model, edge_dim)

    # Pad + cast the static parameters exactly once (outside the jitted fwd).
    prep_n = prepare_branch_params(params["w_n1"], params["b_n1"],
                                   params["w_n2"], params["b_n2"],
                                   params["gamma_n"], params["beta_n"])
    prep_e = prepare_branch_params(params["w_e1"], params["b_e1"],
                                   params["w_e2"], params["b_e2"],
                                   params["gamma_e"], params["beta_e"])

    out_x, out_e = jax.block_until_ready(
        poswise_ffn_forward(x, e, prep_n, prep_e))

    ref_x = _branch_ref(x, params["w_n1"], params["b_n1"], params["w_n2"],
                        params["b_n2"], params["gamma_n"], params["beta_n"])
    ref_e = _branch_ref(e, params["w_e1"], params["b_e1"], params["w_e2"],
                        params["b_e2"], params["gamma_e"], params["beta_e"])

    assert out_x.shape == (n_nodes, d_model) and out_e.shape == (n_edges, edge_dim)
    # bf16 MXU inputs and bf16 y storage (f32 stats / BN / softplus) ->
    # relaxed tolerance vs. the pure-f32 reference.
    np.testing.assert_allclose(np.asarray(out_x), np.asarray(ref_x),
                               rtol=5e-2, atol=5e-2)
    np.testing.assert_allclose(np.asarray(out_e), np.asarray(ref_e),
                               rtol=5e-2, atol=5e-2)
    print("KERNEL_OK")
</pallas_src>

<mosaic_0001>
module attributes {stable_mosaic.version = 11 : i64} {
  func.func @_bn_res_softplus_kernel(%arg0: i32, %arg1: memref<104x128xbf16, #tpu.memory_space<vmem>>, %arg2: memref<104x128xf32, #tpu.memory_space<vmem>>, %arg3: memref<1x128xf32, #tpu.memory_space<vmem>>, %arg4: memref<1x128xf32, #tpu.memory_space<vmem>>, %arg5: memref<104x128xf32, #tpu.memory_space<vmem>>) attributes {dimension_semantics = [#tpu.dimension_semantics<parallel>], iteration_bounds = array<i64: 2>, scalar_prefetch = 0 : i64, scratch_operands = 0 : i64, tpu.core_type = #tpu.core_type<tc>, window_params = [{transform_indices = @transform_0, window_bounds = array<i64: 104, 128>}, {transform_indices = @transform_1, window_bounds = array<i64: 104, 128>}, {pipeline_mode = #tpu.pipeline_mode<synchronous>, transform_indices = @transform_2, window_bounds = array<i64: 1, 128>}, {pipeline_mode = #tpu.pipeline_mode<synchronous>, transform_indices = @transform_3, window_bounds = array<i64: 1, 128>}, {transform_indices = @transform_4, window_bounds = array<i64: 104, 128>}]} {
    %c0 = arith.constant 0 : index
    %c0_0 = arith.constant 0 : index
    %0 = vector.load %arg1[%c0, %c0_0] : memref<104x128xbf16, #tpu.memory_space<vmem>>, vector<104x128xbf16>
    %1 = arith.extf %0 : vector<104x128xbf16> to vector<104x128xf32>
    %c0_1 = arith.constant 0 : index
    %c0_2 = arith.constant 0 : index
    %2 = vector.load %arg3[%c0_1, %c0_2] : memref<1x128xf32, #tpu.memory_space<vmem>>, vector<1x128xf32>
    %3 = vector.broadcast %2 : vector<1x128xf32> to vector<104x128xf32>
    %4 = arith.mulf %1, %3 : vector<104x128xf32>
    %c0_3 = arith.constant 0 : index
    %c0_4 = arith.constant 0 : index
    %5 = vector.load %arg4[%c0_3, %c0_4] : memref<1x128xf32, #tpu.memory_space<vmem>>, vector<1x128xf32>
    %6 = vector.broadcast %5 : vector<1x128xf32> to vector<104x128xf32>
    %7 = arith.addf %4, %6 : vector<104x128xf32>
    %c0_5 = arith.constant 0 : index
    %c0_6 = arith.constant 0 : index
    %8 = vector.load %arg2[%c0_5, %c0_6] : memref<104x128xf32, #tpu.memory_space<vmem>>, vector<104x128xf32>
    %9 = arith.addf %7, %8 : vector<104x128xf32>
    %cst = arith.constant 0.000000e+00 : f32
    %10 = vector.broadcast %cst : f32 to vector<104x128xf32>
    %11 = arith.maximumf %9, %10 : vector<104x128xf32>
    %12 = vector.broadcast %cst : f32 to vector<104x128xf32>
    %13 = arith.subf %9, %12 : vector<104x128xf32>
    %14 = arith.cmpf one, %13, %13 : vector<104x128xf32>
    %15 = vector.broadcast %cst : f32 to vector<104x128xf32>
    %16 = arith.addf %9, %15 : vector<104x128xf32>
    %17 = math.absf %13 : vector<104x128xf32>
    %cst_7 = arith.constant 0.000000e+00 : f32
    %18 = vector.broadcast %cst_7 : f32 to vector<104x128xf32>
    %19 = arith.subf %18, %17 : vector<104x128xf32>
    %20 = math.exp %19 : vector<104x128xf32>
    %21 = math.log1p %20 : vector<104x128xf32>
    %22 = arith.addf %11, %21 : vector<104x128xf32>
    %23 = arith.select %14, %16, %22 : vector<104x128xi1>, vector<104x128xf32>
    %c0_8 = arith.constant 0 : index
    %c0_9 = arith.constant 0 : index
    %24 = vector.load %arg5[%c0_8, %c0_9] : memref<104x128xf32, #tpu.memory_space<vmem>>, vector<104x128xf32>
    tpu.vector_store %arg5[%c0_8, %c0_9], %23 {strides = array<i32>} : memref<104x128xf32, #tpu.memory_space<vmem>>, vector<104x128xf32>,
    return
  }
  func.func @transform_0(%arg0: i32) -> (i32, i32) {
    %c0_i32 = arith.constant 0 : i32
    %c0_i32_0 = arith.constant 0 : i32
    return %arg0, %c0_i32 : i32, i32
  }
  func.func @transform_1(%arg0: i32) -> (i32, i32) {
    %c0_i32 = arith.constant 0 : i32
    %c0_i32_0 = arith.constant 0 : i32
    return %arg0, %c0_i32 : i32, i32
  }
  func.func @transform_2(%arg0: i32) -> (i32, i32) {
    %c0_i32 = arith.constant 0 : i32
    %c0_i32_0 = arith.constant 0 : i32
    %c0_i32_1 = arith.constant 0 : i32
    return %c0_i32, %c0_i32_0 : i32, i32
  }
  func.func @transform_3(%arg0: i32) -> (i32, i32) {
    %c0_i32 = arith.constant 0 : i32
    %c0_i32_0 = arith.constant 0 : i32
    %c0_i32_1 = arith.constant 0 : i32
    return %c0_i32, %c0_i32_0 : i32, i32
  }
  func.func @transform_4(%arg0: i32) -> (i32, i32) {
    %c0_i32 = arith.constant 0 : i32
    %c0_i32_0 = arith.constant 0 : i32
    return %arg0, %c0_i32 : i32, i32
  }
}

module attributes {stable_mosaic.version = 11 : i64} {
  func.func @_bn_res_softplus_kernel(%arg0: i32, %arg1: memref<128x128xbf16, #tpu.memory_space<vmem>>, %arg2: memref<128x128xf32, #tpu.memory_space<vmem>>, %arg3: memref<1x128xf32, #tpu.memory_space<vmem>>, %arg4: memref<1x128xf32, #tpu.memory_space<vmem>>, %arg5: memref<128x128xf32, #tpu.memory_space<vmem>>) attributes {dimension_semantics = [#tpu.dimension_semantics<parallel>], iteration_bounds = array<i64: 2>, scalar_prefetch = 0 : i64, scratch_operands = 0 : i64, tpu.core_type = #tpu.core_type<tc>, window_params = [{transform_indices = @transform_0, window_bounds = array<i64: 128, 128>}, {transform_indices = @transform_1, window_bounds = array<i64: 128, 128>}, {pipeline_mode = #tpu.pipeline_mode<synchronous>, transform_indices = @transform_2, window_bounds = array<i64: 1, 128>}, {pipeline_mode = #tpu.pipeline_mode<synchronous>, transform_indices = @transform_3, window_bounds = array<i64: 1, 128>}, {transform_indices = @transform_4, window_bounds = array<i64: 128, 128>}]} {
    %c0 = arith.constant 0 : index
    %c0_0 = arith.constant 0 : index
    %0 = vector.load %arg1[%c0, %c0_0] : memref<128x128xbf16, #tpu.memory_space<vmem>>, vector<128x128xbf16>
    %1 = arith.extf %0 : vector<128x128xbf16> to vector<128x128xf32>
    %c0_1 = arith.constant 0 : index
    %c0_2 = arith.constant 0 : index
    %2 = vector.load %arg3[%c0_1, %c0_2] : memref<1x128xf32, #tpu.memory_space<vmem>>, vector<1x128xf32>
    %3 = vector.broadcast %2 : vector<1x128xf32> to vector<128x128xf32>
    %4 = arith.mulf %1, %3 : vector<128x128xf32>
    %c0_3 = arith.constant 0 : index
    %c0_4 = arith.constant 0 : index
    %5 = vector.load %arg4[%c0_3, %c0_4] : memref<1x128xf32, #tpu.memory_space<vmem>>, vector<1x128xf32>
    %6 = vector.broadcast %5 : vector<1x128xf32> to vector<128x128xf32>
    %7 = arith.addf %4, %6 : vector<128x128xf32>
    %c0_5 = arith.constant 0 : index
    %c0_6 = arith.constant 0 : index
    %8 = vector.load %arg2[%c0_5, %c0_6] : memref<128x128xf32, #tpu.memory_space<vmem>>, vector<128x128xf32>
    %9 = arith.addf %7, %8 : vector<128x128xf32>
    %cst = arith.constant 0.000000e+00 : f32
    %10 = vector.broadcast %cst : f32 to vector<128x128xf32>
    %11 = arith.maximumf %9, %10 : vector<128x128xf32>
    %12 = vector.broadcast %cst : f32 to vector<128x128xf32>
    %13 = arith.subf %9, %12 : vector<128x128xf32>
    %14 = arith.cmpf one, %13, %13 : vector<128x128xf32>
    %15 = vector.broadcast %cst : f32 to vector<128x128xf32>
    %16 = arith.addf %9, %15 : vector<128x128xf32>
    %17 = math.absf %13 : vector<128x128xf32>
    %cst_7 = arith.constant 0.000000e+00 : f32
    %18 = vector.broadcast %cst_7 : f32 to vector<128x128xf32>
    %19 = arith.subf %18, %17 : vector<128x128xf32>
    %20 = math.exp %19 : vector<128x128xf32>
    %21 = math.log1p %20 : vector<128x128xf32>
    %22 = arith.addf %11, %21 : vector<128x128xf32>
    %23 = arith.select %14, %16, %22 : vector<128x128xi1>, vector<128x128xf32>
    %c0_8 = arith.constant 0 : index
    %c0_9 = arith.constant 0 : index
    %24 = vector.load %arg5[%c0_8, %c0_9] : memref<128x128xf32, #tpu.memory_space<vmem>>, vector<128x128xf32>
    tpu.vector_store %arg5[%c0_8, %c0_9], %23 {strides = array<i32>} : memref<128x128xf32, #tpu.memory_space<vmem>>, vector<128x128xf32>,
    return
  }
  func.func @transform_0(%arg0: i32) -> (i32, i32) {
    %c0_i32 = arith.constant 0 : i32
    %c0_i32_0 = arith.constant 0 : i32
    return %arg0, %c0_i32 : i32, i32
  }
  func.func @transform_1(%arg0: i32) -> (i32, i32) {
    %c0_i32 = arith.constant 0 : i32
    %c0_i32_0 = arith.constant 0 : i32
    return %arg0, %c0_i32 : i32, i32
  }
  func.func @transform_2(%arg0: i32) -> (i32, i32) {
    %c0_i32 = arith.constant 0 : i32
    %c0_i32_0 = arith.constant 0 : i32
    %c0_i32_1 = arith.constant 0 : i32
    return %c0_i32, %c0_i32_0 : i32, i32
  }
  func.func @transform_3(%arg0: i32) -> (i32, i32) {
    %c0_i32 = arith.constant 0 : i32
    %c0_i32_0 = arith.constant 0 : i32
    %c0_i32_1 = arith.constant 0 : i32
    return %c0_i32, %c0_i32_0 : i32, i32
  }
  func.func @transform_4(%arg0: i32) -> (i32, i32) {
    %c0_i32 = arith.constant 0 : i32
    %c0_i32_0 = arith.constant 0 : i32
    return %arg0, %c0_i32 : i32, i32
  }
}

module attributes {stable_mosaic.version = 11 : i64} {
  func.func @_ffn_stats_kernel(%arg0: i32, %arg1: i32, %arg2: memref<128x128xf32, #tpu.memory_space<vmem>>, %arg3: memref<128x256xbf16, #tpu.memory_space<vmem>>, %arg4: memref<1x256xf32, #tpu.memory_space<vmem>>, %arg5: memref<256x128xbf16, #tpu.memory_space<vmem>>, %arg6: memref<1x128xf32, #tpu.memory_space<vmem>>, %arg7: memref<128x128xbf16, #tpu.memory_space<vmem>>, %arg8: memref<1x1x128xf32, #tpu.memory_space<vmem>>, %arg9: memref<1x1x128xf32, #tpu.memory_space<vmem>>) attributes {dimension_semantics = [#tpu.dimension_semantics<parallel>, #tpu.dimension_semantics<arbitrary>], iteration_bounds = array<i64: 2, 1>, scalar_prefetch = 0 : i64, scratch_operands = 0 : i64, tpu.core_type = #tpu.core_type<tc>, window_params = [{transform_indices = @transform_0, window_bounds = array<i64: 128, 128>}, {pipeline_mode = #tpu.pipeline_mode<synchronous>, transform_indices = @transform_1, window_bounds = array<i64: 128, 256>}, {pipeline_mode = #tpu.pipeline_mode<synchronous>, transform_indices = @transform_2, window_bounds = array<i64: 1, 256>}, {pipeline_mode = #tpu.pipeline_mode<synchronous>, transform_indices = @transform_3, window_bounds = array<i64: 256, 128>}, {pipeline_mode = #tpu.pipeline_mode<synchronous>, transform_indices = @transform_4, window_bounds = array<i64: 1, 128>}, {transform_indices = @transform_5, window_bounds = array<i64: 128, 128>}, {transform_indices = @transform_6, window_bounds = array<i64: 1, 1, 128>}, {transform_indices = @transform_7, window_bounds = array<i64: 1, 1, 128>}]} {
    %c0_i32 = arith.constant 0 : i32
    %0 = arith.cmpi eq, %arg1, %c0_i32 : i32
    %1 = arith.extui %0 : i1 to i32
    %c0_i32_0 = arith.constant 0 : i32
    %2 = arith.cmpi ne, %1, %c0_i32_0 : i32
    scf.if %2 {
      %cst_21 = arith.constant 0.000000e+00 : f32
      %37 = vector.broadcast %cst_21 : f32 to vector<1x1x128xf32>
      %c0_22 = arith.constant 0 : index
      %c0_23 = arith.constant 0 : index
      %c0_24 = arith.constant 0 : index
      %38 = vector.load %arg8[%c0_22, %c0_23, %c0_24] : memref<1x1x128xf32, #tpu.memory_space<vmem>>, vector<1x1x128xf32>
      tpu.vector_store %arg8[%c0_22, %c0_23, %c0_24], %37 {strides = array<i32>} : memref<1x1x128xf32, #tpu.memory_space<vmem>>, vector<1x1x128xf32>,
      %cst_25 = arith.constant 0.000000e+00 : f32
      %39 = vector.broadcast %cst_25 : f32 to vector<1x1x128xf32>
      %c0_26 = arith.constant 0 : index
      %c0_27 = arith.constant 0 : index
      %c0_28 = arith.constant 0 : index
      %40 = vector.load %arg9[%c0_26, %c0_27, %c0_28] : memref<1x1x128xf32, #tpu.memory_space<vmem>>, vector<1x1x128xf32>
      tpu.vector_store %arg9[%c0_26, %c0_27, %c0_28], %39 {strides = array<i32>} : memref<1x1x128xf32, #tpu.memory_space<vmem>>, vector<1x1x128xf32>,
    } else {
    }
    %c0 = arith.constant 0 : index
    %c0_1 = arith.constant 0 : index
    %3 = vector.load %arg2[%c0, %c0_1] : memref<128x128xf32, #tpu.memory_space<vmem>>, vector<128x128xf32>
    %4 = arith.truncf %3 : vector<128x128xf32> to vector<128x128xbf16>
    %c0_2 = arith.constant 0 : index
    %c0_3 = arith.constant 0 : index
    %5 = vector.load %arg3[%c0_2, %c0_3] : memref<128x256xbf16, #tpu.memory_space<vmem>>, vector<128x256xbf16>
    %cst = arith.constant dense<0.000000e+00> : vector<128x256xf32>
    %6 = tpu.matmul %4, %5, %cst {dimension_numbers = #tpu.dot_dimension_numbers<[1], [0], [0], [1], [0, 0, 1, 1], [], []>} : vector<128x128xbf16>, vector<128x256xbf16>, vector<128x256xf32> -> vector<128x256xf32>
    %c0_4 = arith.constant 0 : index
    %c0_5 = arith.constant 0 : index
    %7 = vector.load %arg4[%c0_4, %c0_5] : memref<1x256xf32, #tpu.memory_space<vmem>>, vector<1x256xf32>
    %8 = vector.broadcast %7 : vector<1x256xf32> to vector<128x256xf32>
    %9 = arith.addf %6, %8 : vector<128x256xf32>
    %cst_6 = arith.constant 5.000000e-01 : f32
    %10 = vector.broadcast %cst_6 : f32 to vector<128x256xf32>
    %11 = arith.mulf %10, %9 : vector<128x256xf32>
    %cst_7 = arith.constant 1.41421354 : f32
    %12 = vector.broadcast %cst_7 : f32 to vector<128x256xf32>
    %13 = arith.divf %9, %12 : vector<128x256xf32>
    %14 = math.erf %13 : vector<128x256xf32>
    %cst_8 = arith.constant 1.000000e+00 : f32
    %15 = vector.broadcast %cst_8 : f32 to vector<128x256xf32>
    %16 = arith.addf %15, %14 : vector<128x256xf32>
    %17 = arith.mulf %11, %16 : vector<128x256xf32>
    %18 = arith.truncf %17 : vector<128x256xf32> to vector<128x256xbf16>
    %c0_9 = arith.constant 0 : index
    %c0_10 = arith.constant 0 : index
    %19 = vector.load %arg5[%c0_9, %c0_10] : memref<256x128xbf16, #tpu.memory_space<vmem>>, vector<256x128xbf16>
    %cst_11 = arith.constant dense<0.000000e+00> : vector<128x128xf32>
    %20 = tpu.matmul %18, %19, %cst_11 {dimension_numbers = #tpu.dot_dimension_numbers<[1], [0], [0], [1], [0, 0, 1, 1], [], []>} : vector<128x256xbf16>, vector<256x128xbf16>, vector<128x128xf32> -> vector<128x128xf32>
    %c0_12 = arith.constant 0 : index
    %c0_13 = arith.constant 0 : index
    %21 = vector.load %arg6[%c0_12, %c0_13] : memref<1x128xf32, #tpu.memory_space<vmem>>, vector<1x128xf32>
    %22 = vector.broadcast %21 : vector<1x128xf32> to vector<128x128xf32>
    %23 = arith.addf %20, %22 : vector<128x128xf32>
    %24 = arith.truncf %23 : vector<128x128xf32> to vector<128x128xbf16>
    %c0_14 = arith.constant 0 : index
    %c0_15 = arith.constant 0 : index
    %25 = vector.load %arg7[%c0_14, %c0_15] : memref<128x128xbf16, #tpu.memory_space<vmem>>, vector<128x128xbf16>
    tpu.vector_store %arg7[%c0_14, %c0_15], %24 {strides = array<i32>} : memref<128x128xbf16, #tpu.memory_space<vmem>>, vector<128x128xbf16>,
    %c1_i32 = arith.constant 1 : i32
    %26 = arith.muli %arg0, %c1_i32 : i32
    %27 = arith.addi %26, %arg1 : i32
    %c128_i32 = arith.constant 128 : i32
    %28 = arith.muli %27, %c128_i32 : i32
    %c128_i32_16 = arith.constant 128 : i32
    %29 = arith.addi %28, %c128_i32_16 : i32
    %c256_i32 = arith.constant 256 : i32
    %30 = arith.cmpi sle, %29, %c256_i32 : i32
    %31 = arith.extui %30 : i1 to i32
    %c0_i32_17 = arith.constant 0 : i32
    %32 = arith.cmpi ne, %31, %c0_i32_17 : i32
    scf.if %32 {
      %c0_21 = arith.constant 0 : index
      %c0_22 = arith.constant 0 : index
      %c0_23 = arith.constant 0 : index
      %37 = vector.load %arg8[%c0_21, %c0_22, %c0_23] : memref<1x1x128xf32, #tpu.memory_space<vmem>>, vector<1x1x128xf32>
      %cst_24 = arith.constant dense<0.000000e+00> : vector<128xf32>
      %38 = vector.multi_reduction <add>, %23, %cst_24 [0] : vector<128x128xf32> to vector<128xf32>
      %39 = vector.shape_cast %38 : vector<128xf32> to vector<1x128xf32>
      %40 = vector.shape_cast %39 : vector<1x128xf32> to vector<1x1x128xf32>
      %41 = arith.addf %37, %40 : vector<1x1x128xf32>
      %c0_25 = arith.constant 0 : index
      %c0_26 = arith.constant 0 : index
      %c0_27 = arith.constant 0 : index
      %42 = vector.load %arg8[%c0_25, %c0_26, %c0_27] : memref<1x1x128xf32, #tpu.memory_space<vmem>>, vector<1x1x128xf32>
      tpu.vector_store %arg8[%c0_25, %c0_26, %c0_27], %41 {strides = array<i32>} : memref<1x1x128xf32, #tpu.memory_space<vmem>>, vector<1x1x128xf32>,
      %c0_28 = arith.constant 0 : index
      %c0_29 = arith.constant 0 : index
      %c0_30 = arith.constant 0 : index
      %43 = vector.load %arg9[%c0_28, %c0_29, %c0_30] : memref<1x1x128xf32, #tpu.memory_space<vmem>>, vector<1x1x128xf32>
      %44 = arith.mulf %23, %23 : vector<128x128xf32>
      %cst_31 = arith.constant dense<0.000000e+00> : vector<128xf32>
      %45 = vector.multi_reduction <add>, %44, %cst_31 [0] : vector<128x128xf32> to vector<128xf32>
      %46 = vector.shape_cast %45 : vector<128xf32> to vector<1x128xf32>
      %47 = vector.shape_cast %46 : vector<1x128xf32> to vector<1x1x128xf32>
      %48 = arith.addf %43, %47 : vector<1x1x128xf32>
      %c0_32 = arith.constant 0 : index
      %c0_33 = arith.constant 0 : index
      %c0_34 = arith.constant 0 : index
      %49 = vector.load %arg9[%c0_32, %c0_33, %c0_34] : memref<1x1x128xf32, #tpu.memory_space<vmem>>, vector<1x1x128xf32>
      tpu.vector_store %arg9[%c0_32, %c0_33, %c0_34], %48 {strides = array<i32>} : memref<1x1x128xf32, #tpu.memory_space<vmem>>, vector<1x1x128xf32>,
    } else {
    }
    %c128_i32_18 = arith.constant 128 : i32
    %33 = arith.addi %28, %c128_i32_18 : i32
    %c256_i32_19 = arith.constant 256 : i32
    %34 = arith.cmpi sgt, %33, %c256_i32_19 : i32
    %35 = arith.extui %34 : i1 to i32
    %c0_i32_20 = arith.constant 0 : i32
    %36 = arith.cmpi ne, %35, %c0_i32_20 : i32
    scf.if %36 {
      %37 = tpu.iota {dimensions = array<i32: 0>} : vector<128x128xi32>
      %38 = vector.broadcast %28 : i32 to vector<128x128xi32>
      %39 = arith.addi %38, %37 : vector<128x128xi32>
      %c256_i32_21 = arith.constant 256 : i32
      %40 = vector.broadcast %c256_i32_21 : i32 to vector<128x128xi32>
      %41 = arith.cmpi slt, %39, %40 : vector<128x128xi32>
      %cst_22 = arith.constant 0.000000e+00 : f32
      %42 = vector.broadcast %cst_22 : f32 to vector<128x128xf32>
      %43 = arith.select %41, %23, %42 : vector<128x128xi1>, vector<128x128xf32>
      %c0_23 = arith.constant 0 : index
      %c0_24 = arith.constant 0 : index
      %c0_25 = arith.constant 0 : index
      %44 = vector.load %arg8[%c0_23, %c0_24, %c0_25] : memref<1x1x128xf32, #tpu.memory_space<vmem>>, vector<1x1x128xf32>
      %cst_26 = arith.constant dense<0.000000e+00> : vector<128xf32>
      %45 = vector.multi_reduction <add>, %43, %cst_26 [0] : vector<128x128xf32> to vector<128xf32>
      %46 = vector.shape_cast %45 : vector<128xf32> to vector<1x128xf32>
      %47 = vector.shape_cast %46 : vector<1x128xf32> to vector<1x1x128xf32>
      %48 = arith.addf %44, %47 : vector<1x1x128xf32>
      %c0_27 = arith.constant 0 : index
      %c0_28 = arith.constant 0 : index
      %c0_29 = arith.constant 0 : index
      %49 = vector.load %arg8[%c0_27, %c0_28, %c0_29] : memref<1x1x128xf32, #tpu.memory_space<vmem>>, vector<1x1x128xf32>
      tpu.vector_store %arg8[%c0_27, %c0_28, %c0_29], %48 {strides = array<i32>} : memref<1x1x128xf32, #tpu.memory_space<vmem>>, vector<1x1x128xf32>,
      %c0_30 = arith.constant 0 : index
      %c0_31 = arith.constant 0 : index
      %c0_32 = arith.constant 0 : index
      %50 = vector.load %arg9[%c0_30, %c0_31, %c0_32] : memref<1x1x128xf32, #tpu.memory_space<vmem>>, vector<1x1x128xf32>
      %51 = arith.mulf %43, %43 : vector<128x128xf32>
      %cst_33 = arith.constant dense<0.000000e+00> : vector<128xf32>
      %52 = vector.multi_reduction <add>, %51, %cst_33 [0] : vector<128x128xf32> to vector<128xf32>
      %53 = vector.shape_cast %52 : vector<128xf32> to vector<1x128xf32>
      %54 = vector.shape_cast %53 : vector<1x128xf32> to vector<1x1x128xf32>
      %55 = arith.addf %50, %54 : vector<1x1x128xf32>
      %c0_34 = arith.constant 0 : index
      %c0_35 = arith.constant 0 : index
      %c0_36 = arith.constant 0 : index
      %56 = vector.load %arg9[%c0_34, %c0_35, %c0_36] : memref<1x1x128xf32, #tpu.memory_space<vmem>>, vector<1x1x128xf32>
      tpu.vector_store %arg9[%c0_34, %c0_35, %c0_36], %55 {strides = array<i32>} : memref<1x1x128xf32, #tpu.memory_space<vmem>>, vector<1x1x128xf32>,
    } else {
    }
    return
  }
  func.func @transform_0(%arg0: i32, %arg1: i32) -> (i32, i32) {
    %c1_i32 = arith.constant 1 : i32
    %0 = arith.muli %arg0, %c1_i32 : i32
    %1 = arith.addi %0, %arg1 : i32
    %c0_i32 = arith.constant 0 : i32
    %c0_i32_0 = arith.constant 0 : i32
    return %1, %c0_i32 : i32, i32
  }
  func.func @transform_1(%arg0: i32, %arg1: i32) -> (i32, i32) {
    %c0_i32 = arith.constant 0 : i32
    %c0_i32_0 = arith.constant 0 : i32
    %c0_i32_1 = arith.constant 0 : i32
    return %c0_i32, %c0_i32_0 : i32, i32
  }
  func.func @transform_2(%arg0: i32, %arg1: i32) -> (i32, i32) {
    %c0_i32 = arith.constant 0 : i32
    %c0_i32_0 = arith.constant 0 : i32
    %c0_i32_1 = arith.constant 0 : i32
    return %c0_i32, %c0_i32_0 : i32, i32
  }
  func.func @transform_3(%arg0: i32, %arg1: i32) -> (i32, i32) {
    %c0_i32 = arith.constant 0 : i32
    %c0_i32_0 = arith.constant 0 : i32
    %c0_i32_1 = arith.constant 0 : i32
    return %c0_i32, %c0_i32_0 : i32, i32
  }
  func.func @transform_4(%arg0: i32, %arg1: i32) -> (i32, i32) {
    %c0_i32 = arith.constant 0 : i32
    %c0_i32_0 = arith.constant 0 : i32
    %c0_i32_1 = arith.constant 0 : i32
    return %c0_i32, %c0_i32_0 : i32, i32
  }
  func.func @transform_5(%arg0: i32, %arg1: i32) -> (i32, i32) {
    %c1_i32 = arith.constant 1 : i32
    %0 = arith.muli %arg0, %c1_i32 : i32
    %1 = arith.addi %0, %arg1 : i32
    %c0_i32 = arith.constant 0 : i32
    %c0_i32_0 = arith.constant 0 : i32
    return %1, %c0_i32 : i32, i32
  }
  func.func @transform_6(%arg0: i32, %arg1: i32) -> (i32, i32, i32) {
    %c0_i32 = arith.constant 0 : i32
    %c0_i32_0 = arith.constant 0 : i32
    %c0_i32_1 = arith.constant 0 : i32
    return %arg0, %c0_i32, %c0_i32_0 : i32, i32, i32
  }
  func.func @transform_7(%arg0: i32, %arg1: i32) -> (i32, i32, i32) {
    %c0_i32 = arith.constant 0 : i32
    %c0_i32_0 = arith.constant 0 : i32
    %c0_i32_1 = arith.constant 0 : i32
    return %arg0, %c0_i32, %c0_i32_0 : i32, i32, i32
  }
}

module attributes {stable_mosaic.version = 11 : i64} {
  func.func @_ffn_stats_kernel(%arg0: i32, %arg1: i32, %arg2: memref<104x128xf32, #tpu.memory_space<vmem>>, %arg3: memref<128x512xbf16, #tpu.memory_space<vmem>>, %arg4: memref<1x512xf32, #tpu.memory_space<vmem>>, %arg5: memref<512x128xbf16, #tpu.memory_space<vmem>>, %arg6: memref<1x128xf32, #tpu.memory_space<vmem>>, %arg7: memref<104x128xbf16, #tpu.memory_space<vmem>>, %arg8: memref<1x1x128xf32, #tpu.memory_space<vmem>>, %arg9: memref<1x1x128xf32, #tpu.memory_space<vmem>>) attributes {dimension_semantics = [#tpu.dimension_semantics<parallel>, #tpu.dimension_semantics<arbitrary>], iteration_bounds = array<i64: 2, 1>, scalar_prefetch = 0 : i64, scratch_operands = 0 : i64, tpu.core_type = #tpu.core_type<tc>, window_params = [{transform_indices = @transform_0, window_bounds = array<i64: 104, 128>}, {pipeline_mode = #tpu.pipeline_mode<synchronous>, transform_indices = @transform_1, window_bounds = array<i64: 128, 512>}, {pipeline_mode = #tpu.pipeline_mode<synchronous>, transform_indices = @transform_2, window_bounds = array<i64: 1, 512>}, {pipeline_mode = #tpu.pipeline_mode<synchronous>, transform_indices = @transform_3, window_bounds = array<i64: 512, 128>}, {pipeline_mode = #tpu.pipeline_mode<synchronous>, transform_indices = @transform_4, window_bounds = array<i64: 1, 128>}, {transform_indices = @transform_5, window_bounds = array<i64: 104, 128>}, {transform_indices = @transform_6, window_bounds = array<i64: 1, 1, 128>}, {transform_indices = @transform_7, window_bounds = array<i64: 1, 1, 128>}]} {
    %c0_i32 = arith.constant 0 : i32
    %0 = arith.cmpi eq, %arg1, %c0_i32 : i32
    %1 = arith.extui %0 : i1 to i32
    %c0_i32_0 = arith.constant 0 : i32
    %2 = arith.cmpi ne, %1, %c0_i32_0 : i32
    scf.if %2 {
      %cst_21 = arith.constant 0.000000e+00 : f32
      %37 = vector.broadcast %cst_21 : f32 to vector<1x1x128xf32>
      %c0_22 = arith.constant 0 : index
      %c0_23 = arith.constant 0 : index
      %c0_24 = arith.constant 0 : index
      %38 = vector.load %arg8[%c0_22, %c0_23, %c0_24] : memref<1x1x128xf32, #tpu.memory_space<vmem>>, vector<1x1x128xf32>
      tpu.vector_store %arg8[%c0_22, %c0_23, %c0_24], %37 {strides = array<i32>} : memref<1x1x128xf32, #tpu.memory_space<vmem>>, vector<1x1x128xf32>,
      %cst_25 = arith.constant 0.000000e+00 : f32
      %39 = vector.broadcast %cst_25 : f32 to vector<1x1x128xf32>
      %c0_26 = arith.constant 0 : index
      %c0_27 = arith.constant 0 : index
      %c0_28 = arith.constant 0 : index
      %40 = vector.load %arg9[%c0_26, %c0_27, %c0_28] : memref<1x1x128xf32, #tpu.memory_space<vmem>>, vector<1x1x128xf32>
      tpu.vector_store %arg9[%c0_26, %c0_27, %c0_28], %39 {strides = array<i32>} : memref<1x1x128xf32, #tpu.memory_space<vmem>>, vector<1x1x128xf32>,
    } else {
    }
    %c0 = arith.constant 0 : index
    %c0_1 = arith.constant 0 : index
    %3 = vector.load %arg2[%c0, %c0_1] : memref<104x128xf32, #tpu.memory_space<vmem>>, vector<104x128xf32>
    %4 = arith.truncf %3 : vector<104x128xf32> to vector<104x128xbf16>
    %c0_2 = arith.constant 0 : index
    %c0_3 = arith.constant 0 : index
    %5 = vector.load %arg3[%c0_2, %c0_3] : memref<128x512xbf16, #tpu.memory_space<vmem>>, vector<128x512xbf16>
    %cst = arith.constant dense<0.000000e+00> : vector<104x512xf32>
    %6 = tpu.matmul %4, %5, %cst {dimension_numbers = #tpu.dot_dimension_numbers<[1], [0], [0], [1], [0, 0, 1, 1], [], []>} : vector<104x128xbf16>, vector<128x512xbf16>, vector<104x512xf32> -> vector<104x512xf32>
    %c0_4 = arith.constant 0 : index
    %c0_5 = arith.constant 0 : index
    %7 = vector.load %arg4[%c0_4, %c0_5] : memref<1x512xf32, #tpu.memory_space<vmem>>, vector<1x512xf32>
    %8 = vector.broadcast %7 : vector<1x512xf32> to vector<104x512xf32>
    %9 = arith.addf %6, %8 : vector<104x512xf32>
    %cst_6 = arith.constant 5.000000e-01 : f32
    %10 = vector.broadcast %cst_6 : f32 to vector<104x512xf32>
    %11 = arith.mulf %10, %9 : vector<104x512xf32>
    %cst_7 = arith.constant 1.41421354 : f32
    %12 = vector.broadcast %cst_7 : f32 to vector<104x512xf32>
    %13 = arith.divf %9, %12 : vector<104x512xf32>
    %14 = math.erf %13 : vector<104x512xf32>
    %cst_8 = arith.constant 1.000000e+00 : f32
    %15 = vector.broadcast %cst_8 : f32 to vector<104x512xf32>
    %16 = arith.addf %15, %14 : vector<104x512xf32>
    %17 = arith.mulf %11, %16 : vector<104x512xf32>
    %18 = arith.truncf %17 : vector<104x512xf32> to vector<104x512xbf16>
    %c0_9 = arith.constant 0 : index
    %c0_10 = arith.constant 0 : index
    %19 = vector.load %arg5[%c0_9, %c0_10] : memref<512x128xbf16, #tpu.memory_space<vmem>>, vector<512x128xbf16>
    %cst_11 = arith.constant dense<0.000000e+00> : vector<104x128xf32>
    %20 = tpu.matmul %18, %19, %cst_11 {dimension_numbers = #tpu.dot_dimension_numbers<[1], [0], [0], [1], [0, 0, 1, 1], [], []>} : vector<104x512xbf16>, vector<512x128xbf16>, vector<104x128xf32> -> vector<104x128xf32>
    %c0_12 = arith.constant 0 : index
    %c0_13 = arith.constant 0 : index
    %21 = vector.load %arg6[%c0_12, %c0_13] : memref<1x128xf32, #tpu.memory_space<vmem>>, vector<1x128xf32>
    %22 = vector.broadcast %21 : vector<1x128xf32> to vector<104x128xf32>
    %23 = arith.addf %20, %22 : vector<104x128xf32>
    %24 = arith.truncf %23 : vector<104x128xf32> to vector<104x128xbf16>
    %c0_14 = arith.constant 0 : index
    %c0_15 = arith.constant 0 : index
    %25 = vector.load %arg7[%c0_14, %c0_15] : memref<104x128xbf16, #tpu.memory_space<vmem>>, vector<104x128xbf16>
    tpu.vector_store %arg7[%c0_14, %c0_15], %24 {strides = array<i32>} : memref<104x128xbf16, #tpu.memory_space<vmem>>, vector<104x128xbf16>,
    %c1_i32 = arith.constant 1 : i32
    %26 = arith.muli %arg0, %c1_i32 : i32
    %27 = arith.addi %26, %arg1 : i32
    %c104_i32 = arith.constant 104 : i32
    %28 = arith.muli %27, %c104_i32 : i32
    %c104_i32_16 = arith.constant 104 : i32
    %29 = arith.addi %28, %c104_i32_16 : i32
    %c200_i32 = arith.constant 200 : i32
    %30 = arith.cmpi sle, %29, %c200_i32 : i32
    %31 = arith.extui %30 : i1 to i32
    %c0_i32_17 = arith.constant 0 : i32
    %32 = arith.cmpi ne, %31, %c0_i32_17 : i32
    scf.if %32 {
      %c0_21 = arith.constant 0 : index
      %c0_22 = arith.constant 0 : index
      %c0_23 = arith.constant 0 : index
      %37 = vector.load %arg8[%c0_21, %c0_22, %c0_23] : memref<1x1x128xf32, #tpu.memory_space<vmem>>, vector<1x1x128xf32>
      %cst_24 = arith.constant dense<0.000000e+00> : vector<128xf32>
      %38 = vector.multi_reduction <add>, %23, %cst_24 [0] : vector<104x128xf32> to vector<128xf32>
      %39 = vector.shape_cast %38 : vector<128xf32> to vector<1x128xf32>
      %40 = vector.shape_cast %39 : vector<1x128xf32> to vector<1x1x128xf32>
      %41 = arith.addf %37, %40 : vector<1x1x128xf32>
      %c0_25 = arith.constant 0 : index
      %c0_26 = arith.constant 0 : index
      %c0_27 = arith.constant 0 : index
      %42 = vector.load %arg8[%c0_25, %c0_26, %c0_27] : memref<1x1x128xf32, #tpu.memory_space<vmem>>, vector<1x1x128xf32>
      tpu.vector_store %arg8[%c0_25, %c0_26, %c0_27], %41 {strides = array<i32>} : memref<1x1x128xf32, #tpu.memory_space<vmem>>, vector<1x1x128xf32>,
      %c0_28 = arith.constant 0 : index
      %c0_29 = arith.constant 0 : index
      %c0_30 = arith.constant 0 : index
      %43 = vector.load %arg9[%c0_28, %c0_29, %c0_30] : memref<1x1x128xf32, #tpu.memory_space<vmem>>, vector<1x1x128xf32>
      %44 = arith.mulf %23, %23 : vector<104x128xf32>
      %cst_31 = arith.constant dense<0.000000e+00> : vector<128xf32>
      %45 = vector.multi_reduction <add>, %44, %cst_31 [0] : vector<104x128xf32> to vector<128xf32>
      %46 = vector.shape_cast %45 : vector<128xf32> to vector<1x128xf32>
      %47 = vector.shape_cast %46 : vector<1x128xf32> to vector<1x1x128xf32>
      %48 = arith.addf %43, %47 : vector<1x1x128xf32>
      %c0_32 = arith.constant 0 : index
      %c0_33 = arith.constant 0 : index
      %c0_34 = arith.constant 0 : index
      %49 = vector.load %arg9[%c0_32, %c0_33, %c0_34] : memref<1x1x128xf32, #tpu.memory_space<vmem>>, vector<1x1x128xf32>
      tpu.vector_store %arg9[%c0_32, %c0_33, %c0_34], %48 {strides = array<i32>} : memref<1x1x128xf32, #tpu.memory_space<vmem>>, vector<1x1x128xf32>,
    } else {
    }
    %c104_i32_18 = arith.constant 104 : i32
    %33 = arith.addi %28, %c104_i32_18 : i32
    %c200_i32_19 = arith.constant 200 : i32
    %34 = arith.cmpi sgt, %33, %c200_i32_19 : i32
    %35 = arith.extui %34 : i1 to i32
    %c0_i32_20 = arith.constant 0 : i32
    %36 = arith.cmpi ne, %35, %c0_i32_20 : i32
    scf.if %36 {
      %37 = tpu.iota {dimensions = array<i32: 0>} : vector<104x128xi32>
      %38 = vector.broadcast %28 : i32 to vector<104x128xi32>
      %39 = arith.addi %38, %37 : vector<104x128xi32>
      %c200_i32_21 = arith.constant 200 : i32
      %40 = vector.broadcast %c200_i32_21 : i32 to vector<104x128xi32>
      %41 = arith.cmpi slt, %39, %40 : vector<104x128xi32>
      %cst_22 = arith.constant 0.000000e+00 : f32
      %42 = vector.broadcast %cst_22 : f32 to vector<104x128xf32>
      %43 = arith.select %41, %23, %42 : vector<104x128xi1>, vector<104x128xf32>
      %c0_23 = arith.constant 0 : index
      %c0_24 = arith.constant 0 : index
      %c0_25 = arith.constant 0 : index
      %44 = vector.load %arg8[%c0_23, %c0_24, %c0_25] : memref<1x1x128xf32, #tpu.memory_space<vmem>>, vector<1x1x128xf32>
      %cst_26 = arith.constant dense<0.000000e+00> : vector<128xf32>
      %45 = vector.multi_reduction <add>, %43, %cst_26 [0] : vector<104x128xf32> to vector<128xf32>
      %46 = vector.shape_cast %45 : vector<128xf32> to vector<1x128xf32>
      %47 = vector.shape_cast %46 : vector<1x128xf32> to vector<1x1x128xf32>
      %48 = arith.addf %44, %47 : vector<1x1x128xf32>
      %c0_27 = arith.constant 0 : index
      %c0_28 = arith.constant 0 : index
      %c0_29 = arith.constant 0 : index
      %49 = vector.load %arg8[%c0_27, %c0_28, %c0_29] : memref<1x1x128xf32, #tpu.memory_space<vmem>>, vector<1x1x128xf32>
      tpu.vector_store %arg8[%c0_27, %c0_28, %c0_29], %48 {strides = array<i32>} : memref<1x1x128xf32, #tpu.memory_space<vmem>>, vector<1x1x128xf32>,
      %c0_30 = arith.constant 0 : index
      %c0_31 = arith.constant 0 : index
      %c0_32 = arith.constant 0 : index
      %50 = vector.load %arg9[%c0_30, %c0_31, %c0_32] : memref<1x1x128xf32, #tpu.memory_space<vmem>>, vector<1x1x128xf32>
      %51 = arith.mulf %43, %43 : vector<104x128xf32>
      %cst_33 = arith.constant dense<0.000000e+00> : vector<128xf32>
      %52 = vector.multi_reduction <add>, %51, %cst_33 [0] : vector<104x128xf32> to vector<128xf32>
      %53 = vector.shape_cast %52 : vector<128xf32> to vector<1x128xf32>
      %54 = vector.shape_cast %53 : vector<1x128xf32> to vector<1x1x128xf32>
      %55 = arith.addf %50, %54 : vector<1x1x128xf32>
      %c0_34 = arith.constant 0 : index
      %c0_35 = arith.constant 0 : index
      %c0_36 = arith.constant 0 : index
      %56 = vector.load %arg9[%c0_34, %c0_35, %c0_36] : memref<1x1x128xf32, #tpu.memory_space<vmem>>, vector<1x1x128xf32>
      tpu.vector_store %arg9[%c0_34, %c0_35, %c0_36], %55 {strides = array<i32>} : memref<1x1x128xf32, #tpu.memory_space<vmem>>, vector<1x1x128xf32>,
    } else {
    }
    return
  }
  func.func @transform_0(%arg0: i32, %arg1: i32) -> (i32, i32) {
    %c1_i32 = arith.constant 1 : i32
    %0 = arith.muli %arg0, %c1_i32 : i32
    %1 = arith.addi %0, %arg1 : i32
    %c0_i32 = arith.constant 0 : i32
    %c0_i32_0 = arith.constant 0 : i32
    return %1, %c0_i32 : i32, i32
  }
  func.func @transform_1(%arg0: i32, %arg1: i32) -> (i32, i32) {
    %c0_i32 = arith.constant 0 : i32
    %c0_i32_0 = arith.constant 0 : i32
    %c0_i32_1 = arith.constant 0 : i32
    return %c0_i32, %c0_i32_0 : i32, i32
  }
  func.func @transform_2(%arg0: i32, %arg1: i32) -> (i32, i32) {
    %c0_i32 = arith.constant 0 : i32
    %c0_i32_0 = arith.constant 0 : i32
    %c0_i32_1 = arith.constant 0 : i32
    return %c0_i32, %c0_i32_0 : i32, i32
  }
  func.func @transform_3(%arg0: i32, %arg1: i32) -> (i32, i32) {
    %c0_i32 = arith.constant 0 : i32
    %c0_i32_0 = arith.constant 0 : i32
    %c0_i32_1 = arith.constant 0 : i32
    return %c0_i32, %c0_i32_0 : i32, i32
  }
  func.func @transform_4(%arg0: i32, %arg1: i32) -> (i32, i32) {
    %c0_i32 = arith.constant 0 : i32
    %c0_i32_0 = arith.constant 0 : i32
    %c0_i32_1 = arith.constant 0 : i32
    return %c0_i32, %c0_i32_0 : i32, i32
  }
  func.func @transform_5(%arg0: i32, %arg1: i32) -> (i32, i32) {
    %c1_i32 = arith.constant 1 : i32
    %0 = arith.muli %arg0, %c1_i32 : i32
    %1 = arith.addi %0, %arg1 : i32
    %c0_i32 = arith.constant 0 : i32
    %c0_i32_0 = arith.constant 0 : i32
    return %1, %c0_i32 : i32, i32
  }
  func.func @transform_6(%arg0: i32, %arg1: i32) -> (i32, i32, i32) {
    %c0_i32 = arith.constant 0 : i32
    %c0_i32_0 = arith.constant 0 : i32
    %c0_i32_1 = arith.constant 0 : i32
    return %arg0, %c0_i32, %c0_i32_0 : i32, i32, i32
  }
  func.func @transform_7(%arg0: i32, %arg1: i32) -> (i32, i32, i32) {
    %c0_i32 = arith.constant 0 : i32
    %c0_i32_0 = arith.constant 0 : i32
    %c0_i32_1 = arith.constant 0 : i32
    return %arg0, %c0_i32, %c0_i32_0 : i32, i32, i32
  }
}

</mosaic_0001>

<bundles_post_ra>
// kernel: poswise_ffn_forward.5
= control target key start
LH: loop header
LB: loop body
LE: loop exit
PB: predicated region body
PF: predicated region fallthrough
CT: control target
= control target key end

     0   :  { %s764_s15 = smov 0   ;;  %s1056_s0 = inlined_call_operand.vmem [shape: bf16[208,128], index: 0, kind: input, shape index: {}]   ;;  %s1057_s1 = inlined_call_operand.vmem [shape: f32[208,128], index: 1, kind: input, shape index: {}]   ;;  %s1058_s2 = inlined_call_operand.vmem [shape: f32[1,128], index: 2, kind: input, shape index: {}]   ;;  %s1059_s3 = inlined_call_operand.vmem [shape: f32[1,128], index: 3, kind: input, shape index: {}]   ;;  %s1060_s4 = inlined_call_operand.vmem [shape: f32[208,128], index: 4, kind: output, shape index: {}]  }
   0x1 LB: > { %s630_s16 = sadd.s32 4294967295, %s737_s15   ;;  %p634_p0 = scmp.ge.s32.totalorder %s737_s15, 1  ;;  %s737_s15 = sphi %s764_s15, %s14_s15  }
   0x2   : > { %p174_p1 = scmp.lt.s32.totalorder %s737_s15, 3 }
   0x4   : > { %p175_p2 = pnand %p634_p0, %p174_p1 }
   0x5   : > { %s205_s17 = smul.u32 (!%p175_p2), 13, %s630_s16 }
   0x6   : > { %178 = sbr.rel (%p175_p2) target bundleno = 110 (0x6e), region = 36 }
   0x7   : > { %p206_p3 = scmp.lt.s32.totalorder (!%p175_p2), %s205_s17, 25 }
   0xb   : > { %s1078_s17 = smov (!%p206_p3, %s205_s17), 25  ;;  %v785_v1 = vld [vmem:[%s1058_s2] ss:$0 sm:$0xff] }
   0xc   : > { %s635_s18 = sshll.u32 %s1078_s17, 2  ;;  %s636_s19 = sshll.u32 %s1078_s17, 3  ;;  %v798_v5 = vld [vmem:[%s1059_s3] ss:$0 sm:$0xff] }
   0xd   : > { %s779_s22 = scalar_lea.vmem %s1056_s0, %s635_s18  ;;  %s792_s27 = scalar_lea.vmem %s1057_s1, %s636_s19 }
   0xe   : > { %v643_v0 = vld [vmem:[%s779_s22] sm:$0xff]   ;;  %v666_v4 = vld [vmem:[%s779_s22 + $0x8] sm:$0xff]   ;;  %v667_v8 = vld [vmem:[%s779_s22 + $0x10] sm:$0xff]   ;;  %s942_s6 = scalar_lea.vmem %s1060_s4, %s636_s19 }
   0xf   : > { %v644_v2 = vunpack.c.l.bf16 %v643_v0  ;;  %v645_v3 = vunpack.c.h.bf16 %v643_v0  ;;  %v648_v6 = vunpack.c.l.bf16 %v666_v4  ;;  %v649_v7 = vunpack.c.h.bf16 %v666_v4  ;;  %v668_v13 = vld [vmem:[%s779_s22 + $0x18] sm:$0xff]   ;;  %v289_v14 = vld [vmem:[%s792_s27] sm:$0xff]  ;;  %v290_v15 = vld [vmem:[%s792_s27 + $0x8] sm:$0xff] }
  0x10   : > { %v652_v11 = vunpack.c.l.bf16 %v667_v8  ;;  %v653_v12 = vunpack.c.h.bf16 %v667_v8  ;;  %v656_v18 = vunpack.c.l.bf16 %v668_v13  ;;  %v657_v19 = vunpack.c.h.bf16 %v668_v13  ;;  %v291_v22 = vld [vmem:[%s792_s27 + $0x10] sm:$0xff]  ;;  %v292_v23 = vld [vmem:[%s792_s27 + $0x18] sm:$0xff]  ;;  %v293_v37 = vld [vmem:[%s792_s27 + $0x20] sm:$0xff] }
  0x11   : > { %v256_v9 = vmul.f32 %v644_v2, %v785_v1  ;;  %v257_v10 = vmul.f32 %v645_v3, %v785_v1  ;;  %v258_v16 = vmul.f32 %v648_v6, %v785_v1  ;;  %v259_v17 = vmul.f32 %v649_v7, %v785_v1  ;;  %v294_v38 = vld [vmem:[%s792_s27 + $0x28] sm:$0xff]  ;;  %v295_v43 = vld [vmem:[%s792_s27 + $0x30] sm:$0xff]  ;;  %v296_v49 = vld [vmem:[%s792_s27 + $0x38] sm:$0xff] }
  0x12   : > { %v260_v24 = vmul.f32 %v652_v11, %v785_v1  ;;  %v261_v25 = vmul.f32 %v653_v12, %v785_v1  ;;  %v262_v28 = vmul.f32 %v656_v18, %v785_v1  ;;  %v263_v31 = vmul.f32 %v657_v19, %v785_v1  ;;  %v669_v60 = vld [vmem:[%s779_s22 + $0x20] sm:$0xff]   ;;  %v670_v62 = vld [vmem:[%s779_s22 + $0x28] sm:$0xff]   ;;  %v235_v19 = vld [vmem:[%s779_s22 + $0x30] sm:$0xf] }
  0x13   : > { %v276_v20 = vadd.f32 %v798_v5, %v256_v9  ;;  %v277_v21 = vadd.f32 %v798_v5, %v257_v10  ;;  %v278_v26 = vadd.f32 %v798_v5, %v258_v16  ;;  %v279_v27 = vadd.f32 %v798_v5, %v259_v17  ;;  %v297_v17 = vld [vmem:[%s792_s27 + $0x40] sm:$0xff] }
  0x14   : > { %v280_v34 = vadd.f32 %v798_v5, %v260_v24  ;;  %v281_v35 = vadd.f32 %v798_v5, %v261_v25  ;;  %v282_v40 = vadd.f32 %v798_v5, %v262_v28  ;;  %v283_v44 = vadd.f32 %v798_v5, %v263_v31 }
  0x15   : > { %v817_v29 = vadd.f32 %v289_v14, %v276_v20  ;;  %v819_v30 = vadd.f32 %v290_v15, %v277_v21  ;;  %v822_v32 = vadd.f32 %v291_v22, %v278_v26  ;;  %v824_v33 = vadd.f32 %v292_v23, %v279_v27  ;;  %v298_v20 = vld [vmem:[%s792_s27 + $0x48] sm:$0xff] }
  0x16   : > { %v837_v47 = vadd.f32 %v293_v37, %v280_v34  ;;  %v839_v48 = vadd.f32 %v294_v38, %v281_v35  ;;  %v842_v54 = vadd.f32 %v295_v43, %v282_v40  ;;  %v845_v57 = vadd.f32 %v296_v49, %v283_v44 }
  0x17   : > { %v354_v36 = vand.u32 2147483647, %v817_v29  ;;  %v355_v39 = vand.u32 2147483647, %v819_v30  ;;  %v356_v42 = vand.u32 2147483647, %v822_v32  ;;  %v660_v4 = vunpack.c.l.bf16 %v669_v60 }
  0x18   : > { %v357_v46 = vand.u32 2147483647, %v824_v33  ;;  %v358_v56 = vand.u32 2147483647, %v837_v47  ;;  %v359_v59 = vand.u32 2147483647, %v839_v48  ;;  %v661_v8 = vunpack.c.h.bf16 %v669_v60 }
  0x19   : > { %v367_v41 = vsub.f32 0.0, %v354_v36  ;;  %v368_v45 = vsub.f32 0.0, %v355_v39  ;;  %v369_v51 = vsub.f32 0.0, %v356_v42  ;;  %v360_v0 = vand.u32 2147483647, %v842_v54  ;;  %v299_v39 = vld [vmem:[%s792_s27 + $0x50] sm:$0xff] }
  0x1a   : > { %v370_v53 = vsub.f32 0.0, %v357_v46  ;;  %v371_v61 = vsub.f32 0.0, %v358_v56  ;;  %v372_v63 = vsub.f32 0.0, %v359_v59  ;;  %v361_v3 = vand.u32 2147483647, %v845_v57  ;;  %v300_v46 = vld [vmem:[%s792_s27 + $0x58] sm:$0xff] }
  0x1b   : > { %v380_v50 = vmul.f32 1.442695, %v367_v41  ;;  %v382_v52 = vmul.f32 1.442695, %v368_v45  ;;  %v384_v55 = vmul.f32 1.442695, %v369_v51  ;;  %v664_v9 = vunpack.c.l.bf16 %v670_v62 }
  0x1c   : > { %v386_v58 = vmul.f32 1.442695, %v370_v53  ;;  %v388_v2 = vmul.f32 1.442695, %v371_v61  ;;  %v390_v6 = vmul.f32 1.442695, %v372_v63  ;;  %v264_v11 = vmul.f32 %v660_v4, %v785_v1 }
  0x1d   : > { %679 = vpow2.f32 %v380_v50  ;;  %v373_v7 = vsub.f32 0.0, %v360_v0  ;;  %v374_v10 = vsub.f32 0.0, %v361_v3  ;;  %v665_v12 = vunpack.c.h.bf16 %v670_v62 }
  0x1e   : > { %681 = vpow2.f32 %v382_v52  ;;  %v265_v14 = vmul.f32 %v661_v8, %v785_v1  ;;  %v284_v16 = vadd.f32 %v798_v5, %v264_v11  ;;  %v266_v21 = vmul.f32 %v664_v9, %v785_v1 }
  0x1f   : > { %683 = vpow2.f32 %v384_v55  ;;  %v392_v13 = vmul.f32 1.442695, %v373_v7  ;;  %v394_v15 = vmul.f32 1.442695, %v374_v10  ;;  %v267_v22 = vmul.f32 %v665_v12, %v785_v1 }
  0x20   : > { %685 = vpow2.f32 %v386_v58  ;;  %v285_v18 = vadd.f32 %v798_v5, %v265_v14  ;;  %v861_v23 = vadd.f32 %v297_v17, %v284_v16  ;;  %v315_v24 = vmax.f32 %v817_v29, 0.0 }
  0x21   : > { %687 = vpow2.f32 %v388_v2  ;;  %v248_v25 = vunpack.c.l.bf16 %v235_v19  ;;  %v316_v27 = vmax.f32 %v819_v30, 0.0  ;;  %v317_v28 = vmax.f32 %v822_v32, 0.0 }
  0x22   : > { %689 = vpow2.f32 %v390_v6  ;;  %v318_v31 = vmax.f32 %v824_v33, 0.0  ;;  %v867_v34 = vadd.f32 %v298_v20, %v285_v18  ;;  %v319_v37 = vmax.f32 %v837_v47, 0.0 }
  0x23   : > { %691 = vpow2.f32 %v392_v13  ;;  %v286_v38 = vadd.f32 %v798_v5, %v266_v21  ;;  %v287_v40 = vadd.f32 %v798_v5, %v267_v22  ;;  %v320_v44 = vmax.f32 %v839_v48, 0.0 }
  0x24   : > { %693 = vpow2.f32 %v394_v15  ;;  %v362_v45 = vand.u32 2147483647, %v861_v23  ;;  %v321_v51 = vmax.f32 %v842_v54, 0.0  ;;  %v878_v52 = vmul.f32 %v785_v1, %v248_v25 }
  0x25   : > { %v363_v56 = vand.u32 2147483647, %v867_v34  ;;  %v881_v59 = vadd.f32 %v299_v39, %v286_v38  ;;  %v883_v60 = vadd.f32 %v300_v46, %v287_v40  ;;  %vm328_vm2 = vcmp.ne.f32.partialorder %v817_v29, %v817_v29 }
  0x26   : > { %v375_v2 = vsub.f32 0.0, %v362_v45  ;;  %vm329_vm3 = vcmp.ne.f32.partialorder %v819_v30, %v819_v30  ;;  %vm330_vm4 = vcmp.ne.f32.partialorder %v822_v32, %v822_v32  ;;  %vm331_vm7 = vcmp.ne.f32.partialorder %v824_v33, %v824_v33 }
  0x27   : > { %v376_v10 = vsub.f32 0.0, %v363_v56  ;;  %vm332_vm10 = vcmp.ne.f32.partialorder %v837_v47, %v837_v47  ;;  %vm333_vm11 = vcmp.ne.f32.partialorder %v839_v48, %v839_v48  ;;  %vm334_vm13 = vcmp.ne.f32.partialorder %v842_v54, %v842_v54 }
  0x28   : > { %vm335_vm15 = vcmp.ne.f32.partialorder %v845_v57, %v845_v57 }
  0x29   : > { %v398_v45 = vmul.f32 1.442695, %v376_v10 }
  0x2a   : > { %v680_v26 = vpop.eup %679 }
  0x2b   : > { %v682_v35 = vpop.eup %681  ;;  %v406_v36 = vadd.f32 1.0, %v680_v26  ;;  %v409_v42 = vmul.f32 -0.5, %v680_v26  ;;  %v412_v63 = vand.u32 2147483647, %v680_v26 }
  0x2c   : > { %v684_v41 = vpop.eup %683  ;;  %v415_v43 = vadd.f32 1.0, %v682_v35  ;;  %v418_v53 = vmul.f32 -0.5, %v682_v35  ;;  %v421_v0 = vand.u32 2147483647, %v682_v35 }
  0x2d   : > { %v686_v49 = vpop.eup %685  ;;  %695 = vlog2.f32 %v406_v36  ;;  %v424_v50 = vadd.f32 1.0, %v684_v41  ;;  %v427_v55 = vmul.f32 -0.5, %v684_v41  ;;  %v410_v62 = vadd.f32 1.0, %v409_v42 }
  0x2e   : > { %697 = vlog2.f32 %v415_v43  ;;  %v433_v58 = vadd.f32 1.0, %v686_v49  ;;  %v688_v61 = vpop.eup %687  ;;  %v436_v1 = vmul.f32 -0.5, %v686_v49  ;;  %v419_v7 = vadd.f32 1.0, %v418_v53 }
  0x2f   : > { %699 = vlog2.f32 %v424_v50  ;;  %v690_v3 = vpop.eup %689  ;;  %v442_v4 = vadd.f32 1.0, %v688_v61  ;;  %v445_v6 = vmul.f32 -0.5, %v688_v61  ;;  %v428_v8 = vadd.f32 1.0, %v427_v55 }
  0x30   : > { %701 = vlog2.f32 %v433_v58  ;;  %v430_v9 = vand.u32 2147483647, %v684_v41  ;;  %v885_v11 = vpop.eup %691  ;;  %v439_v12 = vand.u32 2147483647, %v686_v49  ;;  %v451_v13 = vadd.f32 1.0, %v690_v3 }
  0x31   : > { %703 = vlog2.f32 %v442_v4  ;;  %v454_v14 = vmul.f32 -0.5, %v690_v3  ;;  %v887_v15 = vpop.eup %693  ;;  %v411_v16 = vmul.f32 %v680_v26, %v410_v62  ;;  %vm889_vm0 = vcmp.lt.f32.partialorder %v412_v63, 0.0004427343 }
  0x32   : > { %vm893_vm1 = vcmp.lt.f32.partialorder %v421_v0, 0.0004427343  ;;  %v460_v19 = vadd.f32 1.0, %v885_v11  ;;  %v437_v20 = vadd.f32 1.0, %v436_v1  ;;  %v446_v21 = vadd.f32 1.0, %v445_v6 }
  0x33   : > { %v448_v22 = vand.u32 2147483647, %v688_v61  ;;  %705 = vlog2.f32 %v451_v13  ;;  %v420_v25 = vmul.f32 %v682_v35, %v419_v7  ;;  %v457_v26 = vand.u32 2147483647, %v690_v3 }
  0x34   : > { %707 = vlog2.f32 %v460_v19  ;;  %v469_v36 = vadd.f32 1.0, %v887_v15  ;;  %v429_v38 = vmul.f32 %v684_v41, %v428_v8  ;;  %vm905_vm5 = vcmp.lt.f32.partialorder %v430_v9, 0.0004427343 }
  0x35   : > { %vm909_vm6 = vcmp.lt.f32.partialorder %v439_v12, 0.0004427343  ;;  %v455_v42 = vadd.f32 1.0, %v454_v14  ;;  %v463_v43 = vmul.f32 -0.5, %v885_v11  ;;  %v396_v35 = vmul.f32 1.442695, %v375_v2 }
  0x36   : > { %709 = vlog2.f32 %v469_v36  ;;  %v438_v46 = vmul.f32 %v686_v49, %v437_v20  ;;  %v447_v41 = vmul.f32 %v688_v61, %v446_v21  ;;  %vm916_vm8 = vcmp.lt.f32.partialorder %v448_v22, 0.0004427343  ;;  %v301_v2 = vld [vmem:[%s792_s27 + $0x60] sm:$0xff] }
  0x37   : > { %v472_v53 = vmul.f32 -0.5, %v887_v15  ;;  %vm921_vm9 = vcmp.lt.f32.partialorder %v457_v26, 0.0004427343  ;;  %v466_v58 = vand.u32 2147483647, %v885_v11  ;;  %711 = vpow2.f32 %v396_v35 }
  0x38   : > { %v364_v62 = vand.u32 2147483647, %v881_v59  ;;  %v456_v49 = vmul.f32 %v690_v3, %v455_v42  ;;  %713 = vpow2.f32 %v398_v45  ;;  %v365_v61 = vand.u32 2147483647, %v883_v60 }
  0x39   : > { %v464_v6 = vadd.f32 1.0, %v463_v43  ;;  %v288_v8 = vadd.f32 %v798_v5, %v878_v52  ;;  %v473_v12 = vadd.f32 1.0, %v472_v53  ;;  %vm980_vm12 = vcmp.lt.f32.partialorder %v466_v58, 0.0004427343 }
  0x3a   : > { %v696_v55 = vpop.eup %695  ;;  %v377_v7 = vsub.f32 0.0, %v364_v62  ;;  %v378_v3 = vsub.f32 0.0, %v365_v61 }
  0x3b   : > { %v698_v63 = vpop.eup %697  ;;  %v408_v0 = vmul.f32 0.6931472, %v696_v55  ;;  %v465_v39 = vmul.f32 %v885_v11, %v464_v6  ;;  %v474_v45 = vmul.f32 %v887_v15, %v473_v12 }
  0x3c   : > { %v700_v1 = vpop.eup %699  ;;  %v417_v4 = vmul.f32 0.6931472, %v698_v63  ;;  %v400_v14 = vmul.f32 1.442695, %v377_v7  ;;  %v402_v21 = vmul.f32 1.442695, %v378_v3 }
  0x3d   : > { %v414_v9 = vsel %vm889_vm0, %v411_v16, %v408_v0  ;;  %v426_v10 = vmul.f32 0.6931472, %v700_v1  ;;  %v702_v13 = vpop.eup %701  ;;  %v948_v16 = vadd.f32 %v301_v2, %v288_v8 }
  0x3e   : > { %v523_v5 = vadd.f32 %v414_v9, %v315_v24  ;;  %v423_v52 = vsel %vm893_vm1, %v420_v25, %v417_v4  ;;  %v435_v20 = vmul.f32 0.6931472, %v702_v13  ;;  %v704_v22 = vpop.eup %703  ;;  %v475_v25 = vand.u32 2147483647, %v887_v15 }
  0x3f   : > { %v524_v17 = vadd.f32 %v423_v52, %v316_v27  ;;  %v432_v19 = vsel %vm905_vm5, %v429_v38, %v426_v10  ;;  %715 = vpow2.f32 %v400_v14  ;;  %v444_v36 = vmul.f32 0.6931472, %v704_v22 }
  0x40   : > { %v536_v24 = vsel %vm328_vm2, %v817_v29, %v523_v5  ;;  %v525_v18 = vadd.f32 %v432_v19, %v317_v28  ;;  %v441_v26 = vsel %vm909_vm6, %v438_v46, %v435_v20  ;;  %717 = vpow2.f32 %v402_v21  ;;  %v706_v38 = vpop.eup %705 }
  0x41   : > { %549 = vst [vmem:[%s942_s6] sm:$0xff] %v536_v24  ;;  %v537_v27 = vsel %vm329_vm3, %v819_v30, %v524_v17  ;;  %v526_v28 = vadd.f32 %v441_v26, %v318_v31  ;;  %v366_v30 = vand.u32 2147483647, %v948_v16  ;;  %v708_v42 = vpop.eup %707  ;;  %v450_v40 = vsel %vm916_vm8, %v447_v41, %v444_v36 }
  0x42   : > { %550 = vst [vmem:[%s942_s6 + $0x8] sm:$0xff] %v537_v27  ;;  %v538_v29 = vsel %vm330_vm4, %v822_v32, %v525_v18  ;;  %v453_v43 = vmul.f32 0.6931472, %v706_v38  ;;  %v527_v31 = vadd.f32 %v450_v40, %v319_v37  ;;  %v462_v11 = vmul.f32 0.6931472, %v708_v42 }
  0x43   : > { %551 = vst [vmem:[%s942_s6 + $0x10] sm:$0xff] %v538_v29  ;;  %v539_v32 = vsel %vm331_vm7, %v824_v33, %v526_v28  ;;  %v379_v46 = vsub.f32 0.0, %v366_v30  ;;  %v710_v50 = vpop.eup %709  ;;  %v322_v15 = vmax.f32 %v845_v57, 0.0  ;;  %vm997_vm14 = vcmp.lt.f32.partialorder %v475_v25, 0.0004427343 }
  0x44   : > { %552 = vst [vmem:[%s942_s6 + $0x18] sm:$0xff] %v539_v32  ;;  %v459_v41 = vsel %vm921_vm9, %v456_v49, %v453_v43  ;;  %v540_v33 = vsel %vm332_vm10, %v837_v47, %v527_v31  ;;  %v468_v55 = vsel %vm980_vm12, %v465_v39, %v462_v11  ;;  %v471_v56 = vmul.f32 0.6931472, %v710_v50  ;;  %v712_v58 = vpop.eup %711 }
  0x45   : > { %v528_v37 = vadd.f32 %v459_v41, %v320_v44  ;;  %553 = vst [vmem:[%s942_s6 + $0x20] sm:$0xff] %v540_v33  ;;  %v529_v62 = vadd.f32 %v468_v55, %v321_v51  ;;  %v714_v63 = vpop.eup %713  ;;  %v478_v0 = vadd.f32 1.0, %v712_v58  ;;  %v404_v49 = vmul.f32 1.442695, %v379_v46 }
  0x46   : > { %v477_v44 = vsel %vm997_vm14, %v474_v45, %v471_v56  ;;  %v487_v2 = vadd.f32 1.0, %v714_v63  ;;  %v481_v6 = vmul.f32 -0.5, %v712_v58  ;;  %v490_v8 = vmul.f32 -0.5, %v714_v63 }
  0x47   : > { %v541_v47 = vsel %vm333_vm11, %v839_v48, %v528_v37  ;;  %v542_v51 = vsel %vm334_vm13, %v842_v54, %v529_v62  ;;  %v530_v61 = vadd.f32 %v477_v44, %v322_v15  ;;  %719 = vlog2.f32 %v478_v0 }
  0x48   : > { %554 = vst [vmem:[%s942_s6 + $0x28] sm:$0xff] %v541_v47  ;;  %555 = vst [vmem:[%s942_s6 + $0x30] sm:$0xff] %v542_v51  ;;  %721 = vlog2.f32 %v487_v2  ;;  %v482_v10 = vadd.f32 1.0, %v481_v6  ;;  %v484_v12 = vand.u32 2147483647, %v712_v58  ;;  %v491_v54 = vadd.f32 1.0, %v490_v8 }
  0x49   : > { %v543_v1 = vsel %vm335_vm15, %v845_v57, %v530_v61  ;;  %723 = vpow2.f32 %v404_v49  ;;  %v493_v3 = vand.u32 2147483647, %v714_v63  ;;  %v323_v57 = vmax.f32 %v861_v23, 0.0 }
  0x4a   : > { %556 = vst [vmem:[%s942_s6 + $0x38] sm:$0xff] %v543_v1  ;;  %v483_v52 = vmul.f32 %v712_v58, %v482_v10  ;;  %vm485_vm0 = vcmp.lt.f32.partialorder %v484_v12, 0.0004427343  ;;  %v492_v17 = vmul.f32 %v714_v63, %v491_v54  ;;  %v324_v21 = vmax.f32 %v867_v34, 0.0 }
  0x4b   : > { %vm494_vm1 = vcmp.lt.f32.partialorder %v493_v3, 0.0004427343  ;;  %vm336_vm2 = vcmp.ne.f32.partialorder %v861_v23, %v861_v23  ;;  %vm337_vm3 = vcmp.ne.f32.partialorder %v867_v34, %v867_v34  ;;  %v325_v43 = vmax.f32 %v881_v59, 0.0 }
  0x4c   : > { %v716_v48 = vpop.eup %715  ;;  %v326_v11 = vmax.f32 %v883_v60, 0.0  ;;  %vm338_vm6 = vcmp.ne.f32.partialorder %v881_v59, %v881_v59  ;;  %vm339_vm7 = vcmp.ne.f32.partialorder %v883_v60, %v883_v60  ;;  %v327_v62 = vmax.f32 %v948_v16, 0.0 }
  0x4d   : > { %v718_v4 = vpop.eup %717  ;;  %v496_v7 = vadd.f32 1.0, %v716_v48  ;;  %v499_v13 = vmul.f32 -0.5, %v716_v48  ;;  %v502_v25 = vand.u32 2147483647, %v716_v48  ;;  %vm340_vm9 = vcmp.ne.f32.partialorder %v948_v16, %v948_v16 }
  0x4e   : > { %v505_v9 = vadd.f32 1.0, %v718_v4  ;;  %v508_v5 = vmul.f32 -0.5, %v718_v4  ;;  %v511_v36 = vand.u32 2147483647, %v718_v4 }
  0x4f   : > { %725 = vlog2.f32 %v496_v7  ;;  %v500_v22 = vadd.f32 1.0, %v499_v13  ;;  %vm503_vm4 = vcmp.lt.f32.partialorder %v502_v25, 0.0004427343 }
  0x50   : > { %727 = vlog2.f32 %v505_v9  ;;  %v509_v27 = vadd.f32 1.0, %v508_v5  ;;  %vm512_vm5 = vcmp.lt.f32.partialorder %v511_v36, 0.0004427343 }
  0x51   : > { %v501_v30 = vmul.f32 %v716_v48, %v500_v22 }
  0x52   : > { %v510_v35 = vmul.f32 %v718_v4, %v509_v27 }
  0x54   : > { %v720_v14 = vpop.eup %719 }
  0x55   : > { %v722_v19 = vpop.eup %721  ;;  %v480_v20 = vmul.f32 0.6931472, %v720_v14 }
  0x56   : > { %v724_v24 = vpop.eup %723  ;;  %v489_v18 = vmul.f32 0.6931472, %v722_v19 }
  0x57   : > { %v486_v26 = vsel %vm485_vm0, %v483_v52, %v480_v20  ;;  %v514_v38 = vadd.f32 1.0, %v724_v24  ;;  %v517_v50 = vmul.f32 -0.5, %v724_v24  ;;  %v520_v55 = vand.u32 2147483647, %v724_v24 }
  0x58   : > { %v531_v29 = vadd.f32 %v486_v26, %v323_v57  ;;  %v495_v28 = vsel %vm494_vm1, %v492_v17, %v489_v18 }
  0x59   : > { %v532_v39 = vadd.f32 %v495_v28, %v324_v21  ;;  %729 = vlog2.f32 %v514_v38  ;;  %v518_v37 = vadd.f32 1.0, %v517_v50  ;;  %vm521_vm8 = vcmp.lt.f32.partialorder %v520_v55, 0.0004427343 }
  0x5a   : > { %v544_v40 = vsel %vm336_vm2, %v861_v23, %v531_v29 }
  0x5b   : > { %557 = vst [vmem:[%s942_s6 + $0x40] sm:$0xff] %v544_v40  ;;  %v545_v32 = vsel %vm337_vm3, %v867_v34, %v532_v39  ;;  %v519_v56 = vmul.f32 %v724_v24, %v518_v37 }
  0x5c   : > { %v726_v42 = vpop.eup %725  ;;  %558 = vst [vmem:[%s942_s6 + $0x48] sm:$0xff] %v545_v32 }
  0x5d   : > { %v728_v45 = vpop.eup %727  ;;  %v498_v31 = vmul.f32 0.6931472, %v726_v42 }
  0x5e   : > { %v507_v46 = vmul.f32 0.6931472, %v728_v45 }
  0x5f   : > { %v504_v23 = vsel %vm503_vm4, %v501_v30, %v498_v31 }
  0x60   : > { %v533_v41 = vadd.f32 %v504_v23, %v325_v43  ;;  %v513_v15 = vsel %vm512_vm5, %v510_v35, %v507_v46 }
  0x61   : > { %v534_v53 = vadd.f32 %v513_v15, %v326_v11 }
  0x62   : > { %v546_v34 = vsel %vm338_vm6, %v881_v59, %v533_v41 }
  0x63   : > { %559 = vst [vmem:[%s942_s6 + $0x50] sm:$0xff] %v546_v34  ;;  %v547_v33 = vsel %vm339_vm7, %v883_v60, %v534_v53 }
  0x64   : > { %560 = vst [vmem:[%s942_s6 + $0x58] sm:$0xff] %v547_v33 }
  0x66   : > { %v730_v58 = vpop.eup %729 }
  0x67   : > { %v516_v63 = vmul.f32 0.6931472, %v730_v58 }
  0x69   : > { %v522_v47 = vsel %vm521_vm8, %v519_v56, %v516_v63 }
  0x6a   : > { %v535_v44 = vadd.f32 %v522_v47, %v327_v62 }
  0x6c   : > { %v548_v0 = vsel %vm340_vm9, %v948_v16, %v535_v44 }
  0x6d   : > { %561 = vst [vmem:[%s942_s6 + $0x60] sm:$0xff] %v548_v0 }
  0x6e PF: > { %s14_s15 = sadd.s32 1, %s737_s15  }
  0x6f   : > { %p11_p4 = scmp.ge.s32.totalorder %s14_s15, 4  }
  0x71   :  { %13 = sbr.rel (!%p11_p4) target bundleno = 1 (0x1), region = 69 }

// kernel: poswise_ffn_forward.7
= control target key start
LH: loop header
LB: loop body
LE: loop exit
PB: predicated region body
PF: predicated region fallthrough
CT: control target
= control target key end

     0   :  { %s864_s15 = smov 0   ;;  %s1228_s0 = inlined_call_operand.vmem [shape: bf16[256,128], index: 0, kind: input, shape index: {}]   ;;  %s1229_s1 = inlined_call_operand.vmem [shape: f32[256,128], index: 1, kind: input, shape index: {}]   ;;  %s1230_s2 = inlined_call_operand.vmem [shape: f32[1,128], index: 2, kind: input, shape index: {}]   ;;  %s1231_s3 = inlined_call_operand.vmem [shape: f32[1,128], index: 3, kind: input, shape index: {}]   ;;  %s1232_s4 = inlined_call_operand.vmem [shape: f32[256,128], index: 4, kind: output, shape index: {}]  }
   0x1 LB: > { %s705_s16 = sadd.s32 4294967295, %s837_s15   ;;  %p709_p0 = scmp.ge.s32.totalorder %s837_s15, 1  ;;  %s837_s15 = sphi %s864_s15, %s14_s15  }
   0x2   : > { %p174_p1 = scmp.lt.s32.totalorder %s837_s15, 3 }
   0x4   : > { %p175_p2 = pnand %p709_p0, %p174_p1 }
   0x5   : > { %s710_s17 = sshll.u32 (!%p175_p2), %s705_s16, 4 }
   0x6   : > { %178 = sbr.rel (%p175_p2) target bundleno = 129 (0x81), region = 36  ;;  %p206_p3 = scmp.lt.s32.totalorder (!%p175_p2), %s710_s17, 31 }
   0xb   : > { %s1256_s17 = smov (!%p206_p3, %s710_s17), 31  ;;  %v885_v1 = vld [vmem:[%s1230_s2] ss:$0 sm:$0xff] }
   0xc   : > { %s711_s18 = sshll.u32 %s1256_s17, 2  ;;  %s713_s19 = sshll.u32 %s1256_s17, 3  ;;  %v898_v5 = vld [vmem:[%s1231_s3] ss:$0 sm:$0xff] }
   0xd   : > { %s879_s22 = scalar_lea.vmem %s1228_s0, %s711_s18  ;;  %s892_s27 = scalar_lea.vmem %s1229_s1, %s713_s19 }
   0xe   : > { %v721_v0 = vld [vmem:[%s879_s22] sm:$0xff]   ;;  %v752_v4 = vld [vmem:[%s879_s22 + $0x8] sm:$0xff]   ;;  %v753_v8 = vld [vmem:[%s879_s22 + $0x10] sm:$0xff]   ;;  %s1059_s6 = scalar_lea.vmem %s1232_s4, %s713_s19 }
   0xf   : > { %v722_v2 = vunpack.c.l.bf16 %v721_v0  ;;  %v723_v3 = vunpack.c.h.bf16 %v721_v0  ;;  %v726_v6 = vunpack.c.l.bf16 %v752_v4  ;;  %v727_v7 = vunpack.c.h.bf16 %v752_v4  ;;  %v754_v13 = vld [vmem:[%s879_s22 + $0x18] sm:$0xff]   ;;  %v301_v14 = vld [vmem:[%s892_s27] sm:$0xff]  ;;  %v302_v15 = vld [vmem:[%s892_s27 + $0x8] sm:$0xff] }
  0x10   : > { %v730_v11 = vunpack.c.l.bf16 %v753_v8  ;;  %v731_v12 = vunpack.c.h.bf16 %v753_v8  ;;  %v734_v18 = vunpack.c.l.bf16 %v754_v13  ;;  %v735_v19 = vunpack.c.h.bf16 %v754_v13  ;;  %v303_v22 = vld [vmem:[%s892_s27 + $0x10] sm:$0xff]  ;;  %v304_v23 = vld [vmem:[%s892_s27 + $0x18] sm:$0xff]  ;;  %v305_v37 = vld [vmem:[%s892_s27 + $0x20] sm:$0xff] }
  0x11   : > { %v262_v9 = vmul.f32 %v722_v2, %v885_v1  ;;  %v263_v10 = vmul.f32 %v723_v3, %v885_v1  ;;  %v264_v16 = vmul.f32 %v726_v6, %v885_v1  ;;  %v265_v17 = vmul.f32 %v727_v7, %v885_v1  ;;  %v306_v38 = vld [vmem:[%s892_s27 + $0x28] sm:$0xff]  ;;  %v307_v43 = vld [vmem:[%s892_s27 + $0x30] sm:$0xff]  ;;  %v308_v49 = vld [vmem:[%s892_s27 + $0x38] sm:$0xff] }
  0x12   : > { %v266_v24 = vmul.f32 %v730_v11, %v885_v1  ;;  %v267_v25 = vmul.f32 %v731_v12, %v885_v1  ;;  %v268_v28 = vmul.f32 %v734_v18, %v885_v1  ;;  %v269_v31 = vmul.f32 %v735_v19, %v885_v1  ;;  %v755_v60 = vld [vmem:[%s879_s22 + $0x20] sm:$0xff]   ;;  %v756_v62 = vld [vmem:[%s879_s22 + $0x28] sm:$0xff]  }
  0x13   : > { %v285_v20 = vadd.f32 %v898_v5, %v262_v9  ;;  %v286_v21 = vadd.f32 %v898_v5, %v263_v10  ;;  %v287_v26 = vadd.f32 %v898_v5, %v264_v16  ;;  %v288_v27 = vadd.f32 %v898_v5, %v265_v17  ;;  %v757_v16 = vld [vmem:[%s879_s22 + $0x30] sm:$0xff]   ;;  %v309_v19 = vld [vmem:[%s892_s27 + $0x40] sm:$0xff] }
  0x14   : > { %v289_v34 = vadd.f32 %v898_v5, %v266_v24  ;;  %v290_v35 = vadd.f32 %v898_v5, %v267_v25  ;;  %v291_v40 = vadd.f32 %v898_v5, %v268_v28  ;;  %v292_v44 = vadd.f32 %v898_v5, %v269_v31 }
  0x15   : > { %v917_v29 = vadd.f32 %v301_v14, %v285_v20  ;;  %v919_v30 = vadd.f32 %v302_v15, %v286_v21  ;;  %v922_v32 = vadd.f32 %v303_v22, %v287_v26  ;;  %v924_v33 = vadd.f32 %v304_v23, %v288_v27  ;;  %v310_v21 = vld [vmem:[%s892_s27 + $0x48] sm:$0xff] }
  0x16   : > { %v937_v47 = vadd.f32 %v305_v37, %v289_v34  ;;  %v939_v48 = vadd.f32 %v306_v38, %v290_v35  ;;  %v942_v54 = vadd.f32 %v307_v43, %v291_v40  ;;  %v945_v57 = vadd.f32 %v308_v49, %v292_v44  ;;  %v311_v34 = vld [vmem:[%s892_s27 + $0x50] sm:$0xff] }
  0x17   : > { %v381_v36 = vand.u32 2147483647, %v917_v29  ;;  %v382_v39 = vand.u32 2147483647, %v919_v30  ;;  %v383_v42 = vand.u32 2147483647, %v922_v32  ;;  %v738_v4 = vunpack.c.l.bf16 %v755_v60 }
  0x18   : > { %v384_v46 = vand.u32 2147483647, %v924_v33  ;;  %v385_v56 = vand.u32 2147483647, %v937_v47  ;;  %v386_v59 = vand.u32 2147483647, %v939_v48  ;;  %v739_v8 = vunpack.c.h.bf16 %v755_v60 }
  0x19   : > { %v397_v41 = vsub.f32 0.0, %v381_v36  ;;  %v398_v45 = vsub.f32 0.0, %v382_v39  ;;  %v399_v51 = vsub.f32 0.0, %v383_v42  ;;  %v387_v0 = vand.u32 2147483647, %v942_v54 }
  0x1a   : > { %v400_v53 = vsub.f32 0.0, %v384_v46  ;;  %v401_v61 = vsub.f32 0.0, %v385_v56  ;;  %v402_v63 = vsub.f32 0.0, %v386_v59  ;;  %v388_v3 = vand.u32 2147483647, %v945_v57  ;;  %v312_v59 = vld [vmem:[%s892_s27 + $0x58] sm:$0xff] }
  0x1b   : > { %v413_v50 = vmul.f32 1.442695, %v397_v41  ;;  %v415_v52 = vmul.f32 1.442695, %v398_v45  ;;  %v417_v55 = vmul.f32 1.442695, %v399_v51  ;;  %v742_v9 = vunpack.c.l.bf16 %v756_v62 }
  0x1c   : > { %v419_v58 = vmul.f32 1.442695, %v400_v53  ;;  %v421_v2 = vmul.f32 1.442695, %v401_v61  ;;  %v423_v6 = vmul.f32 1.442695, %v402_v63  ;;  %v270_v11 = vmul.f32 %v738_v4, %v885_v1 }
  0x1d   : > { %767 = vpow2.f32 %v413_v50  ;;  %v403_v7 = vsub.f32 0.0, %v387_v0  ;;  %v404_v10 = vsub.f32 0.0, %v388_v3  ;;  %v743_v12 = vunpack.c.h.bf16 %v756_v62  ;;  %v982_v53 = vld [vmem:[%s879_s22 + $0x38] sm:$0xff]  }
  0x1e   : > { %769 = vpow2.f32 %v415_v52  ;;  %v271_v14 = vmul.f32 %v739_v8, %v885_v1  ;;  %v272_v15 = vmul.f32 %v742_v9, %v885_v1  ;;  %v293_v18 = vadd.f32 %v898_v5, %v270_v11 }
  0x1f   : > { %771 = vpow2.f32 %v417_v55  ;;  %v425_v13 = vmul.f32 1.442695, %v403_v7  ;;  %v427_v17 = vmul.f32 1.442695, %v404_v10  ;;  %v273_v22 = vmul.f32 %v743_v12, %v885_v1 }
  0x20   : > { %773 = vpow2.f32 %v419_v58  ;;  %v294_v20 = vadd.f32 %v898_v5, %v271_v14  ;;  %v746_v23 = vunpack.c.l.bf16 %v757_v16  ;;  %v333_v24 = vmax.f32 %v917_v29, 0.0 }
  0x21   : > { %775 = vpow2.f32 %v421_v2  ;;  %v334_v25 = vmax.f32 %v919_v30, 0.0  ;;  %v295_v26 = vadd.f32 %v898_v5, %v272_v15  ;;  %v335_v27 = vmax.f32 %v922_v32, 0.0 }
  0x22   : > { %777 = vpow2.f32 %v423_v6  ;;  %v336_v28 = vmax.f32 %v924_v33, 0.0  ;;  %v966_v31 = vadd.f32 %v309_v19, %v293_v18  ;;  %v747_v35 = vunpack.c.h.bf16 %v757_v16 }
  0x23   : > { %779 = vpow2.f32 %v425_v13  ;;  %v337_v37 = vmax.f32 %v937_v47, 0.0  ;;  %v338_v38 = vmax.f32 %v939_v48, 0.0  ;;  %v339_v39 = vmax.f32 %v942_v54, 0.0 }
  0x24   : > { %781 = vpow2.f32 %v427_v17  ;;  %v972_v40 = vadd.f32 %v310_v21, %v294_v20  ;;  %v340_v43 = vmax.f32 %v945_v57, 0.0  ;;  %v296_v44 = vadd.f32 %v898_v5, %v273_v22 }
  0x25   : > { %v977_v45 = vmul.f32 %v746_v23, %v885_v1  ;;  %v979_v52 = vadd.f32 %v311_v34, %v295_v26  ;;  %v389_v58 = vand.u32 2147483647, %v966_v31  ;;  %v987_v60 = vmul.f32 %v747_v35, %v885_v1 }
  0x26   : > { %v390_v63 = vand.u32 2147483647, %v972_v40  ;;  %v750_v3 = vunpack.c.l.bf16 %v982_v53  ;;  %v991_v9 = vadd.f32 %v312_v59, %v296_v44  ;;  %vm349_vm2 = vcmp.ne.f32.partialorder %v917_v29, %v917_v29 }
  0x27   : > { %v405_v13 = vsub.f32 0.0, %v389_v58  ;;  %vm350_vm3 = vcmp.ne.f32.partialorder %v919_v30, %v919_v30  ;;  %vm351_vm4 = vcmp.ne.f32.partialorder %v922_v32, %v922_v32  ;;  %vm352_vm7 = vcmp.ne.f32.partialorder %v924_v33, %v924_v33 }
  0x28   : > { %v406_v17 = vsub.f32 0.0, %v390_v63  ;;  %vm353_vm10 = vcmp.ne.f32.partialorder %v937_v47, %v937_v47  ;;  %vm354_vm12 = vcmp.ne.f32.partialorder %v939_v48, %v939_v48  ;;  %vm355_vm13 = vcmp.ne.f32.partialorder %v942_v54, %v942_v54 }
  0x29   : > { %v429_v63 = vmul.f32 1.442695, %v405_v13  ;;  %vm356_vm15 = vcmp.ne.f32.partialorder %v945_v57, %v945_v57 }
  0x2a   : > { %v768_v36 = vpop.eup %767 }
  0x2b   : > { %v770_v41 = vpop.eup %769  ;;  %v445_v42 = vadd.f32 1.0, %v768_v36  ;;  %v448_v49 = vmul.f32 -0.5, %v768_v36  ;;  %v451_v61 = vand.u32 2147483647, %v768_v36 }
  0x2c   : > { %v772_v46 = vpop.eup %771  ;;  %v454_v50 = vadd.f32 1.0, %v770_v41  ;;  %v457_v51 = vmul.f32 -0.5, %v770_v41  ;;  %v460_v0 = vand.u32 2147483647, %v770_v41 }
  0x2d   : > { %v774_v55 = vpop.eup %773  ;;  %783 = vlog2.f32 %v445_v42  ;;  %v463_v56 = vadd.f32 1.0, %v772_v46  ;;  %v466_v62 = vmul.f32 -0.5, %v772_v46  ;;  %v449_v6 = vadd.f32 1.0, %v448_v49 }
  0x2e   : > { %785 = vlog2.f32 %v454_v50  ;;  %v472_v2 = vadd.f32 1.0, %v774_v55  ;;  %v776_v4 = vpop.eup %775  ;;  %v458_v7 = vadd.f32 1.0, %v457_v51  ;;  %v475_v8 = vmul.f32 -0.5, %v774_v55 }
  0x2f   : > { %787 = vlog2.f32 %v463_v56  ;;  %v778_v10 = vpop.eup %777  ;;  %v481_v11 = vadd.f32 1.0, %v776_v4  ;;  %v484_v12 = vmul.f32 -0.5, %v776_v4  ;;  %vm993_vm0 = vcmp.lt.f32.partialorder %v451_v61, 0.0004427343 }
  0x30   : > { %789 = vlog2.f32 %v472_v2  ;;  %v467_v15 = vadd.f32 1.0, %v466_v62  ;;  %v469_v16 = vand.u32 2147483647, %v772_v46  ;;  %v997_v18 = vpop.eup %779  ;;  %vm999_vm1 = vcmp.lt.f32.partialorder %v460_v0, 0.0004427343 }
  0x31   : > { %v478_v20 = vand.u32 2147483647, %v774_v55  ;;  %791 = vlog2.f32 %v481_v11  ;;  %v490_v21 = vadd.f32 1.0, %v778_v10  ;;  %v493_v22 = vmul.f32 -0.5, %v778_v10  ;;  %v1003_v23 = vpop.eup %781 }
  0x32   : > { %v450_v26 = vmul.f32 %v768_v36, %v449_v6  ;;  %v459_v34 = vmul.f32 %v770_v41, %v458_v7  ;;  %v476_v35 = vadd.f32 1.0, %v475_v8  ;;  %v499_v42 = vadd.f32 1.0, %v997_v18 }
  0x33   : > { %v485_v44 = vadd.f32 1.0, %v484_v12  ;;  %v487_v49 = vand.u32 2147483647, %v776_v4  ;;  %793 = vlog2.f32 %v490_v21  ;;  %v494_v50 = vadd.f32 1.0, %v493_v22 }
  0x34   : > { %v496_v51 = vand.u32 2147483647, %v778_v10  ;;  %795 = vlog2.f32 %v499_v42  ;;  %v502_v56 = vmul.f32 -0.5, %v997_v18  ;;  %v508_v36 = vadd.f32 1.0, %v1003_v23 }
  0x35   : > { %v468_v41 = vmul.f32 %v772_v46, %v467_v15  ;;  %vm1014_vm5 = vcmp.lt.f32.partialorder %v469_v16, 0.0004427343  ;;  %vm1018_vm6 = vcmp.lt.f32.partialorder %v478_v20, 0.0004427343  ;;  %v505_v61 = vand.u32 2147483647, %v997_v18 }
  0x36   : > { %797 = vlog2.f32 %v508_v36  ;;  %v511_v62 = vmul.f32 -0.5, %v1003_v23  ;;  %v431_v0 = vmul.f32 1.442695, %v406_v17  ;;  %v477_v46 = vmul.f32 %v774_v55, %v476_v35  ;;  %v313_v16 = vld [vmem:[%s892_s27 + $0x60] sm:$0xff] }
  0x37   : > { %v486_v2 = vmul.f32 %v776_v4, %v485_v44  ;;  %vm1026_vm8 = vcmp.lt.f32.partialorder %v487_v49, 0.0004427343  ;;  %v1030_v7 = vmul.f32 %v778_v10, %v494_v50  ;;  %vm1032_vm9 = vcmp.lt.f32.partialorder %v496_v51, 0.0004427343 }
  0x38   : > { %v503_v12 = vadd.f32 1.0, %v502_v56  ;;  %v514_v13 = vand.u32 2147483647, %v1003_v23  ;;  %799 = vpow2.f32 %v429_v63  ;;  %v391_v15 = vand.u32 2147483647, %v979_v52 }
  0x39   : > { %vm1041_vm11 = vcmp.lt.f32.partialorder %v505_v61, 0.0004427343  ;;  %801 = vpow2.f32 %v431_v0  ;;  %v392_v17 = vand.u32 2147483647, %v991_v9  ;;  %v512_v22 = vadd.f32 1.0, %v511_v62 }
  0x3a   : > { %v784_v8 = vpop.eup %783  ;;  %v407_v35 = vsub.f32 0.0, %v391_v15  ;;  %v297_v42 = vadd.f32 %v898_v5, %v977_v45  ;;  %v298_v51 = vadd.f32 %v898_v5, %v987_v60  ;;  %v504_v15 = vmul.f32 %v997_v18, %v503_v12 }
  0x3b   : > { %v786_v55 = vpop.eup %785  ;;  %v447_v4 = vmul.f32 0.6931472, %v784_v8  ;;  %v408_v50 = vsub.f32 0.0, %v392_v17  ;;  %vm1115_vm14 = vcmp.lt.f32.partialorder %v514_v13, 0.0004427343  ;;  %v315_v13 = vld [vmem:[%s892_s27 + $0x70] sm:$0xff] }
  0x3c   : > { %v788_v20 = vpop.eup %787  ;;  %v456_v21 = vmul.f32 0.6931472, %v786_v55  ;;  %v1067_v60 = vadd.f32 %v313_v16, %v297_v42  ;;  %v513_v55 = vmul.f32 %v1003_v23, %v512_v22 }
  0x3d   : > { %v453_v44 = vsel %vm993_vm0, %v450_v26, %v447_v4  ;;  %v465_v49 = vmul.f32 0.6931472, %v788_v20  ;;  %v790_v56 = vpop.eup %789  ;;  %v433_v26 = vmul.f32 1.442695, %v407_v35  ;;  %v435_v63 = vmul.f32 1.442695, %v408_v50 }
  0x3e   : > { %v589_v45 = vadd.f32 %v453_v44, %v333_v24  ;;  %v462_v14 = vsel %vm999_vm1, %v459_v34, %v456_v21  ;;  %v474_v62 = vmul.f32 0.6931472, %v790_v56  ;;  %v792_v0 = vpop.eup %791  ;;  %v314_v34 = vld [vmem:[%s892_s27 + $0x68] sm:$0xff]  ;;  %vm357_vm0 = vcmp.ne.f32.partialorder %v966_v31, %v966_v31 }
  0x3f   : > { %v590_v36 = vadd.f32 %v462_v14, %v334_v25  ;;  %v471_v61 = vsel %vm1014_vm5, %v468_v41, %v465_v49  ;;  %803 = vpow2.f32 %v433_v26  ;;  %v276_v25 = vmul.f32 %v750_v3, %v885_v1 }
  0x40   : > { %v605_v24 = vsel %vm349_vm2, %v917_v29, %v589_v45  ;;  %v591_v19 = vadd.f32 %v471_v61, %v335_v27  ;;  %v480_v58 = vsel %vm1018_vm6, %v477_v46, %v474_v62  ;;  %v483_v29 = vmul.f32 0.6931472, %v792_v0  ;;  %v794_v8 = vpop.eup %793 }
  0x41   : > { %621 = vst [vmem:[%s1059_s6] sm:$0xff] %v605_v24  ;;  %v606_v41 = vsel %vm350_vm3, %v919_v30, %v590_v36  ;;  %805 = vpow2.f32 %v435_v63  ;;  %v592_v3 = vadd.f32 %v480_v58, %v336_v28  ;;  %v393_v30 = vand.u32 2147483647, %v1067_v60  ;;  %v796_v16 = vpop.eup %795 }
  0x42   : > { %622 = vst [vmem:[%s1059_s6 + $0x8] sm:$0xff] %v606_v41  ;;  %v607_v27 = vsel %vm351_vm4, %v922_v32, %v591_v19  ;;  %v489_v59 = vsel %vm1026_vm8, %v486_v2, %v483_v29  ;;  %v492_v46 = vmul.f32 0.6931472, %v794_v8  ;;  %v1103_v4 = vadd.f32 %v314_v34, %v298_v51 }
  0x43   : > { %623 = vst [vmem:[%s1059_s6 + $0x10] sm:$0xff] %v607_v27  ;;  %v608_v32 = vsel %vm352_vm7, %v924_v33, %v592_v3  ;;  %v593_v28 = vadd.f32 %v489_v59, %v337_v37  ;;  %v501_v18 = vmul.f32 0.6931472, %v796_v16  ;;  %v409_v12 = vsub.f32 0.0, %v393_v30  ;;  %v798_v17 = vpop.eup %797 }
  0x44   : > { %624 = vst [vmem:[%s1059_s6 + $0x18] sm:$0xff] %v608_v32  ;;  %v498_v23 = vsel %vm1032_vm9, %v1030_v7, %v492_v46  ;;  %v394_v6 = vand.u32 2147483647, %v1103_v4  ;;  %v299_v33 = vadd.f32 %v898_v5, %v276_v25  ;;  %v510_v11 = vmul.f32 0.6931472, %v798_v17  ;;  %v316_v25 = vld [vmem:[%s892_s27 + $0x78] sm:$0xff] }
  0x45   : > { %v609_v37 = vsel %vm353_vm10, %v937_v47, %v593_v28  ;;  %v594_v20 = vadd.f32 %v498_v23, %v338_v38  ;;  %v507_v7 = vsel %vm1041_vm11, %v504_v15, %v501_v18  ;;  %v800_v21 = vpop.eup %799  ;;  %v437_v44 = vmul.f32 1.442695, %v409_v12 }
  0x46   : > { %625 = vst [vmem:[%s1059_s6 + $0x20] sm:$0xff] %v609_v37  ;;  %v595_v22 = vadd.f32 %v507_v7, %v339_v39  ;;  %v410_v35 = vsub.f32 0.0, %v394_v6  ;;  %v802_v47 = vpop.eup %801  ;;  %v516_v10 = vsel %vm1115_vm14, %v513_v55, %v510_v11  ;;  %v517_v42 = vadd.f32 1.0, %v800_v21 }
  0x47   : > { %v610_v38 = vsel %vm354_vm12, %v939_v48, %v594_v20  ;;  %v596_v49 = vadd.f32 %v516_v10, %v340_v43  ;;  %v526_v50 = vadd.f32 1.0, %v802_v47  ;;  %v1148_v51 = vadd.f32 %v315_v13, %v299_v33 }
  0x48   : > { %626 = vst [vmem:[%s1059_s6 + $0x28] sm:$0xff] %v610_v38  ;;  %v611_v39 = vsel %vm355_vm13, %v942_v54, %v595_v22  ;;  %807 = vlog2.f32 %v517_v42  ;;  %v439_v56 = vmul.f32 1.442695, %v410_v35  ;;  %v520_v26 = vmul.f32 -0.5, %v800_v21 }
  0x49   : > { %627 = vst [vmem:[%s1059_s6 + $0x30] sm:$0xff] %v611_v39  ;;  %v612_v48 = vsel %vm356_vm15, %v945_v57, %v596_v49  ;;  %809 = vlog2.f32 %v526_v50  ;;  %v395_v14 = vand.u32 2147483647, %v1148_v51  ;;  %v529_v43 = vmul.f32 -0.5, %v802_v47 }
  0x4a   : > { %628 = vst [vmem:[%s1059_s6 + $0x38] sm:$0xff] %v612_v48  ;;  %811 = vpow2.f32 %v437_v44  ;;  %v751_v63 = vunpack.c.h.bf16 %v982_v53  ;;  %v521_v0 = vadd.f32 1.0, %v520_v26  ;;  %v523_v19 = vand.u32 2147483647, %v800_v21 }
  0x4b   : > { %813 = vpow2.f32 %v439_v56  ;;  %v411_v62 = vsub.f32 0.0, %v395_v14  ;;  %v530_v34 = vadd.f32 1.0, %v529_v43  ;;  %v532_v41 = vand.u32 2147483647, %v802_v47 }
  0x4c   : > { %v804_v45 = vpop.eup %803  ;;  %v277_v24 = vmul.f32 %v751_v63, %v885_v1  ;;  %v522_v27 = vmul.f32 %v800_v21, %v521_v0  ;;  %v341_v53 = vmax.f32 %v966_v31, 0.0  ;;  %vm1163_vm1 = vcmp.lt.f32.partialorder %v523_v19, 0.0004427343 }
  0x4d   : > { %v535_v36 = vadd.f32 1.0, %v804_v45  ;;  %v441_v57 = vmul.f32 1.442695, %v411_v62  ;;  %v538_v58 = vmul.f32 -0.5, %v804_v45  ;;  %v531_v30 = vmul.f32 %v802_v47, %v530_v34 }
  0x4e   : > { %v806_v54 = vpop.eup %805  ;;  %v300_v29 = vadd.f32 %v898_v5, %v277_v24  ;;  %v342_v46 = vmax.f32 %v972_v40, 0.0  ;;  %vm1168_vm2 = vcmp.lt.f32.partialorder %v532_v41, 0.0004427343  ;;  %vm358_vm3 = vcmp.ne.f32.partialorder %v972_v40, %v972_v40 }
  0x4f   : > { %v544_v61 = vadd.f32 1.0, %v806_v54  ;;  %815 = vlog2.f32 %v535_v36  ;;  %v547_v8 = vmul.f32 -0.5, %v806_v54  ;;  %v539_v55 = vadd.f32 1.0, %v538_v58 }
  0x50   : > { %v1158_v3 = vadd.f32 %v316_v25, %v300_v29  ;;  %v541_v18 = vand.u32 2147483647, %v804_v45  ;;  %v550_v2 = vand.u32 2147483647, %v806_v54  ;;  %v343_v7 = vmax.f32 %v979_v52, 0.0 }
  0x51   : > { %817 = vlog2.f32 %v544_v61  ;;  %v548_v12 = vadd.f32 1.0, %v547_v8  ;;  %v540_v21 = vmul.f32 %v804_v45, %v539_v55  ;;  %v344_v22 = vmax.f32 %v991_v9, 0.0 }
  0x52   : > { %819 = vpow2.f32 %v441_v57  ;;  %v396_v33 = vand.u32 2147483647, %v1158_v3  ;;  %vm1185_vm4 = vcmp.lt.f32.partialorder %v541_v18, 0.0004427343  ;;  %vm551_vm5 = vcmp.lt.f32.partialorder %v550_v2, 0.0004427343 }
  0x53   : > { %v549_v10 = vmul.f32 %v806_v54, %v548_v12  ;;  %vm359_vm6 = vcmp.ne.f32.partialorder %v979_v52, %v979_v52  ;;  %vm360_vm7 = vcmp.ne.f32.partialorder %v991_v9, %v991_v9  ;;  %v345_v25 = vmax.f32 %v1067_v60, 0.0 }
  0x54   : > { %v412_v49 = vsub.f32 0.0, %v396_v33  ;;  %vm361_vm10 = vcmp.ne.f32.partialorder %v1067_v60, %v1067_v60  ;;  %vm362_vm11 = vcmp.ne.f32.partialorder %v1103_v4, %v1103_v4  ;;  %vm363_vm13 = vcmp.ne.f32.partialorder %v1148_v51, %v1148_v51 }
  0x55   : > { %v808_v15 = vpop.eup %807  ;;  %vm364_vm15 = vcmp.ne.f32.partialorder %v1158_v3, %v1158_v3 }
  0x56   : > { %v810_v16 = vpop.eup %809  ;;  %v519_v59 = vmul.f32 0.6931472, %v808_v15  ;;  %v443_v45 = vmul.f32 1.442695, %v412_v49 }
  0x57   : > { %v812_v32 = vpop.eup %811  ;;  %v528_v28 = vmul.f32 0.6931472, %v810_v16 }
  0x58   : > { %v814_v17 = vpop.eup %813  ;;  %v525_v23 = vsel %vm1163_vm1, %v522_v27, %v519_v59  ;;  %v553_v6 = vadd.f32 1.0, %v812_v32  ;;  %v556_v56 = vmul.f32 -0.5, %v812_v32  ;;  %v559_v63 = vand.u32 2147483647, %v812_v32 }
  0x59   : > { %v597_v37 = vadd.f32 %v525_v23, %v341_v53  ;;  %v534_v20 = vsel %vm1168_vm2, %v531_v30, %v528_v28  ;;  %v562_v11 = vadd.f32 1.0, %v814_v17  ;;  %v565_v54 = vmul.f32 -0.5, %v814_v17 }
  0x5a   : > { %v598_v13 = vadd.f32 %v534_v20, %v342_v46  ;;  %821 = vlog2.f32 %v553_v6  ;;  %v557_v62 = vadd.f32 1.0, %v556_v56  ;;  %v568_v0 = vand.u32 2147483647, %v814_v17 }
  0x5b   : > { %v613_v47 = vsel %vm357_vm0, %v966_v31, %v597_v37  ;;  %823 = vlog2.f32 %v562_v11  ;;  %v566_v57 = vadd.f32 1.0, %v565_v54  ;;  %vm560_vm8 = vcmp.lt.f32.partialorder %v559_v63, 0.0004427343 }
  0x5c   : > { %v816_v35 = vpop.eup %815  ;;  %629 = vst [vmem:[%s1059_s6 + $0x40] sm:$0xff] %v613_v47  ;;  %v614_v44 = vsel %vm358_vm3, %v972_v40, %v598_v13  ;;  %825 = vpow2.f32 %v443_v45  ;;  %v558_v19 = vmul.f32 %v812_v32, %v557_v62  ;;  %vm569_vm9 = vcmp.lt.f32.partialorder %v568_v0, 0.0004427343 }
  0x5d   : > { %v537_v39 = vmul.f32 0.6931472, %v816_v35  ;;  %630 = vst [vmem:[%s1059_s6 + $0x48] sm:$0xff] %v614_v44  ;;  %v567_v41 = vmul.f32 %v814_v17, %v566_v57  ;;  %v347_v32 = vmax.f32 %v1148_v51, 0.0  ;;  %v348_v37 = vmax.f32 %v1158_v3, 0.0 }
  0x5e   : > { %v818_v42 = vpop.eup %817 }
  0x5f   : > { %v546_v31 = vmul.f32 0.6931472, %v818_v42  ;;  %v820_v50 = vpop.eup %819  ;;  %v543_v48 = vsel %vm1185_vm4, %v540_v21, %v537_v39 }
  0x60   : > { %v599_v40 = vadd.f32 %v543_v48, %v343_v7  ;;  %v571_v26 = vadd.f32 1.0, %v820_v50  ;;  %v574_v24 = vmul.f32 -0.5, %v820_v50  ;;  %v577_v15 = vand.u32 2147483647, %v820_v50 }
  0x61   : > { %v552_v14 = vsel %vm551_vm5, %v549_v10, %v546_v31 }
  0x62   : > { %v600_v36 = vadd.f32 %v552_v14, %v344_v22  ;;  %v615_v43 = vsel %vm359_vm6, %v979_v52, %v599_v40  ;;  %827 = vlog2.f32 %v571_v26  ;;  %v346_v52 = vmax.f32 %v1103_v4, 0.0 }
  0x63   : > { %631 = vst [vmem:[%s1059_s6 + $0x50] sm:$0xff] %v615_v43  ;;  %vm578_vm12 = vcmp.lt.f32.partialorder %v577_v15, 0.0004427343 }
  0x64   : > { %v616_v61 = vsel %vm360_vm7, %v991_v9, %v600_v36  ;;  %v575_v9 = vadd.f32 1.0, %v574_v24 }
  0x65   : > { %632 = vst [vmem:[%s1059_s6 + $0x58] sm:$0xff] %v616_v61 }
  0x66   : > { %v576_v46 = vmul.f32 %v820_v50, %v575_v9 }
  0x67   : > { %v822_v34 = vpop.eup %821 }
  0x68   : > { %v824_v58 = vpop.eup %823  ;;  %v555_v29 = vmul.f32 0.6931472, %v822_v34 }
  0x69   : > { %v564_v8 = vmul.f32 0.6931472, %v824_v58  ;;  %v826_v16 = vpop.eup %825 }
  0x6a   : > { %v561_v27 = vsel %vm560_vm8, %v558_v19, %v555_v29  ;;  %v580_v28 = vadd.f32 1.0, %v826_v16  ;;  %v583_v23 = vmul.f32 -0.5, %v826_v16  ;;  %v586_v6 = vand.u32 2147483647, %v826_v16 }
  0x6b   : > { %v601_v53 = vadd.f32 %v561_v27, %v345_v25  ;;  %v570_v1 = vsel %vm569_vm9, %v567_v41, %v564_v8 }
  0x6c   : > { %v602_v30 = vadd.f32 %v570_v1, %v346_v52  ;;  %829 = vlog2.f32 %v580_v28  ;;  %v584_v2 = vadd.f32 1.0, %v583_v23  ;;  %vm587_vm14 = vcmp.lt.f32.partialorder %v586_v6, 0.0004427343 }
  0x6d   : > { %v617_v59 = vsel %vm361_vm10, %v1067_v60, %v601_v53 }
  0x6e   : > { %633 = vst [vmem:[%s1059_s6 + $0x60] sm:$0xff] %v617_v59  ;;  %v618_v55 = vsel %vm362_vm11, %v1103_v4, %v602_v30  ;;  %v585_v4 = vmul.f32 %v826_v16, %v584_v2 }
  0x6f   : > { %v828_v5 = vpop.eup %827  ;;  %634 = vst [vmem:[%s1059_s6 + $0x68] sm:$0xff] %v618_v55 }
  0x70   : > { %v573_v18 = vmul.f32 0.6931472, %v828_v5 }
  0x72   : > { %v579_v12 = vsel %vm578_vm12, %v576_v46, %v573_v18 }
  0x73   : > { %v603_v17 = vadd.f32 %v579_v12, %v347_v32 }
  0x75   : > { %v619_v60 = vsel %vm363_vm13, %v1148_v51, %v603_v17 }
  0x76   : > { %635 = vst [vmem:[%s1059_s6 + $0x70] sm:$0xff] %v619_v60 }
  0x79   : > { %v830_v33 = vpop.eup %829 }
  0x7a   : > { %v582_v20 = vmul.f32 0.6931472, %v830_v33 }
  0x7c   : > { %v588_v7 = vsel %vm587_vm14, %v585_v4, %v582_v20 }
  0x7d   : > { %v604_v11 = vadd.f32 %v588_v7, %v348_v37 }
  0x7f   : > { %v620_v13 = vsel %vm364_vm15, %v1158_v3, %v604_v11 }
  0x80   : > { %636 = vst [vmem:[%s1059_s6 + $0x78] sm:$0xff] %v620_v13 }
  0x81 PF: > { %s14_s15 = sadd.s32 1, %s837_s15  }
  0x82   : > { %p11_p4 = scmp.ge.s32.totalorder %s14_s15, 4  }
  0x84   :  { %13 = sbr.rel (!%p11_p4) target bundleno = 1 (0x1), region = 69 }

// kernel: poswise_ffn_forward.6
= control target key start
LH: loop header
LB: loop body
LE: loop exit
PB: predicated region body
PF: predicated region fallthrough
CT: control target
= control target key end

     0   :  { %s1773_s24 = smov 0   ;;  %s1775_s25 = smov 0   ;;  %s2282_s0 = inlined_call_operand.vmem [shape: f32[256,128], index: 0, kind: input, shape index: {}]   ;;  %s2283_s1 = inlined_call_operand.vmem [shape: bf16[128,256], index: 1, kind: input, shape index: {}]   ;;  %s2284_s2 = inlined_call_operand.vmem [shape: f32[1,256], index: 2, kind: input, shape index: {}]   ;;  %s2285_s3 = inlined_call_operand.vmem [shape: bf16[256,128], index: 3, kind: input, shape index: {}]   ;;  %s2286_s4 = inlined_call_operand.vmem [shape: f32[1,128], index: 4, kind: input, shape index: {}]   ;;  %s2287_s5 = inlined_call_operand.vmem [shape: bf16[256,128], index: 5, kind: output, shape index: {0}]   ;;  %s2288_s6 = inlined_call_operand.vmem [shape: f32[2,1,128], index: 6, kind: output, shape index: {1}]   ;;  %s2289_s7 = inlined_call_operand.vmem [shape: f32[2,1,128], index: 7, kind: output, shape index: {2}]  }
   0x1   :  { %s1777_s26 = smov 0  }
   0x2 LB: > { %s30_s27 = sadd.s32 1, %s1725_s25  ;;  %p1391_p0 = scmp.ge.s32.totalorder %s1729_s26, 1  ;;  %s1729_s26 = sphi %s1777_s26, %s18_s26   ;;  %s1725_s25 = sphi %s1775_s25, %s2291_s25   ;;  %s1721_s24 = sphi %s1773_s24, %s2290_s24  }
   0x3   : > { %p32_p1 = scmp.ge.s32.totalorder %s30_s27, 2  ;;  %p261_p2 = scmp.lt.s32.totalorder %s1729_s26, 3 }
   0x5   : > { %s2293_s27 = smov (%p32_p1, %s30_s27), 0  ;;  %p262_p3 = pnand %p1391_p0, %p261_p2 }
   0x6   : > { %p317_p4 = scmp.lt.s32.totalorder (!%p262_p3), %s1721_s24, 1  ;;  %s1392_s22 = sshll.u32 (!%p262_p3), %s1721_s24, 4 }
   0x7   : > { %265 = sbr.rel (%p262_p3) target bundleno = 639 (0x27f), region = 40  ;;  %p303_p5 = scmp.lt.s32.totalorder (!%p262_p3), %s1392_s22, 31 }
   0xc   : > { %v1603_v0 = vld [vmem:[%s2283_s1 + $0x74] ss:$8 sps:$4 sm:$0xff]   ;;  %v1605_v1 = vld [vmem:[%s2283_s1 + $0x70] ss:$8 sps:$4 sm:$0xff]   ;;  %s318_s9 = scalar_select %p317_p4, %s1721_s24, 1  ;;  %v1731_v3 = vmov 0   ;;  %v372_v58 = vlaneseq }
   0xd   : > { %462 = vmatprep.subr.bf16.mxu0 %v1603_v0  ;;  %v1606_v2 = vld [vmem:[%s2283_s1 + $0x64] ss:$8 sps:$4 sm:$0xff]   ;;  %494 = vmatprep.mubr.bf16.mxu0 %v1731_v3  ;;  %v1608_v4 = vld [vmem:[%s2283_s1 + $0x60] ss:$8 sps:$4 sm:$0xff]   ;;  %v1609_v5 = vld [vmem:[%s2283_s1 + $0x54] ss:$8 sps:$4 sm:$0xff]  }
   0xe   : > { %463 = vmatpush1.bf16.msra.mxu0 %v1605_v1  ;;  %s1811_s16 = scalar_lea.vmem %s2288_s6, %s318_s9  ;;  %s1816_s19 = scalar_lea.vmem %s2289_s7, %s318_s9  ;;  %v1732_v6 = vmov 0.0   ;;  %v1611_v7 = vld [vmem:[%s2283_s1 + $0x50] ss:$8 sps:$4 sm:$0xff]   ;;  %v1612_v8 = vld [vmem:[%s2283_s1 + $0x44] ss:$8 sps:$4 sm:$0xff]   ;;  %v1936_v59 = vshrl.u32 %v372_v58, 7 }
   0xf   : > { %464 = vmatprep.subr.bf16.mxu0 %v1606_v2  ;;  %328 = vst [vmem:[%s1811_s16] sm:$0x1] %v1732_v6  ;;  %329 = vst [vmem:[%s1816_s19] sm:$0x1] %v1732_v6  ;;  %v1614_v9 = vld [vmem:[%s2283_s1 + $0x40] ss:$8 sps:$4 sm:$0xff]   ;;  %v1615_v10 = vld [vmem:[%s2283_s1 + $0x34] ss:$8 sps:$4 sm:$0xff]  }
  0x10   : > { %s2295_s22 = smov (!%p303_p5, %s1392_s22), 31  ;;  %v1617_v11 = vld [vmem:[%s2283_s1 + $0x30] ss:$8 sps:$4 sm:$0xff]   ;;  %v1618_v12 = vld [vmem:[%s2283_s1 + $0x24] ss:$8 sps:$4 sm:$0xff]   ;;  %v374_v60 = vsub.s32 0, %v1936_v59 }
  0x11   : > { %s1393_s17 = sshll.u32 %s2295_s22, 3  ;;  %v1620_v13 = vld [vmem:[%s2283_s1 + $0x20] ss:$8 sps:$4 sm:$0xff]   ;;  %v1621_v14 = vld [vmem:[%s2283_s1 + $0x14] ss:$8 sps:$4 sm:$0xff]   ;;  %v378_v62 = vsub.s32 1, %v1936_v59 }
  0x12   : > { %465 = vmatpush1.bf16.msra.mxu0 %v1608_v4  ;;  %v1623_v15 = vld [vmem:[%s2283_s1 + $0x10] ss:$8 sps:$4 sm:$0xff]   ;;  %v1624_v16 = vld [vmem:[%s2283_s1 + $0x4] ss:$8 sps:$4 sm:$0xff]   ;;  %s1860_s11 = scalar_lea.vmem %s2282_s0, %s1393_s17  ;;  %v1626_v17 = vld [vmem:[%s2283_s1] ss:$8 sps:$4 sm:$0xff]  }
  0x13   : > { %466 = vmatprep.subr.bf16.mxu0 %v1609_v5  ;;  %v330_v18 = vld [vmem:[%s1860_s11] sm:$0xff]  ;;  %v331_v19 = vld [vmem:[%s1860_s11 + $0x8] sm:$0xff]  ;;  %v332_v21 = vld [vmem:[%s1860_s11 + $0x10] sm:$0xff]  ;;  %s1445_s17 = sshll.u32 %s1721_s24, 7  ;;  %s1395_s23 = sshll.u32 %s2295_s22, 2 }
  0x14   : > { %v346_v20 = vpack.c.bf16 %v331_v19, %v330_v18  ;;  %v333_v22 = vld [vmem:[%s1860_s11 + $0x18] sm:$0xff]  ;;  %v334_v24 = vld [vmem:[%s1860_s11 + $0x20] sm:$0xff]  ;;  %v335_v25 = vld [vmem:[%s1860_s11 + $0x28] sm:$0xff]  ;;  %s2078_s18 = sadd.s32 128, %s1445_s17  ;;  %s2095_s30 = scalar_lea.vmem %s2287_s5, %s1395_s23 }
  0x15   : > { %v347_v23 = vpack.c.bf16 %v333_v22, %v332_v21  ;;  %v348_v26 = vpack.c.bf16 %v335_v25, %v334_v24  ;;  %v336_v27 = vld [vmem:[%s1860_s11 + $0x30] sm:$0xff]  ;;  %v337_v28 = vld [vmem:[%s1860_s11 + $0x38] sm:$0xff]  ;;  %v338_v30 = vld [vmem:[%s1860_s11 + $0x40] sm:$0xff]  ;;  %p1446_p6 = scmp.gt.s32.totalorder %s2078_s18, 256 }
  0x16   : > { %467 = vmatpush1.bf16.msra.mxu0 %v1611_v7  ;;  %v349_v29 = vpack.c.bf16 %v337_v28, %v336_v27  ;;  %v339_v31 = vld [vmem:[%s1860_s11 + $0x48] sm:$0xff]  ;;  %v340_v33 = vld [vmem:[%s1860_s11 + $0x50] sm:$0xff]  ;;  %v341_v34 = vld [vmem:[%s1860_s11 + $0x58] sm:$0xff] }
  0x17   : > { %468 = vmatprep.subr.bf16.mxu0 %v1612_v8  ;;  %v350_v32 = vpack.c.bf16 %v339_v31, %v338_v30  ;;  %v351_v35 = vpack.c.bf16 %v341_v34, %v340_v33  ;;  %v342_v36 = vld [vmem:[%s1860_s11 + $0x60] sm:$0xff]  ;;  %v343_v37 = vld [vmem:[%s1860_s11 + $0x68] sm:$0xff]  ;;  %v344_v39 = vld [vmem:[%s1860_s11 + $0x70] sm:$0xff] }
  0x18   : > { %v352_v38 = vpack.c.bf16 %v343_v37, %v342_v36  ;;  %v345_v40 = vld [vmem:[%s1860_s11 + $0x78] sm:$0xff]  ;;  %v1629_v44 = vld [vmem:[%s2285_s3 + $0x70] sm:$0xff]   ;;  %v1631_v46 = vld [vmem:[%s2285_s3 + $0x68] sm:$0xff]  }
  0x19   : > { %v353_v41 = vpack.c.bf16 %v345_v40, %v344_v39  ;;  %v1627_v42 = vld [vmem:[%s2285_s3 + $0x78] sm:$0xff]   ;;  %v1630_v45 = vld [vmem:[%s2285_s3 + $0x30] sm:$0xff]   ;;  %v1632_v47 = vld [vmem:[%s2285_s3 + $0x28] sm:$0xff]  }
  0x1a   : > { %469 = vmatpush1.bf16.msra.mxu0 %v1614_v9  ;;  %v1628_v43 = vld [vmem:[%s2285_s3 + $0x38] sm:$0xff]   ;;  %1513 = vmatprep.subr.bf16.mxu1 %v1627_v42  ;;  %v1633_v48 = vld [vmem:[%s2285_s3 + $0x60] sm:$0xff]   ;;  %v1637_v52 = vld [vmem:[%s2285_s3 + $0x50] sm:$0xff]  }
  0x1b   : > { %470 = vmatprep.subr.bf16.mxu0 %v1615_v10  ;;  %1514 = vmatpush3.bf16.msra.mxu1 %v1628_v43  ;;  %v1634_v49 = vld [vmem:[%s2285_s3 + $0x20] sm:$0xff]   ;;  %v1635_v50 = vld [vmem:[%s2285_s3 + $0x58] sm:$0xff]   ;;  %v1638_v53 = vld [vmem:[%s2285_s3 + $0x10] sm:$0xff]  }
  0x1c   : > { %1515 = vmatprep.subr.bf16.mxu1 %v1629_v44  ;;  %v1636_v51 = vld [vmem:[%s2285_s3 + $0x18] sm:$0xff]   ;;  %v1639_v54 = vld [vmem:[%s2285_s3 + $0x48] sm:$0xff]   ;;  %v1641_v56 = vld [vmem:[%s2285_s3 + $0x40] sm:$0xff]  }
  0x1d   : > { %v1640_v55 = vld [vmem:[%s2285_s3 + $0x8] sm:$0xff]   ;;  %v1642_v57 = vld [vmem:[%s2285_s3] sm:$0xff]  }
  0x1e   : > { %471 = vmatpush1.bf16.msra.mxu0 %v1617_v11  ;;  %v370_v61 = vld [vmem:[%s2284_s2] sm:$0x3] }
  0x1f   : > { %472 = vmatprep.subr.bf16.mxu0 %v1618_v12  ;;  %1516 = vmatpush3.bf16.msra.mxu1 %v1630_v45  ;;  %v1943_v63 = vrot.slane %v370_v61, %v374_v60  ;;  %v1945_v0 = vrot.slane %v370_v61, %v378_v62 }
  0x20   : > { %1517 = vmatprep.subr.bf16.mxu1 %v1631_v46 }
  0x22   : > { %473 = vmatpush1.bf16.msra.mxu0 %v1620_v13 }
  0x23   : > { %474 = vmatprep.subr.bf16.mxu0 %v1621_v14  ;;  %1518 = vmatpush3.bf16.msra.mxu1 %v1632_v47 }
  0x24   : > { %1519 = vmatprep.subr.bf16.mxu1 %v1633_v48 }
  0x26   : > { %475 = vmatpush1.bf16.msra.mxu0 %v1623_v15 }
  0x27   : > { %476 = vmatprep.subr.bf16.mxu0 %v1624_v16  ;;  %1520 = vmatpush3.bf16.msra.mxu1 %v1634_v49 }
  0x28   : > { %1521 = vmatprep.subr.bf16.mxu1 %v1635_v50 }
  0x2a   : > { %477 = vmatpush1.bf16.msra.mxu0 %v1626_v17 }
  0x2b   : > { %1522 = vmatpush3.bf16.msra.mxu1 %v1636_v51 }
  0x2c   : > { %1523 = vmatprep.subr.bf16.mxu1 %v1637_v52 }
  0x2d   : > { %495 = vmatmul.mubr.bf16.vlgmr.msra.gmra.mxu0 %v346_v20 }
  0x2e   : > { %504 = vmatprep.mubr.bf16.mxu0 %v1731_v3 }
  0x2f   : > { %1524 = vmatpush3.bf16.msra.mxu1 %v1638_v53 }
  0x30   : > { %1525 = vmatprep.subr.bf16.mxu1 %v1639_v54 }
  0x33   : > { %1526 = vmatpush3.bf16.msra.mxu1 %v1640_v55 }
  0x34   : > { %1527 = vmatprep.subr.bf16.mxu1 %v1641_v56 }
  0x35   : > { %505 = vmatmul.mubr.bf16.gmra.mxu0 %v347_v23 }
  0x36   : > { %514 = vmatprep.mubr.bf16.mxu0 %v1731_v3 }
  0x37   : > { %1528 = vmatpush3.bf16.msra.mxu1 %v1642_v57 }
  0x3d   : > { %515 = vmatmul.mubr.bf16.gmra.mxu0 %v348_v26 }
  0x3e   : > { %524 = vmatprep.mubr.bf16.mxu0 %v1731_v3 }
  0x45   : > { %525 = vmatmul.mubr.bf16.gmra.mxu0 %v349_v29 }
  0x46   : > { %534 = vmatprep.mubr.bf16.mxu0 %v1731_v3 }
  0x4d   : > { %535 = vmatmul.mubr.bf16.gmra.mxu0 %v350_v32 }
  0x4e   : > { %544 = vmatprep.mubr.bf16.mxu0 %v1731_v3 }
  0x55   : > { %545 = vmatmul.mubr.bf16.gmra.mxu0 %v351_v35 }
  0x56   : > { %554 = vmatprep.mubr.bf16.mxu0 %v1731_v3 }
  0x5d   : > { %555 = vmatmul.mubr.bf16.gmra.mxu0 %v352_v38 }
  0x5e   : > { %564 = vmatprep.mubr.bf16.mxu0 %v1731_v3 }
  0x65   : > { %565 = vmatmul.mubr.bf16.gmra.mxu0 %v353_v41 }
  0xed   : > { %v496_v1 = vpop.f32.mrf.mxu0 }
  0xee   : > { %v497_v2 = vadd.f32 %v496_v1, %v1943_v63 }
  0xef   : > { %v498_v3 = vpop.f32.mrf.mxu0 }
  0xf0   : > { %v608_v4 = vmul.f32 0.70710677, %v497_v2  ;;  %v499_v5 = vadd.f32 %v498_v3, %v1945_v0  ;;  %v575_v51 = vmul.f32 0.5, %v497_v2 }
  0xf1   : > { %v500_v6 = vpop.f32.mrf.mxu0 }
  0xf2   : > { %v609_v7 = vmul.f32 0.70710677, %v499_v5  ;;  %v501_v8 = vadd.f32 %v500_v6, %v1943_v63  ;;  %1643 = verf.f32 %v608_v4  ;;  %v576_v46 = vmul.f32 0.5, %v499_v5 }
  0xf3   : > { %v502_v9 = vpop.f32.mrf.mxu0 }
  0xf4   : > { %v610_v10 = vmul.f32 0.70710677, %v501_v8  ;;  %v503_v11 = vadd.f32 %v502_v9, %v1945_v0  ;;  %1645 = verf.f32 %v609_v7  ;;  %v577_v44 = vmul.f32 0.5, %v501_v8 }
  0xf5   : > { %v506_v12 = vpop.f32.mrf.mxu0 }
  0xf6   : > { %1647 = verf.f32 %v610_v10  ;;  %v611_v13 = vmul.f32 0.70710677, %v503_v11  ;;  %v1952_v14 = vadd.f32 %v506_v12, %v1943_v63  ;;  %v578_v47 = vmul.f32 0.5, %v503_v11 }
  0xf7   : > { %v508_v15 = vpop.f32.mrf.mxu0 }
  0xf8   : > { %1649 = verf.f32 %v611_v13  ;;  %v612_v16 = vmul.f32 0.70710677, %v1952_v14  ;;  %v1956_v17 = vadd.f32 %v508_v15, %v1945_v0 }
  0xf9   : > { %v510_v18 = vpop.f32.mrf.mxu0 }
  0xfa   : > { %v613_v19 = vmul.f32 0.70710677, %v1956_v17  ;;  %v511_v20 = vadd.f32 %v510_v18, %v1943_v63  ;;  %1651 = verf.f32 %v612_v16 }
  0xfb   : > { %v512_v21 = vpop.f32.mrf.mxu0 }
  0xfc   : > { %v614_v22 = vmul.f32 0.70710677, %v511_v20  ;;  %v513_v23 = vadd.f32 %v512_v21, %v1945_v0  ;;  %1653 = verf.f32 %v613_v19  ;;  %v581_v10 = vmul.f32 0.5, %v511_v20 }
  0xfd   : > { %v516_v24 = vpop.f32.mrf.mxu0  ;;  %v579_v19 = vmul.f32 0.5, %v1952_v14  ;;  %v580_v21 = vmul.f32 0.5, %v1956_v17 }
  0xfe   : > { %1655 = verf.f32 %v614_v22  ;;  %v615_v25 = vmul.f32 0.70710677, %v513_v23  ;;  %v1962_v26 = vadd.f32 %v516_v24, %v1943_v63  ;;  %v582_v15 = vmul.f32 0.5, %v513_v23 }
  0xff   : > { %v518_v27 = vpop.f32.mrf.mxu0  ;;  %v1644_v29 = vpop.eup %1643 }
 0x100   : > { %1657 = verf.f32 %v615_v25  ;;  %v616_v28 = vmul.f32 0.70710677, %v1962_v26  ;;  %v1966_v30 = vadd.f32 %v518_v27, %v1945_v0  ;;  %v672_v43 = vadd.f32 1.0, %v1644_v29 }
 0x101   : > { %v520_v31 = vpop.f32.mrf.mxu0  ;;  %v1646_v32 = vpop.eup %1645 }
 0x102   : > { %v1969_v33 = vadd.f32 %v520_v31, %v1943_v63  ;;  %v617_v35 = vmul.f32 0.70710677, %v1966_v30  ;;  %1659 = verf.f32 %v616_v28  ;;  %v673_v42 = vadd.f32 1.0, %v1646_v32 }
 0x103   : > { %v1648_v34 = vpop.eup %1647  ;;  %v522_v36 = vpop.f32.mrf.mxu0  ;;  %v704_v61 = vmul.f32 %v672_v43, %v575_v51  ;;  %v584_v51 = vmul.f32 0.5, %v1966_v30 }
 0x104   : > { %v674_v37 = vadd.f32 1.0, %v1648_v34  ;;  %v618_v38 = vmul.f32 0.70710677, %v1969_v33  ;;  %v1974_v39 = vadd.f32 %v522_v36, %v1945_v0  ;;  %1661 = verf.f32 %v617_v35 }
 0x105   : > { %v1650_v40 = vpop.eup %1649  ;;  %v526_v41 = vpop.f32.mrf.mxu0  ;;  %v705_v57 = vmul.f32 %v673_v42, %v576_v46  ;;  %v585_v36 = vmul.f32 0.5, %v1969_v33 }
 0x106   : > { %1663 = verf.f32 %v618_v38  ;;  %v619_v45 = vmul.f32 0.70710677, %v1974_v39  ;;  %v1978_v48 = vadd.f32 %v526_v41, %v1943_v63  ;;  %v675_v50 = vadd.f32 1.0, %v1650_v40 }
 0x107   : > { %v528_v49 = vpop.f32.mrf.mxu0  ;;  %v706_v52 = vmul.f32 %v674_v37, %v577_v44  ;;  %v1652_v54 = vpop.eup %1651 }
 0x108   : > { %1665 = verf.f32 %v619_v45  ;;  %v1981_v53 = vadd.f32 %v528_v49, %v1945_v0  ;;  %v620_v55 = vmul.f32 0.70710677, %v1978_v48  ;;  %v707_v58 = vmul.f32 %v675_v50, %v578_v47 }
 0x109   : > { %v530_v56 = vpop.f32.mrf.mxu0  ;;  %v1654_v60 = vpop.eup %1653  ;;  %v736_v7 = vpack.c.bf16 %v706_v52, %v704_v61  ;;  %v676_v13 = vadd.f32 1.0, %v1652_v54  ;;  %v586_v45 = vmul.f32 0.5, %v1974_v39  ;;  %v583_v39 = vmul.f32 0.5, %v1962_v26 }
 0x10a   : > { %v621_v62 = vmul.f32 0.70710677, %v1981_v53  ;;  %v1986_v3 = vadd.f32 %v530_v56, %v1943_v63  ;;  %v737_v4 = vpack.c.bf16 %v707_v58, %v705_v57  ;;  %v677_v9 = vadd.f32 1.0, %v1654_v60 }
 0x10b   : > { %v1656_v1 = vpop.eup %1655  ;;  %v532_v2 = vpop.f32.mrf.mxu0  ;;  %v708_v14 = vmul.f32 %v676_v13, %v579_v19 }
 0x10c   : > { %v678_v5 = vadd.f32 1.0, %v1656_v1  ;;  %1667 = verf.f32 %v621_v62  ;;  %v1989_v6 = vadd.f32 %v532_v2, %v1945_v0  ;;  %v622_v11 = vmul.f32 0.70710677, %v1986_v3  ;;  %919 = vmatprep.mubr.bf16.mxu1 %v737_v4 }
 0x10d   : > { %v1658_v8 = vpop.eup %1657  ;;  %1669 = verf.f32 %v620_v55  ;;  %v536_v12 = vpop.f32.mrf.mxu0  ;;  %920 = vmatmul.mubr.bf16.vlgmr.msra.gmra.mxu1 %v736_v7  ;;  %v709_v28 = vmul.f32 %v677_v9, %v580_v21  ;;  %v588_v4 = vmul.f32 0.5, %v1981_v53 }
 0x10e   : > { %v679_v16 = vadd.f32 1.0, %v1658_v8  ;;  %v623_v18 = vmul.f32 0.70710677, %v1989_v6  ;;  %1671 = verf.f32 %v622_v11  ;;  %v1996_v22 = vadd.f32 %v536_v12, %v1943_v63 }
 0x10f   : > { %v538_v20 = vpop.f32.mrf.mxu0  ;;  %v710_v24 = vmul.f32 %v678_v5, %v581_v10  ;;  %v1660_v23 = vpop.eup %1659  ;;  %v589_v10 = vmul.f32 0.5, %v1986_v3 }
 0x110   : > { %v711_v25 = vmul.f32 %v679_v16, %v582_v15  ;;  %1673 = verf.f32 %v623_v18  ;;  %v1999_v27 = vadd.f32 %v538_v20, %v1945_v0  ;;  %v624_v29 = vmul.f32 0.70710677, %v1996_v22 }
 0x111   : > { %v540_v31 = vpop.f32.mrf.mxu0  ;;  %v1662_v32 = vpop.eup %1661  ;;  %v738_v42 = vpack.c.bf16 %v710_v24, %v708_v14  ;;  %v680_v49 = vadd.f32 1.0, %v1660_v23  ;;  %v590_v18 = vmul.f32 0.5, %v1989_v6  ;;  %v587_v24 = vmul.f32 0.5, %v1978_v48 }
 0x112   : > { %v625_v17 = vmul.f32 0.70710677, %v1999_v27  ;;  %v2004_v34 = vadd.f32 %v540_v31, %v1943_v63  ;;  %v739_v38 = vpack.c.bf16 %v711_v25, %v709_v28  ;;  %1675 = verf.f32 %v624_v29 }
 0x113   : > { %v1664_v35 = vpop.eup %1663  ;;  %v542_v37 = vpop.f32.mrf.mxu0  ;;  %v681_v44 = vadd.f32 1.0, %v1662_v32  ;;  %v712_v1 = vmul.f32 %v680_v49, %v583_v39 }
 0x114   : > { %v682_v40 = vadd.f32 1.0, %v1664_v35  ;;  %v626_v41 = vmul.f32 0.70710677, %v2004_v34  ;;  %1677 = verf.f32 %v625_v17  ;;  %v2010_v46 = vadd.f32 %v542_v37, %v1945_v0  ;;  %927 = vmatprep.mubr.bf16.mxu1 %v739_v38 }
 0x115   : > { %v1666_v43 = vpop.eup %1665  ;;  %v546_v47 = vpop.f32.mrf.mxu0  ;;  %928 = vmatmul.mubr.bf16.gmra.mxu1 %v738_v42  ;;  %v713_v60 = vmul.f32 %v681_v44, %v584_v51  ;;  %v593_v51 = vmul.f32 0.5, %v2004_v34 }
 0x116   : > { %v683_v50 = vadd.f32 1.0, %v1666_v43  ;;  %1679 = verf.f32 %v626_v41  ;;  %v2013_v33 = vadd.f32 %v546_v47, %v1943_v63  ;;  %v627_v52 = vmul.f32 0.70710677, %v2010_v46 }
 0x117   : > { %v548_v54 = vpop.f32.mrf.mxu0  ;;  %v714_v55 = vmul.f32 %v682_v40, %v585_v36  ;;  %v594_v39 = vmul.f32 0.5, %v2010_v46 }
 0x118   : > { %v715_v56 = vmul.f32 %v683_v50, %v586_v45  ;;  %v2019_v57 = vadd.f32 %v548_v54, %v1945_v0  ;;  %1681 = verf.f32 %v627_v52  ;;  %v628_v2 = vmul.f32 0.70710677, %v2013_v33 }
 0x119   : > { %v1668_v58 = vpop.eup %1667  ;;  %v550_v61 = vpop.f32.mrf.mxu0  ;;  %v740_v12 = vpack.c.bf16 %v714_v55, %v712_v1  ;;  %v592_v54 = vmul.f32 0.5, %v1999_v27 }
 0x11a   : > { %v1670_v62 = vpop.eup %1669  ;;  %v629_v30 = vmul.f32 0.70710677, %v2019_v57  ;;  %v685_v5 = vadd.f32 1.0, %v1668_v58  ;;  %v2025_v26 = vadd.f32 %v550_v61, %v1943_v63  ;;  %v741_v8 = vpack.c.bf16 %v715_v56, %v713_v60 }
 0x11b   : > { %v552_v7 = vpop.f32.mrf.mxu0  ;;  %v1672_v9 = vpop.eup %1671  ;;  %v684_v15 = vadd.f32 1.0, %v1670_v62  ;;  %v591_v60 = vmul.f32 0.5, %v1996_v22  ;;  %v596_v46 = vmul.f32 0.5, %v2019_v57 }
 0x11c   : > { %1683 = verf.f32 %v629_v30  ;;  %v2029_v11 = vadd.f32 %v552_v7, %v1945_v0  ;;  %v686_v16 = vadd.f32 1.0, %v1672_v9  ;;  %v630_v53 = vmul.f32 0.70710677, %v2025_v26  ;;  %935 = vmatprep.mubr.bf16.mxu1 %v741_v8 }
 0x11d   : > { %v1674_v13 = vpop.eup %1673  ;;  %v556_v19 = vpop.f32.mrf.mxu0  ;;  %1685 = verf.f32 %v628_v2  ;;  %936 = vmatmul.mubr.bf16.gmra.mxu1 %v740_v12  ;;  %v717_v25 = vmul.f32 %v685_v5, %v588_v4  ;;  %v716_v35 = vmul.f32 %v684_v15, %v587_v24  ;;  %v595_v24 = vmul.f32 0.5, %v2013_v33 }
 0x11e   : > { %v687_v21 = vadd.f32 1.0, %v1674_v13  ;;  %v631_v20 = vmul.f32 0.70710677, %v2029_v11  ;;  %v2035_v3 = vadd.f32 %v556_v19, %v1943_v63  ;;  %1687 = verf.f32 %v630_v53 }
 0x11f   : > { %v558_v23 = vpop.f32.mrf.mxu0  ;;  %v718_v28 = vmul.f32 %v686_v16, %v589_v10  ;;  %v1676_v31 = vpop.eup %1675  ;;  %v597_v13 = vmul.f32 0.5, %v2025_v26  ;;  %v598_v19 = vmul.f32 0.5, %v2029_v11 }
 0x120   : > { %v719_v29 = vmul.f32 %v687_v21, %v590_v18  ;;  %1689 = verf.f32 %v631_v20  ;;  %v632_v6 = vmul.f32 0.70710677, %v2035_v3  ;;  %v2040_v32 = vadd.f32 %v558_v23, %v1945_v0 }
 0x121   : > { %v560_v14 = vpop.f32.mrf.mxu0  ;;  %v1678_v17 = vpop.eup %1677  ;;  %v742_v43 = vpack.c.bf16 %v718_v28, %v716_v35  ;;  %v688_v50 = vadd.f32 1.0, %v1676_v31 }
 0x122   : > { %v2043_v36 = vadd.f32 %v560_v14, %v1943_v63  ;;  %v743_v37 = vpack.c.bf16 %v719_v29, %v717_v25  ;;  %v633_v38 = vmul.f32 0.70710677, %v2040_v32  ;;  %1691 = verf.f32 %v632_v6 }
 0x123   : > { %v1680_v48 = vpop.eup %1679  ;;  %v562_v40 = vpop.f32.mrf.mxu0  ;;  %v689_v44 = vadd.f32 1.0, %v1678_v17  ;;  %v720_v4 = vmul.f32 %v688_v50, %v591_v60  ;;  %v600_v33 = vmul.f32 0.5, %v2040_v32 }
 0x124   : > { %v690_v41 = vadd.f32 1.0, %v1680_v48  ;;  %v634_v42 = vmul.f32 0.70710677, %v2043_v36  ;;  %943 = vmatprep.mubr.bf16.mxu1 %v743_v37  ;;  %1693 = verf.f32 %v633_v38  ;;  %v2048_v45 = vadd.f32 %v562_v40, %v1945_v0 }
 0x125   : > { %v566_v47 = vpop.f32.mrf.mxu0  ;;  %v1682_v49 = vpop.eup %1681  ;;  %944 = vmatmul.mubr.bf16.gmra.mxu1 %v742_v43  ;;  %v721_v1 = vmul.f32 %v689_v44, %v592_v54  ;;  %v601_v48 = vmul.f32 0.5, %v2043_v36 }
 0x126   : > { %1695 = verf.f32 %v634_v42  ;;  %v2052_v52 = vadd.f32 %v566_v47, %v1943_v63  ;;  %v691_v55 = vadd.f32 1.0, %v1682_v49  ;;  %v635_v56 = vmul.f32 0.70710677, %v2048_v45 }
 0x127   : > { %v568_v58 = vpop.f32.mrf.mxu0  ;;  %v722_v61 = vmul.f32 %v690_v41, %v593_v51  ;;  %v602_v38 = vmul.f32 0.5, %v2048_v45  ;;  %v599_v41 = vmul.f32 0.5, %v2035_v3 }
 0x128   : > { %v2059_v62 = vadd.f32 %v568_v58, %v1945_v0  ;;  %v723_v2 = vmul.f32 %v691_v55, %v594_v39  ;;  %1697 = verf.f32 %v635_v56  ;;  %v636_v27 = vmul.f32 0.70710677, %v2052_v52 }
 0x129   : > { %v1684_v34 = vpop.eup %1683  ;;  %v570_v30 = vpop.f32.mrf.mxu0  ;;  %v744_v16 = vpack.c.bf16 %v722_v61, %v720_v4  ;;  %v603_v61 = vmul.f32 0.5, %v2052_v52  ;;  %v2083_v52 = vld [vmem:[%s2286_s4] ss:$0 sm:$0xff] }
 0x12a   : > { %v1686_v5 = vpop.eup %1685  ;;  %v637_v7 = vmul.f32 0.70710677, %v2059_v62  ;;  %v571_v8 = vadd.f32 %v570_v30, %v1943_v63  ;;  %v745_v9 = vpack.c.bf16 %v723_v2, %v721_v1  ;;  %v693_v12 = vadd.f32 1.0, %v1684_v34 }
 0x12b   : > { %v572_v22 = vpop.f32.mrf.mxu0  ;;  %v1688_v10 = vpop.eup %1687  ;;  %v692_v57 = vadd.f32 1.0, %v1686_v5  ;;  %v604_v36 = vmul.f32 0.5, %v2059_v62 }
 0x12c   : > { %v573_v15 = vadd.f32 %v572_v22, %v1945_v0  ;;  %v694_v53 = vadd.f32 1.0, %v1688_v10  ;;  %1699 = verf.f32 %v637_v7  ;;  %v638_v21 = vmul.f32 0.70710677, %v571_v8  ;;  %951 = vmatprep.mubr.bf16.mxu1 %v745_v9 }
 0x12d   : > { %v1690_v18 = vpop.eup %1689  ;;  %1701 = verf.f32 %v636_v27  ;;  %952 = vmatmul.mubr.bf16.gmra.mxu1 %v744_v16  ;;  %v725_v25 = vmul.f32 %v693_v12, %v596_v46  ;;  %v724_v29 = vmul.f32 %v692_v57, %v595_v24  ;;  %v605_v45 = vmul.f32 0.5, %v571_v8 }
 0x12e   : > { %v695_v20 = vadd.f32 1.0, %v1690_v18  ;;  %v639_v63 = vmul.f32 0.70710677, %v573_v15  ;;  %1703 = verf.f32 %v638_v21  ;;  %v726_v26 = vmul.f32 %v694_v53, %v597_v13 }
 0x12f   : > { %v1692_v0 = vpop.eup %1691  ;;  %v606_v3 = vmul.f32 0.5, %v573_v15 }
 0x130   : > { %v727_v23 = vmul.f32 %v695_v20, %v598_v19  ;;  %1705 = verf.f32 %v639_v63  ;;  %v746_v14 = vpack.c.bf16 %v726_v26, %v724_v29  ;;  %v696_v37 = vadd.f32 1.0, %v1692_v0 }
 0x131   : > { %v1694_v28 = vpop.eup %1693 }
 0x132   : > { %v747_v6 = vpack.c.bf16 %v727_v23, %v725_v25  ;;  %v697_v17 = vadd.f32 1.0, %v1694_v28  ;;  %v728_v49 = vmul.f32 %v696_v37, %v599_v41 }
 0x133   : > { %v1696_v11 = vpop.eup %1695 }
 0x134   : > { %v698_v31 = vadd.f32 1.0, %v1696_v11  ;;  %959 = vmatprep.mubr.bf16.mxu1 %v747_v6  ;;  %v729_v43 = vmul.f32 %v697_v17, %v600_v33 }
 0x135   : > { %v1698_v35 = vpop.eup %1697  ;;  %960 = vmatmul.mubr.bf16.gmra.mxu1 %v746_v14 }
 0x136   : > { %v699_v40 = vadd.f32 1.0, %v1698_v35  ;;  %v730_v42 = vmul.f32 %v698_v31, %v601_v48 }
 0x138   : > { %v731_v44 = vmul.f32 %v699_v40, %v602_v38  ;;  %v748_v55 = vpack.c.bf16 %v730_v42, %v728_v49 }
 0x139   : > { %v1700_v47 = vpop.eup %1699 }
 0x13a   : > { %v1702_v50 = vpop.eup %1701  ;;  %v749_v51 = vpack.c.bf16 %v731_v44, %v729_v43  ;;  %v701_v39 = vadd.f32 1.0, %v1700_v47 }
 0x13b   : > { %v1704_v54 = vpop.eup %1703  ;;  %v700_v32 = vadd.f32 1.0, %v1702_v50 }
 0x13c   : > { %v702_v58 = vadd.f32 1.0, %v1704_v54  ;;  %967 = vmatprep.mubr.bf16.mxu1 %v749_v51  ;;  %v733_v34 = vmul.f32 %v701_v39, %v604_v36 }
 0x13d   : > { %v1706_v56 = vpop.eup %1705  ;;  %968 = vmatmul.mubr.bf16.gmra.mxu1 %v748_v55  ;;  %v732_v30 = vmul.f32 %v700_v32, %v603_v61 }
 0x13e   : > { %v703_v60 = vadd.f32 1.0, %v1706_v56  ;;  %v734_v1 = vmul.f32 %v702_v58, %v605_v45 }
 0x140   : > { %v735_v2 = vmul.f32 %v703_v60, %v606_v3  ;;  %v750_v27 = vpack.c.bf16 %v734_v1, %v732_v30 }
 0x142   : > { %v751_v4 = vpack.c.bf16 %v735_v2, %v733_v34 }
 0x144   : > { %975 = vmatprep.mubr.bf16.mxu1 %v751_v4 }
 0x145   : > { %976 = vmatmul.mubr.bf16.gmra.mxu1 %v750_v27 }
 0x1cd   : > { %v1529_v62 = vpop.f32.mrf.mxu1 }
 0x1cf   : > { %v1530_v5 = vpop.f32.mrf.mxu1 }
 0x1d0   : > { %v1531_v7 = vadd.f32 %v1530_v5, %v1529_v62 }
 0x1d1   : > { %v1532_v46 = vpop.f32.mrf.mxu1 }
 0x1d2   : > { %v2087_v10 = vadd.f32 %v1531_v7, %v2083_v52 }
 0x1d3   : > { %v1533_v8 = vpop.f32.mrf.mxu1 }
 0x1d4   : > { %v1534_v22 = vadd.f32 %v1533_v8, %v1532_v46 }
 0x1d5   : > { %v1535_v9 = vpop.f32.mrf.mxu1 }
 0x1d6   : > { %v2090_v12 = vadd.f32 %v1534_v22, %v2083_v52 }
 0x1d7   : > { %v1536_v13 = vpop.f32.mrf.mxu1 }
 0x1d8   : > { %v1469_v15 = vpack.c.bf16 %v2090_v12, %v2087_v10  ;;  %v1537_v18 = vadd.f32 %v1536_v13, %v1535_v9 }
 0x1d9   : > { %v1538_v16 = vpop.f32.mrf.mxu1 }
 0x1da   : > { %1470 = vst [vmem:[%s2095_s30] sm:$0xff] %v1469_v15   ;;  %v2101_v57 = vadd.f32 %v1537_v18, %v2083_v52 }
 0x1db   : > { %v1539_v53 = vpop.f32.mrf.mxu1 }
 0x1dc   : > { %v1540_v19 = vadd.f32 %v1539_v53, %v1538_v16 }
 0x1dd   : > { %v1541_v21 = vpop.f32.mrf.mxu1 }
 0x1de   : > { %v2104_v20 = vadd.f32 %v1540_v19, %v2083_v52 }
 0x1df   : > { %v1542_v63 = vpop.f32.mrf.mxu1 }
 0x1e0   : > { %v1474_v24 = vpack.c.bf16 %v2104_v20, %v2101_v57  ;;  %v1543_v26 = vadd.f32 %v1542_v63, %v1541_v21 }
 0x1e1   : > { %v1544_v25 = vpop.f32.mrf.mxu1 }
 0x1e2   : > { %1506 = vst [vmem:[%s2095_s30 + $0x8] sm:$0xff] %v1474_v24   ;;  %v2110_v29 = vadd.f32 %v1543_v26, %v2083_v52 }
 0x1e3   : > { %v1545_v23 = vpop.f32.mrf.mxu1 }
 0x1e4   : > { %v1546_v0 = vadd.f32 %v1545_v23, %v1544_v25 }
 0x1e5   : > { %v1547_v28 = vpop.f32.mrf.mxu1 }
 0x1e6   : > { %v2113_v6 = vadd.f32 %v1546_v0, %v2083_v52 }
 0x1e7   : > { %v1548_v11 = vpop.f32.mrf.mxu1 }
 0x1e8   : > { %v1479_v31 = vpack.c.bf16 %v2113_v6, %v2110_v29  ;;  %v1549_v17 = vadd.f32 %v1548_v11, %v1547_v28 }
 0x1e9   : > { %v1550_v14 = vpop.f32.mrf.mxu1 }
 0x1ea   : > { %1507 = vst [vmem:[%s2095_s30 + $0x10] sm:$0xff] %v1479_v31   ;;  %v2119_v33 = vadd.f32 %v1549_v17, %v2083_v52 }
 0x1eb   : > { %v1551_v35 = vpop.f32.mrf.mxu1 }
 0x1ec   : > { %v1552_v37 = vadd.f32 %v1551_v35, %v1550_v14 }
 0x1ed   : > { %v1553_v48 = vpop.f32.mrf.mxu1 }
 0x1ee   : > { %v2122_v38 = vadd.f32 %v1552_v37, %v2083_v52 }
 0x1ef   : > { %v1554_v40 = vpop.f32.mrf.mxu1 }
 0x1f0   : > { %v1484_v41 = vpack.c.bf16 %v2122_v38, %v2119_v33  ;;  %v1555_v43 = vadd.f32 %v1554_v40, %v1553_v48 }
 0x1f1   : > { %v1556_v42 = vpop.f32.mrf.mxu1 }
 0x1f2   : > { %1508 = vst [vmem:[%s2095_s30 + $0x18] sm:$0xff] %v1484_v41   ;;  %v2128_v50 = vadd.f32 %v1555_v43, %v2083_v52 }
 0x1f3   : > { %v1557_v44 = vpop.f32.mrf.mxu1 }
 0x1f4   : > { %v1558_v47 = vadd.f32 %v1557_v44, %v1556_v42 }
 0x1f5   : > { %v1559_v49 = vpop.f32.mrf.mxu1 }
 0x1f6   : > { %v2131_v51 = vadd.f32 %v1558_v47, %v2083_v52 }
 0x1f7   : > { %v1560_v54 = vpop.f32.mrf.mxu1 }
 0x1f8   : > { %v1489_v39 = vpack.c.bf16 %v2131_v51, %v2128_v50  ;;  %v1561_v56 = vadd.f32 %v1560_v54, %v1559_v49 }
 0x1f9   : > { %v1562_v55 = vpop.f32.mrf.mxu1 }
 0x1fa   : > { %1509 = vst [vmem:[%s2095_s30 + $0x20] sm:$0xff] %v1489_v39   ;;  %v2137_v45 = vadd.f32 %v1561_v56, %v2083_v52 }
 0x1fb   : > { %v1563_v36 = vpop.f32.mrf.mxu1 }
 0x1fc   : > { %v1564_v58 = vadd.f32 %v1563_v36, %v1562_v55 }
 0x1fd   : > { %v1565_v32 = vpop.f32.mrf.mxu1 }
 0x1fe   : > { %v2140_v3 = vadd.f32 %v1564_v58, %v2083_v52 }
 0x1ff   : > { %v1566_v60 = vpop.f32.mrf.mxu1 }
 0x200   : > { %v1494_v61 = vpack.c.bf16 %v2140_v3, %v2137_v45  ;;  %v1567_v1 = vadd.f32 %v1566_v60, %v1565_v32 }
 0x201   : > { %v1568_v34 = vpop.f32.mrf.mxu1 }
 0x202   : > { %1510 = vst [vmem:[%s2095_s30 + $0x28] sm:$0xff] %v1494_v61   ;;  %v2146_v27 = vadd.f32 %v1567_v1, %v2083_v52 }
 0x203   : > { %v1569_v2 = vpop.f32.mrf.mxu1 }
 0x204   : > { %v1570_v30 = vadd.f32 %v1569_v2, %v1568_v34 }
 0x205   : > { %v1571_v4 = vpop.f32.mrf.mxu1 }
 0x206   : > { %v2149_v62 = vadd.f32 %v1570_v30, %v2083_v52 }
 0x207   : > { %v1572_v5 = vpop.f32.mrf.mxu1 }
 0x208   : > { %v1499_v46 = vpack.c.bf16 %v2149_v62, %v2146_v27  ;;  %v1573_v8 = vadd.f32 %v1572_v5, %v1571_v4 }
 0x209   : > { %v1574_v7 = vpop.f32.mrf.mxu1 }
 0x20a   : > { %1511 = vst [vmem:[%s2095_s30 + $0x30] sm:$0xff] %v1499_v46   ;;  %v2155_v13 = vadd.f32 %v1573_v8, %v2083_v52 }
 0x20b   : > { %v1575_v22 = vpop.f32.mrf.mxu1 }
 0x20c   : > { %v1576_v9 = vadd.f32 %v1575_v22, %v1574_v7 }
 0x20e   : > { %v2158_v15 = vadd.f32 %v1576_v9, %v2083_v52  ;;  %1070 = sbr.rel (%p1446_p6) target bundleno = 578 (0x242), region = 48 }
 0x210   : > { %v1504_v16 = vpack.c.bf16 %v2158_v15, %v2155_v13 }
 0x212   : > { %1512 = vst [vmem:[%s2095_s30 + $0x38] sm:$0xff] %v1504_v16  }
 0x213   : > { %v1072_v18 = vadd.f32 %v2090_v12, %v2087_v10  ;;  %v1096_v53 = vmul.f32 %v2087_v10, %v2087_v10  ;;  %v1097_v19 = vmul.f32 %v2090_v12, %v2090_v12  ;;  %v1098_v52 = vmul.f32 %v2101_v57, %v2101_v57 }
 0x214   : > { %v1099_v24 = vmul.f32 %v2104_v20, %v2104_v20  ;;  %v1100_v23 = vmul.f32 %v2110_v29, %v2110_v29  ;;  %v1101_v11 = vmul.f32 %v2113_v6, %v2113_v6  ;;  %v1102_v17 = vmul.f32 %v2119_v33, %v2119_v33 }
 0x215   : > { %v1073_v21 = vadd.f32 %v1072_v18, %v2101_v57  ;;  %v1112_v25 = vadd.f32 %v1097_v19, %v1096_v53  ;;  %v1103_v48 = vmul.f32 %v2122_v38, %v2122_v38  ;;  %v1104_v42 = vmul.f32 %v2128_v50, %v2128_v50 }
 0x216   : > { %v1105_v47 = vmul.f32 %v2131_v51, %v2131_v51  ;;  %v1106_v39 = vmul.f32 %v2137_v45, %v2137_v45  ;;  %v1107_v36 = vmul.f32 %v2140_v3, %v2140_v3  ;;  %v1108_v60 = vmul.f32 %v2146_v27, %v2146_v27 }
 0x217   : > { %v1074_v63 = vadd.f32 %v1073_v21, %v2104_v20  ;;  %v1113_v0 = vadd.f32 %v1112_v25, %v1098_v52  ;;  %v1109_v1 = vmul.f32 %v2149_v62, %v2149_v62  ;;  %v1110_v4 = vmul.f32 %v2155_v13, %v2155_v13  ;;  %v1071_v25 = vld [vmem:[%s1811_s16] sm:$0x1] }
 0x218   : > { %v1111_v7 = vmul.f32 %v2158_v15, %v2158_v15 }
 0x219   : > { %v1075_v26 = vadd.f32 %v1074_v63, %v2110_v29  ;;  %v1114_v31 = vadd.f32 %v1113_v0, %v1099_v24 }
 0x21b   : > { %v1076_v28 = vadd.f32 %v1075_v26, %v2113_v6  ;;  %v1115_v35 = vadd.f32 %v1114_v31, %v1100_v23 }
 0x21d   : > { %v1077_v14 = vadd.f32 %v1076_v28, %v2119_v33  ;;  %v1116_v40 = vadd.f32 %v1115_v35, %v1101_v11  ;;  %v1095_v11 = vld [vmem:[%s1816_s19] sm:$0x1] }
 0x21f   : > { %v1078_v37 = vadd.f32 %v1077_v14, %v2122_v38  ;;  %v1117_v43 = vadd.f32 %v1116_v40, %v1102_v17 }
 0x221   : > { %v1079_v41 = vadd.f32 %v1078_v37, %v2128_v50  ;;  %v1118_v49 = vadd.f32 %v1117_v43, %v1103_v48 }
 0x223   : > { %v1080_v44 = vadd.f32 %v1079_v41, %v2131_v51  ;;  %v1119_v55 = vadd.f32 %v1118_v49, %v1104_v42 }
 0x225   : > { %v1081_v54 = vadd.f32 %v1080_v44, %v2137_v45  ;;  %v1120_v58 = vadd.f32 %v1119_v55, %v1105_v47 }
 0x227   : > { %v1082_v56 = vadd.f32 %v1081_v54, %v2140_v3  ;;  %v1121_v61 = vadd.f32 %v1120_v58, %v1106_v39 }
 0x229   : > { %v1083_v32 = vadd.f32 %v1082_v56, %v2146_v27  ;;  %v1122_v2 = vadd.f32 %v1121_v61, %v1107_v36 }
 0x22b   : > { %v1084_v34 = vadd.f32 %v1083_v32, %v2149_v62  ;;  %v1123_v5 = vadd.f32 %v1122_v2, %v1108_v60 }
 0x22d   : > { %v1085_v30 = vadd.f32 %v1084_v34, %v2155_v13  ;;  %v1124_v8 = vadd.f32 %v1123_v5, %v1109_v1 }
 0x22f   : > { %v1086_v46 = vadd.f32 %v1085_v30, %v2158_v15  ;;  %v1125_v9 = vadd.f32 %v1124_v8, %v1110_v4 }
 0x231   : > { %v1087_v22 = vrot.slane %v1086_v46, 4  ;;  %v1126_v18 = vadd.f32 %v1125_v9, %v1111_v7 }
 0x233   : > { %v1088_v16 = vadd.f32 %v1087_v22, %v1086_v46  ;;  %v1127_v19 = vrot.slane %v1126_v18, 4 }
 0x235   : > { %v1089_v53 = vrot.slane %v1088_v16, 2  ;;  %v1128_v52 = vadd.f32 %v1127_v19, %v1126_v18 }
 0x237   : > { %v1090_v21 = vadd.f32 %v1089_v53, %v1088_v16  ;;  %v1129_v24 = vrot.slane %v1128_v52, 2 }
 0x239   : > { %v1091_v63 = vrot.slane %v1090_v21, 1  ;;  %v1130_v23 = vadd.f32 %v1129_v24, %v1128_v52 }
 0x23b   : > { %v1092_v26 = vadd.f32 %v1091_v63, %v1090_v21  ;;  %v1131_v28 = vrot.slane %v1130_v23, 1 }
 0x23d   : > { %v1093_v0 = vadd.f32 %v1092_v26, %v1071_v25  ;;  %v1132_v31 = vadd.f32 %v1131_v28, %v1130_v23 }
 0x23f   : > { %1094 = vst [vmem:[%s1811_s16] sm:$0x1] %v1093_v0  ;;  %v1133_v14 = vadd.f32 %v1132_v31, %v1095_v11 }
 0x241   : > { %1134 = vst [vmem:[%s1816_s19] sm:$0x1] %v1133_v14 }
 0x242 PF: > { %p1447_p7 = scmp.le.s32.totalorder %s2078_s18, 256 }
 0x244   : > { %1138 = sbr.rel (%p1447_p7) target bundleno = 639 (0x27f), region = 52 }
 0x249   : > { %v1141_v17 = vadd.s32 8, %v1936_v59  ;;  %v2220_v35 = vstv %s1445_s17  ;;  %v1142_v37 = vadd.s32 16, %v1936_v59  ;;  %v1143_v48 = vadd.s32 24, %v1936_v59 }
 0x24a   : > { %v1157_v40 = vadd.s32 %v2220_v35, %v1936_v59  ;;  %v1144_v42 = vadd.s32 32, %v1936_v59  ;;  %v1145_v44 = vadd.s32 40, %v1936_v59  ;;  %v1146_v49 = vadd.s32 48, %v1936_v59 }
 0x24b   : > { %v1158_v41 = vadd.s32 %v2220_v35, %v1141_v17  ;;  %v1159_v43 = vadd.s32 %v2220_v35, %v1142_v37  ;;  %v1160_v47 = vadd.s32 %v2220_v35, %v1143_v48  ;;  %v1147_v56 = vadd.s32 56, %v1936_v59 }
 0x24c   : > { %vm1173_vm0 = vcmp.lt.s32.totalorder %v1157_v40, 256  ;;  %v1161_v54 = vadd.s32 %v2220_v35, %v1144_v42  ;;  %v1162_v36 = vadd.s32 %v2220_v35, %v1145_v44  ;;  %v1148_v58 = vadd.s32 64, %v1936_v59 }
 0x24d   : > { %vm1174_vm1 = vcmp.lt.s32.totalorder %v1158_v41, 256  ;;  %vm1175_vm2 = vcmp.lt.s32.totalorder %v1159_v43, 256  ;;  %v1189_v39 = vsel %vm1173_vm0, %v2087_v10, 0.0  ;;  %vm1176_vm3 = vcmp.lt.s32.totalorder %v1160_v47, 256 }
 0x24e   : > { %v1190_v55 = vsel %vm1174_vm1, %v2090_v12, 0.0  ;;  %v1163_v32 = vadd.s32 %v2220_v35, %v1146_v49  ;;  %v1191_v60 = vsel %vm1175_vm2, %v2101_v57, 0.0  ;;  %vm1177_vm4 = vcmp.lt.s32.totalorder %v1161_v54, 256 }
 0x24f   : > { %v1206_v61 = vadd.f32 %v1190_v55, %v1189_v39  ;;  %v1230_v34 = vmul.f32 %v1189_v39, %v1189_v39  ;;  %v1231_v1 = vmul.f32 %v1190_v55, %v1190_v55  ;;  %v1149_v2 = vadd.s32 72, %v1936_v59 }
 0x250   : > { %v1192_v10 = vsel %vm1176_vm3, %v2104_v20, 0.0  ;;  %v1164_v12 = vadd.s32 %v2220_v35, %v1147_v56  ;;  %vm1178_vm5 = vcmp.lt.s32.totalorder %v1162_v36, 256  ;;  %v1232_v4 = vmul.f32 %v1191_v60, %v1191_v60 }
 0x251   : > { %v1207_v30 = vadd.f32 %v1206_v61, %v1191_v60  ;;  %v1150_v5 = vadd.s32 80, %v1936_v59  ;;  %v1165_v46 = vadd.s32 %v2220_v35, %v1148_v58  ;;  %v1193_v7 = vsel %vm1177_vm4, %v2110_v29, 0.0 }
 0x252   : > { %vm1179_vm6 = vcmp.lt.s32.totalorder %v1163_v32, 256  ;;  %v1233_v8 = vmul.f32 %v1192_v10, %v1192_v10  ;;  %v1246_v22 = vadd.f32 %v1231_v1, %v1230_v34  ;;  %v1151_v9 = vadd.s32 88, %v1936_v59 }
 0x253   : > { %v1208_v57 = vadd.f32 %v1207_v30, %v1192_v10  ;;  %v1166_v16 = vadd.s32 %v2220_v35, %v1149_v2  ;;  %v1194_v20 = vsel %vm1178_vm5, %v2113_v6, 0.0  ;;  %vm1180_vm7 = vcmp.lt.s32.totalorder %v1164_v12, 256 }
 0x254   : > { %v1234_v53 = vmul.f32 %v1193_v7, %v1193_v7  ;;  %v1247_v19 = vadd.f32 %v1246_v22, %v1232_v4  ;;  %v1152_v21 = vadd.s32 96, %v1936_v59  ;;  %v1167_v52 = vadd.s32 %v2220_v35, %v1150_v5 }
 0x255   : > { %v1209_v18 = vadd.f32 %v1208_v57, %v1193_v7  ;;  %v1195_v29 = vsel %vm1179_vm6, %v2119_v33, 0.0  ;;  %vm1181_vm8 = vcmp.lt.s32.totalorder %v1165_v46, 256  ;;  %v1235_v24 = vmul.f32 %v1194_v20, %v1194_v20 }
 0x256   : > { %v1248_v25 = vadd.f32 %v1247_v19, %v1233_v8  ;;  %v1153_v26 = vadd.s32 104, %v1936_v59  ;;  %v1168_v23 = vadd.s32 %v2220_v35, %v1151_v9  ;;  %v1196_v6 = vsel %vm1180_vm7, %v2122_v38, 0.0  ;;  %v1205_v19 = vld [vmem:[%s1811_s16] sm:$0x1] }
 0x257   : > { %v1210_v63 = vadd.f32 %v1209_v18, %v1194_v20  ;;  %vm1182_vm9 = vcmp.lt.s32.totalorder %v1166_v16, 256  ;;  %v1236_v28 = vmul.f32 %v1195_v29, %v1195_v29  ;;  %v1154_v31 = vadd.s32 112, %v1936_v59 }
 0x258   : > { %v1249_v11 = vadd.f32 %v1248_v25, %v1234_v53  ;;  %v1169_v14 = vadd.s32 %v2220_v35, %v1152_v21  ;;  %v1197_v33 = vsel %vm1181_vm8, %v2128_v50, 0.0  ;;  %vm1183_vm10 = vcmp.lt.s32.totalorder %v1167_v52, 256 }
 0x259   : > { %v1211_v0 = vadd.f32 %v1210_v63, %v1195_v29  ;;  %v1237_v37 = vmul.f32 %v1196_v6, %v1196_v6  ;;  %v1155_v40 = vadd.s32 120, %v1936_v59  ;;  %v1170_v41 = vadd.s32 %v2220_v35, %v1153_v26 }
 0x25a   : > { %v1250_v48 = vadd.f32 %v1249_v11, %v1235_v24  ;;  %v1198_v38 = vsel %vm1182_vm9, %v2131_v51, 0.0  ;;  %vm1184_vm11 = vcmp.lt.s32.totalorder %v1168_v23, 256  ;;  %v1238_v43 = vmul.f32 %v1197_v33, %v1197_v33  ;;  %v1229_v24 = vld [vmem:[%s1816_s19] sm:$0x1] }
 0x25b   : > { %v1212_v17 = vadd.f32 %v1211_v0, %v1196_v6  ;;  %v1171_v47 = vadd.s32 %v2220_v35, %v1154_v31  ;;  %v1199_v49 = vsel %vm1183_vm10, %v2137_v45, 0.0  ;;  %vm1185_vm12 = vcmp.lt.s32.totalorder %v1169_v14, 256 }
 0x25c   : > { %v1251_v44 = vadd.f32 %v1250_v48, %v1236_v28  ;;  %v1239_v54 = vmul.f32 %v1198_v38, %v1198_v38  ;;  %v1172_v55 = vadd.s32 %v2220_v35, %v1155_v40  ;;  %v1200_v59 = vsel %vm1184_vm11, %v2140_v3, 0.0 }
 0x25d   : > { %v1213_v42 = vadd.f32 %v1212_v17, %v1197_v33  ;;  %vm1186_vm13 = vcmp.lt.s32.totalorder %v1170_v41, 256  ;;  %v1240_v36 = vmul.f32 %v1199_v49, %v1199_v49  ;;  %v1201_v58 = vsel %vm1185_vm12, %v2146_v27, 0.0 }
 0x25e   : > { %v1252_v39 = vadd.f32 %v1251_v44, %v1237_v37  ;;  %vm1187_vm14 = vcmp.lt.s32.totalorder %v1171_v47, 256  ;;  %v1241_v60 = vmul.f32 %v1200_v59, %v1200_v59  ;;  %v1202_v45 = vsel %vm1186_vm13, %v2149_v62, 0.0 }
 0x25f   : > { %v1214_v50 = vadd.f32 %v1213_v42, %v1198_v38  ;;  %vm1188_vm15 = vcmp.lt.s32.totalorder %v1172_v55, 256  ;;  %v1242_v1 = vmul.f32 %v1201_v58, %v1201_v58  ;;  %v1203_v35 = vsel %vm1187_vm14, %v2155_v13, 0.0 }
 0x260   : > { %v1253_v51 = vadd.f32 %v1252_v39, %v1238_v43  ;;  %v1243_v3 = vmul.f32 %v1202_v45, %v1202_v45  ;;  %v1204_v30 = vsel %vm1188_vm15, %v2158_v15, 0.0  ;;  %v1244_v27 = vmul.f32 %v1203_v35, %v1203_v35 }
 0x261   : > { %v1215_v56 = vadd.f32 %v1214_v50, %v1199_v49  ;;  %v1245_v7 = vmul.f32 %v1204_v30, %v1204_v30 }
 0x262   : > { %v1254_v61 = vadd.f32 %v1253_v51, %v1239_v54 }
 0x263   : > { %v1216_v32 = vadd.f32 %v1215_v56, %v1200_v59 }
 0x264   : > { %v1255_v2 = vadd.f32 %v1254_v61, %v1240_v36 }
 0x265   : > { %v1217_v34 = vadd.f32 %v1216_v32, %v1201_v58 }
 0x266   : > { %v1256_v12 = vadd.f32 %v1255_v2, %v1241_v60 }
 0x267   : > { %v1218_v10 = vadd.f32 %v1217_v34, %v1202_v45 }
 0x268   : > { %v1257_v5 = vadd.f32 %v1256_v12, %v1242_v1 }
 0x269   : > { %v1219_v4 = vadd.f32 %v1218_v10, %v1203_v35 }
 0x26a   : > { %v1258_v57 = vadd.f32 %v1257_v5, %v1243_v3 }
 0x26b   : > { %v1220_v46 = vadd.f32 %v1219_v4, %v1204_v30 }
 0x26c   : > { %v1259_v8 = vadd.f32 %v1258_v57, %v1244_v27 }
 0x26d   : > { %v1221_v62 = vrot.slane %v1220_v46, 4 }
 0x26e   : > { %v1260_v9 = vadd.f32 %v1259_v8, %v1245_v7 }
 0x26f   : > { %v1222_v22 = vadd.f32 %v1221_v62, %v1220_v46 }
 0x270   : > { %v1261_v16 = vrot.slane %v1260_v9, 4 }
 0x271   : > { %v1223_v13 = vrot.slane %v1222_v22, 2 }
 0x272   : > { %v1262_v18 = vadd.f32 %v1261_v16, %v1260_v9 }
 0x273   : > { %v1224_v20 = vadd.f32 %v1223_v13, %v1222_v22 }
 0x274   : > { %v1263_v15 = vrot.slane %v1262_v18, 2 }
 0x275   : > { %v1225_v53 = vrot.slane %v1224_v20, 1 }
 0x276   : > { %v1264_v52 = vadd.f32 %v1263_v15, %v1262_v18 }
 0x277   : > { %v1226_v21 = vadd.f32 %v1225_v53, %v1224_v20 }
 0x278   : > { %v1265_v63 = vrot.slane %v1264_v52, 1 }
 0x279   : > { %v1227_v29 = vadd.f32 %v1226_v21, %v1205_v19 }
 0x27a   : > { %v1266_v25 = vadd.f32 %v1265_v63, %v1264_v52 }
 0x27b   : > { %1228 = vst [vmem:[%s1811_s16] sm:$0x1] %v1227_v29 }
 0x27c   : > { %v1267_v26 = vadd.f32 %v1266_v25, %v1229_v24 }
 0x27e   : > { %1268 = vst [vmem:[%s1816_s19] sm:$0x1] %v1267_v26 }
 0x27f PF: > { %s18_s26 = sadd.s32 1, %s1729_s26   ;;  %s2290_s24 = smov %s1725_s25 }
 0x280   : > { %p15_p8 = scmp.ge.s32.totalorder %s18_s26, 4   ;;  %s2291_s25 = smov %s2293_s27 }
 0x282   :  { %17 = sbr.rel (!%p15_p8) target bundleno = 2 (0x2), region = 106 }

// kernel: poswise_ffn_forward.4
= control target key start
LH: loop header
LB: loop body
LE: loop exit
PB: predicated region body
PF: predicated region fallthrough
CT: control target
= control target key end

     0   :  { %s2382_s24 = smov 0   ;;  %s2384_s25 = smov 0   ;;  %s3227_s0 = inlined_call_operand.vmem [shape: f32[208,128], index: 0, kind: input, shape index: {}]   ;;  %s3228_s1 = inlined_call_operand.vmem [shape: bf16[128,512], index: 1, kind: input, shape index: {}]   ;;  %s3229_s2 = inlined_call_operand.vmem [shape: f32[1,512], index: 2, kind: input, shape index: {}]   ;;  %s3230_s3 = inlined_call_operand.vmem [shape: bf16[512,128], index: 3, kind: input, shape index: {}]   ;;  %s3231_s4 = inlined_call_operand.vmem [shape: f32[1,128], index: 4, kind: input, shape index: {}]   ;;  %s3232_s5 = inlined_call_operand.vmem [shape: bf16[208,128], index: 5, kind: output, shape index: {0}]   ;;  %s3233_s6 = inlined_call_operand.vmem [shape: f32[2,1,128], index: 6, kind: output, shape index: {1}]   ;;  %s3234_s7 = inlined_call_operand.vmem [shape: f32[2,1,128], index: 7, kind: output, shape index: {2}]  }
   0x1   :  { %s2386_s26 = smov 0  }
   0x2 LB: > { %s30_s27 = sadd.s32 1, %s2334_s25  ;;  %p1857_p0 = scmp.ge.s32.totalorder %s2338_s26, 1  ;;  %s2338_s26 = sphi %s2386_s26, %s18_s26   ;;  %s2334_s25 = sphi %s2384_s25, %s3244_s25   ;;  %s2330_s24 = sphi %s2382_s24, %s3243_s24  }
   0x3   : > { %p32_p1 = scmp.ge.s32.totalorder %s30_s27, 2  ;;  %p261_p2 = scmp.lt.s32.totalorder %s2338_s26, 3 }
   0x5   : > { %s3246_s27 = smov (%p32_p1, %s30_s27), 0  ;;  %p262_p3 = pnand %p1857_p0, %p261_p2 }
   0x7   : > { %265 = sbr.rel (%p262_p3) target bundleno = 641 (0x281), region = 40 }
   0xc   : > { %p317_p4 = scmp.lt.s32.totalorder %s2330_s24, 1  ;;  %v2132_v0 = vld [vmem:[%s3228_s1 + $0xe4] ss:$16 sps:$4 sm:$0xff]   ;;  %v2134_v1 = vld [vmem:[%s3228_s1 + $0xec] ss:$16 sps:$4 sm:$0xff]   ;;  %v2340_v4 = vmov 0  }
   0xd   : > { %564 = vmatprep.subr.bf16.mxu0 %v2132_v0  ;;  %v2136_v2 = vld [vmem:[%s3228_s1 + $0xe0] ss:$16 sps:$4 sm:$0xff]   ;;  %v2137_v3 = vld [vmem:[%s3228_s1 + $0xe8] ss:$16 sps:$4 sm:$0xff]   ;;  %596 = vmatprep.mubr.bf16.mxu0 %v2340_v4  ;;  %v2138_v5 = vld [vmem:[%s3228_s1 + $0xc4] ss:$16 sps:$4 sm:$0xff]  }
   0xe   : > { %s318_s9 = scalar_select %p317_p4, %s2330_s24, 1  ;;  %665 = vmatprep.subr.bf16.mxu1 %v2134_v1  ;;  %697 = vmatprep.mubr.bf16.mxu1 %v2340_v4  ;;  %v2140_v6 = vld [vmem:[%s3228_s1 + $0xcc] ss:$16 sps:$4 sm:$0xff]   ;;  %v2142_v7 = vld [vmem:[%s3228_s1 + $0xc0] ss:$16 sps:$4 sm:$0xff]   ;;  %v2341_v8 = vmov 0.0  }
   0xf   : > { %565 = vmatpush1.bf16.msra.mxu0 %v2136_v2  ;;  %666 = vmatpush1.bf16.msra.mxu1 %v2137_v3  ;;  %v2143_v9 = vld [vmem:[%s3228_s1 + $0xc8] ss:$16 sps:$4 sm:$0xff]   ;;  %v2144_v10 = vld [vmem:[%s3228_s1 + $0xa4] ss:$16 sps:$4 sm:$0xff]   ;;  %v2146_v11 = vld [vmem:[%s3228_s1 + $0xac] ss:$16 sps:$4 sm:$0xff]  }
  0x10   : > { %s2424_s18 = scalar_lea.vmem %s3233_s6, %s318_s9  ;;  %s2429_s21 = scalar_lea.vmem %s3234_s7, %s318_s9  ;;  %566 = vmatprep.subr.bf16.mxu0 %v2138_v5  ;;  %667 = vmatprep.subr.bf16.mxu1 %v2140_v6  ;;  %v2148_v12 = vld [vmem:[%s3228_s1 + $0xa0] ss:$16 sps:$4 sm:$0xff]   ;;  %v2149_v13 = vld [vmem:[%s3228_s1 + $0xa8] ss:$16 sps:$4 sm:$0xff]   ;;  %v2150_v14 = vld [vmem:[%s3228_s1 + $0x84] ss:$16 sps:$4 sm:$0xff]  }
  0x11   : > { %328 = vst [vmem:[%s2424_s18] sm:$0x1] %v2341_v8  ;;  %329 = vst [vmem:[%s2429_s21] sm:$0x1] %v2341_v8  ;;  %s302_s20 = smul.u32 13, %s2330_s24  ;;  %v2152_v15 = vld [vmem:[%s3228_s1 + $0x8c] ss:$16 sps:$4 sm:$0xff]   ;;  %v2184_v41 = vld [vmem:[%s3230_s3 + $0x70] sm:$0xff]  }
  0x12   : > { %v2154_v16 = vld [vmem:[%s3228_s1 + $0x80] ss:$16 sps:$4 sm:$0xff]   ;;  %v2155_v17 = vld [vmem:[%s3228_s1 + $0x88] ss:$16 sps:$4 sm:$0xff]   ;;  %v2156_v18 = vld [vmem:[%s3228_s1 + $0x64] ss:$16 sps:$4 sm:$0xff]  }
  0x13   : > { %567 = vmatpush1.bf16.msra.mxu0 %v2142_v7  ;;  %668 = vmatpush1.bf16.msra.mxu1 %v2143_v9  ;;  %p303_p5 = scmp.lt.s32.totalorder %s302_s20, 25  ;;  %v2158_v19 = vld [vmem:[%s3228_s1 + $0x6c] ss:$16 sps:$4 sm:$0xff]   ;;  %v2160_v20 = vld [vmem:[%s3228_s1 + $0x60] ss:$16 sps:$4 sm:$0xff]   ;;  %s1561_s19 = smul.u32 104, %s2330_s24 }
  0x14   : > { %568 = vmatprep.subr.bf16.mxu0 %v2144_v10  ;;  %669 = vmatprep.subr.bf16.mxu1 %v2146_v11  ;;  %v2161_v21 = vld [vmem:[%s3228_s1 + $0x68] ss:$16 sps:$4 sm:$0xff]   ;;  %v2162_v22 = vld [vmem:[%s3228_s1 + $0x44] ss:$16 sps:$4 sm:$0xff]   ;;  %v2164_v23 = vld [vmem:[%s3228_s1 + $0x4c] ss:$16 sps:$4 sm:$0xff]  }
  0x15   : > { %s3248_s20 = smov (!%p303_p5, %s302_s20), 25  ;;  %v2166_v24 = vld [vmem:[%s3228_s1 + $0x40] ss:$16 sps:$4 sm:$0xff]   ;;  %v2167_v25 = vld [vmem:[%s3228_s1 + $0x48] ss:$16 sps:$4 sm:$0xff]   ;;  %s3068_s22 = sadd.s32 104, %s1561_s19 }
  0x16   : > { %s1858_s9 = sshll.u32 %s3248_s20, 3  ;;  %v2168_v26 = vld [vmem:[%s3228_s1 + $0x24] ss:$16 sps:$4 sm:$0xff]   ;;  %v2170_v27 = vld [vmem:[%s3228_s1 + $0x2c] ss:$16 sps:$4 sm:$0xff]   ;;  %s1859_s29 = sshll.u32 %s3248_s20, 2 }
  0x17   : > { %569 = vmatpush1.bf16.msra.mxu0 %v2148_v12  ;;  %670 = vmatpush1.bf16.msra.mxu1 %v2149_v13  ;;  %s2503_s16 = scalar_lea.vmem %s3227_s0, %s1858_s9  ;;  %v2172_v28 = vld [vmem:[%s3228_s1 + $0x20] ss:$16 sps:$4 sm:$0xff]   ;;  %v2173_v29 = vld [vmem:[%s3228_s1 + $0x28] ss:$16 sps:$4 sm:$0xff]   ;;  %v2174_v30 = vld [vmem:[%s3228_s1 + $0x4] ss:$16 sps:$4 sm:$0xff]   ;;  %s3085_s8 = scalar_lea.vmem %s3232_s5, %s1859_s29 }
  0x18   : > { %570 = vmatprep.subr.bf16.mxu0 %v2150_v14  ;;  %671 = vmatprep.subr.bf16.mxu1 %v2152_v15  ;;  %v2176_v31 = vld [vmem:[%s3228_s1 + $0xc] ss:$16 sps:$4 sm:$0xff]   ;;  %v2178_v32 = vld [vmem:[%s3228_s1] ss:$16 sps:$4 sm:$0xff]   ;;  %v2179_v33 = vld [vmem:[%s3228_s1 + $0x8] ss:$16 sps:$4 sm:$0xff]  }
  0x19   : > { %v330_v34 = vld [vmem:[%s2503_s16] sm:$0xff]  ;;  %v331_v35 = vld [vmem:[%s2503_s16 + $0x8] sm:$0xff]  ;;  %v2180_v36 = vld [vmem:[%s3230_s3 + $0x78] sm:$0xff]   ;;  %p1938_p6 = scmp.gt.s32.totalorder %s3068_s22, 200 }
  0x1a   : > { %v2182_v37 = vld [vmem:[%s3230_s3 + $0xf8] sm:$0xff]   ;;  %v343_v38 = vpack.c.bf16 %v331_v35, %v330_v34  ;;  %v332_v42 = vld [vmem:[%s2503_s16 + $0x10] sm:$0xff]  ;;  %v2188_v47 = vld [vmem:[%s3230_s3 + $0x68] sm:$0xff]  }
  0x1b   : > { %571 = vmatpush1.bf16.msra.mxu0 %v2154_v16  ;;  %672 = vmatpush1.bf16.msra.mxu1 %v2155_v17  ;;  %v2181_v39 = vld [vmem:[%s3230_s3 + $0x38] sm:$0xff]   ;;  %v2186_v44 = vld [vmem:[%s3230_s3 + $0xf0] sm:$0xff]   ;;  %v2190_v48 = vld [vmem:[%s3230_s3 + $0xe8] sm:$0xff]  }
  0x1c   : > { %572 = vmatprep.subr.bf16.mxu0 %v2156_v18  ;;  %673 = vmatprep.subr.bf16.mxu1 %v2158_v19  ;;  %v2183_v40 = vld [vmem:[%s3230_s3 + $0xb8] sm:$0xff]   ;;  %v2185_v45 = vld [vmem:[%s3230_s3 + $0x30] sm:$0xff]   ;;  %v2189_v50 = vld [vmem:[%s3230_s3 + $0x28] sm:$0xff]  }
  0x1d   : > { %v333_v43 = vld [vmem:[%s2503_s16 + $0x18] sm:$0xff]  ;;  %v2187_v46 = vld [vmem:[%s3230_s3 + $0xb0] sm:$0xff]   ;;  %v2191_v51 = vld [vmem:[%s3230_s3 + $0xa8] sm:$0xff]  }
  0x1e   : > { %v344_v49 = vpack.c.bf16 %v333_v43, %v332_v42  ;;  %v2192_v52 = vld [vmem:[%s3230_s3 + $0x60] sm:$0xff]   ;;  %v335_v55 = vld [vmem:[%s2503_s16 + $0x28] sm:$0xff]  ;;  %v336_v59 = vld [vmem:[%s2503_s16 + $0x30] sm:$0xff] }
  0x1f   : > { %573 = vmatpush1.bf16.msra.mxu0 %v2160_v20  ;;  %674 = vmatpush1.bf16.msra.mxu1 %v2161_v21  ;;  %v2194_v53 = vld [vmem:[%s3230_s3 + $0xe0] sm:$0xff]   ;;  %v337_v60 = vld [vmem:[%s2503_s16 + $0x38] sm:$0xff]  ;;  %v339_v63 = vld [vmem:[%s2503_s16 + $0x48] sm:$0xff] }
  0x20   : > { %574 = vmatprep.subr.bf16.mxu0 %v2162_v22  ;;  %675 = vmatprep.subr.bf16.mxu1 %v2164_v23  ;;  %v334_v54 = vld [vmem:[%s2503_s16 + $0x20] sm:$0xff]  ;;  %v346_v61 = vpack.c.bf16 %v337_v60, %v336_v59  ;;  %v340_v1 = vld [vmem:[%s2503_s16 + $0x50] sm:$0xff]  ;;  %v341_v2 = vld [vmem:[%s2503_s16 + $0x58] sm:$0xff]  ;;  %v384_v22 = vlaneseq }
  0x21   : > { %v2193_v56 = vld [vmem:[%s3230_s3 + $0x20] sm:$0xff]   ;;  %v345_v58 = vpack.c.bf16 %v335_v55, %v334_v54  ;;  %v348_v3 = vpack.c.bf16 %v341_v2, %v340_v1  ;;  %v2196_v7 = vld [vmem:[%s3230_s3 + $0x58] sm:$0xff]   ;;  %v2200_v10 = vld [vmem:[%s3230_s3 + $0x50] sm:$0xff]  }
  0x22   : > { %v2195_v57 = vld [vmem:[%s3230_s3 + $0xa0] sm:$0xff]   ;;  %v2198_v8 = vld [vmem:[%s3230_s3 + $0xd8] sm:$0xff]   ;;  %v2202_v11 = vld [vmem:[%s3230_s3 + $0xd0] sm:$0xff]   ;;  %v2644_v23 = vshrl.u32 %v384_v22, 7 }
  0x23   : > { %575 = vmatpush1.bf16.msra.mxu0 %v2166_v24  ;;  %676 = vmatpush1.bf16.msra.mxu1 %v2167_v25  ;;  %v338_v62 = vld [vmem:[%s2503_s16 + $0x40] sm:$0xff]  ;;  %v2197_v9 = vld [vmem:[%s3230_s3 + $0x18] sm:$0xff]   ;;  %v2201_v12 = vld [vmem:[%s3230_s3 + $0x10] sm:$0xff]  }
  0x24   : > { %576 = vmatprep.subr.bf16.mxu0 %v2168_v26  ;;  %677 = vmatprep.subr.bf16.mxu1 %v2170_v27  ;;  %v347_v0 = vpack.c.bf16 %v339_v63, %v338_v62  ;;  %v342_v5 = vld [vmem:[%s2503_s16 + $0x60] sm:$0xff]  ;;  %v2203_v13 = vld [vmem:[%s3230_s3 + $0x90] sm:$0xff]   ;;  %v2204_v14 = vld [vmem:[%s3230_s3 + $0x48] sm:$0xff]   ;;  %3237 = vst [vmem:[#allocation2_spill] sm:$0xff] %v2644_v23  ;;  %v386_v24 = vsub.s32 0, %v2644_v23  ;;  %v394_v26 = vsub.s32 2, %v2644_v23 }
  0x25   : > { %v349_v6 = vpack.c.bf16 %v342_v5, %v342_v5  ;;  %v2206_v15 = vld [vmem:[%s3230_s3 + $0xc8] sm:$0xff]   ;;  %v2208_v18 = vld [vmem:[%s3230_s3 + $0x40] sm:$0xff]   ;;  %v390_v27 = vsub.s32 1, %v2644_v23 }
  0x26   : > { %v2205_v16 = vld [vmem:[%s3230_s3 + $0x8] sm:$0xff]   ;;  %v2209_v19 = vld [vmem:[%s3230_s3] sm:$0xff]  }
  0x27   : > { %577 = vmatpush1.bf16.msra.mxu0 %v2172_v28  ;;  %678 = vmatpush1.bf16.msra.mxu1 %v2173_v29  ;;  %v2207_v17 = vld [vmem:[%s3230_s3 + $0x88] sm:$0xff]   ;;  %v2210_v20 = vld [vmem:[%s3230_s3 + $0xc0] sm:$0xff]   ;;  %v398_v28 = vsub.s32 3, %v2644_v23 }
  0x28   : > { %578 = vmatprep.subr.bf16.mxu0 %v2174_v30  ;;  %679 = vmatprep.subr.bf16.mxu1 %v2176_v31  ;;  %v2211_v21 = vld [vmem:[%s3230_s3 + $0x80] sm:$0xff]  }
  0x29   : > { %v382_v25 = vld [vmem:[%s3229_s2] sm:$0xf] }
  0x2a   : > { %v2653_v29 = vrot.slane %v382_v25, %v386_v24  ;;  %v2655_v30 = vrot.slane %v382_v25, %v394_v26  ;;  %v2659_v34 = vrot.slane %v382_v25, %v398_v28 }
  0x2b   : > { %579 = vmatpush1.bf16.msra.mxu0 %v2178_v32  ;;  %680 = vmatpush1.bf16.msra.mxu1 %v2179_v33  ;;  %v2657_v33 = vrot.slane %v382_v25, %v390_v27 }
  0x2c   : > { %1990 = vmatprep.subr.bf16.mxu0 %v2180_v36  ;;  %2048 = vmatprep.subr.bf16.mxu1 %v2182_v37 }
  0x2e   : > { %597 = vmatmul.mubr.bf16.vlgmr.msra.gmra.mxu0 %v343_v38  ;;  %698 = vmatmul.mubr.bf16.vlgmr.msra.gmra.mxu1 %v343_v38 }
  0x2f   : > { %606 = vmatprep.mubr.bf16.mxu0 %v2340_v4  ;;  %707 = vmatprep.mubr.bf16.mxu1 %v2340_v4 }
  0x30   : > { %1991 = vmatpush3.bf16.msra.mxu0 %v2181_v39  ;;  %2049 = vmatpush3.bf16.msra.mxu1 %v2183_v40 }
  0x31   : > { %1992 = vmatprep.subr.bf16.mxu0 %v2184_v41  ;;  %2050 = vmatprep.subr.bf16.mxu1 %v2186_v44 }
  0x34   : > { %1993 = vmatpush3.bf16.msra.mxu0 %v2185_v45  ;;  %2051 = vmatpush3.bf16.msra.mxu1 %v2187_v46 }
  0x35   : > { %1994 = vmatprep.subr.bf16.mxu0 %v2188_v47  ;;  %2052 = vmatprep.subr.bf16.mxu1 %v2190_v48 }
  0x36   : > { %607 = vmatmul.mubr.bf16.gmra.mxu0 %v344_v49  ;;  %708 = vmatmul.mubr.bf16.gmra.mxu1 %v344_v49 }
  0x37   : > { %616 = vmatprep.mubr.bf16.mxu0 %v2340_v4  ;;  %717 = vmatprep.mubr.bf16.mxu1 %v2340_v4 }
  0x38   : > { %1995 = vmatpush3.bf16.msra.mxu0 %v2189_v50  ;;  %2053 = vmatpush3.bf16.msra.mxu1 %v2191_v51 }
  0x39   : > { %1996 = vmatprep.subr.bf16.mxu0 %v2192_v52  ;;  %2054 = vmatprep.subr.bf16.mxu1 %v2194_v53 }
  0x3c   : > { %1997 = vmatpush3.bf16.msra.mxu0 %v2193_v56  ;;  %2055 = vmatpush3.bf16.msra.mxu1 %v2195_v57 }
  0x3d   : > { %1998 = vmatprep.subr.bf16.mxu0 %v2196_v7  ;;  %2056 = vmatprep.subr.bf16.mxu1 %v2198_v8 }
  0x3e   : > { %617 = vmatmul.mubr.bf16.gmra.mxu0 %v345_v58  ;;  %718 = vmatmul.mubr.bf16.gmra.mxu1 %v345_v58 }
  0x3f   : > { %626 = vmatprep.mubr.bf16.mxu0 %v2340_v4  ;;  %727 = vmatprep.mubr.bf16.mxu1 %v2340_v4 }
  0x40   : > { %1999 = vmatpush3.bf16.msra.mxu0 %v2197_v9 }
  0x41   : > { %2000 = vmatprep.subr.bf16.mxu0 %v2200_v10 }
  0x44   : > { %2001 = vmatpush3.bf16.msra.mxu0 %v2201_v12 }
  0x45   : > { %2002 = vmatprep.subr.bf16.mxu0 %v2204_v14 }
  0x46   : > { %627 = vmatmul.mubr.bf16.gmra.mxu0 %v346_v61  ;;  %728 = vmatmul.mubr.bf16.gmra.mxu1 %v346_v61 }
  0x47   : > { %636 = vmatprep.mubr.bf16.mxu0 %v2340_v4  ;;  %737 = vmatprep.mubr.bf16.mxu1 %v2340_v4 }
  0x48   : > { %2003 = vmatpush3.bf16.msra.mxu0 %v2205_v16 }
  0x49   : > { %2004 = vmatprep.subr.bf16.mxu0 %v2208_v18 }
  0x4c   : > { %2005 = vmatpush3.bf16.msra.mxu0 %v2209_v19 }
  0x4e   : > { %637 = vmatmul.mubr.bf16.gmra.mxu0 %v347_v0  ;;  %738 = vmatmul.mubr.bf16.gmra.mxu1 %v347_v0 }
  0x4f   : > { %646 = vmatprep.mubr.bf16.mxu0 %v2340_v4  ;;  %747 = vmatprep.mubr.bf16.mxu1 %v2340_v4 }
  0x56   : > { %647 = vmatmul.mubr.bf16.gmra.mxu0 %v348_v3  ;;  %748 = vmatmul.mubr.bf16.gmra.mxu1 %v348_v3 }
  0x57   : > { %656 = vmatprep.mubr.bf16.mxu0 %v2340_v4  ;;  %757 = vmatprep.mubr.bf16.mxu1 %v2340_v4  ;;  %v2199_v4 = vld [vmem:[%s3230_s3 + $0x98] sm:$0xff]  }
  0x58   : > { %2057 = vmatpush3.bf16.msra.mxu1 %v2199_v4 }
  0x59   : > { %2058 = vmatprep.subr.bf16.mxu1 %v2202_v11 }
  0x5c   : > { %2059 = vmatpush3.bf16.msra.mxu1 %v2203_v13 }
  0x5d   : > { %2060 = vmatprep.subr.bf16.mxu1 %v2206_v15 }
  0x5e   : > { %657 = vmatmul.mubr.bf16.gmra.mxu0 %v349_v6  ;;  %758 = vmatmul.mubr.bf16.gmra.mxu1 %v349_v6 }
  0x60   : > { %2061 = vmatpush3.bf16.msra.mxu1 %v2207_v17 }
  0x61   : > { %2062 = vmatprep.subr.bf16.mxu1 %v2210_v20 }
  0x64   : > { %2063 = vmatpush3.bf16.msra.mxu1 %v2211_v21 }
  0xee   : > { %v598_v31 = vpop.f32.mrf.mxu0  ;;  %v699_v32 = vpop.f32.mrf.mxu1 }
  0xef   : > { %v599_v35 = vadd.f32 %v598_v31, %v2653_v29  ;;  %v700_v38 = vadd.f32 %v699_v32, %v2655_v30 }
  0xf0   : > { %v600_v36 = vpop.f32.mrf.mxu0  ;;  %v701_v37 = vpop.f32.mrf.mxu1 }
  0xf1   : > { %v601_v39 = vadd.f32 %v600_v36, %v2657_v33  ;;  %v702_v42 = vadd.f32 %v701_v37, %v2659_v34  ;;  %v819_v43 = vmul.f32 0.70710677, %v599_v35  ;;  %v821_v47 = vmul.f32 0.70710677, %v700_v38 }
  0xf2   : > { %v602_v40 = vpop.f32.mrf.mxu0  ;;  %v703_v41 = vpop.f32.mrf.mxu1  ;;  %v766_v17 = vmul.f32 0.5, %v599_v35  ;;  %v768_v19 = vmul.f32 0.5, %v700_v38 }
  0xf3   : > { %v603_v44 = vadd.f32 %v602_v40, %v2653_v29  ;;  %v704_v48 = vadd.f32 %v703_v41, %v2655_v30  ;;  %v820_v49 = vmul.f32 0.70710677, %v601_v39  ;;  %v822_v52 = vmul.f32 0.70710677, %v702_v42 }
  0xf4   : > { %v604_v45 = vpop.f32.mrf.mxu0  ;;  %v705_v46 = vpop.f32.mrf.mxu1  ;;  %2212 = verf.f32 %v819_v43  ;;  %v2680_v20 = vmul.f32 0.5, %v601_v39  ;;  %v2682_v21 = vmul.f32 0.5, %v702_v42 }
  0xf5   : > { %v605_v53 = vadd.f32 %v604_v45, %v2657_v33  ;;  %v823_v54 = vmul.f32 0.70710677, %v603_v44  ;;  %v706_v55 = vadd.f32 %v705_v46, %v2659_v34  ;;  %2214 = verf.f32 %v821_v47 }
  0xf6   : > { %v608_v50 = vpop.f32.mrf.mxu0  ;;  %v709_v51 = vpop.f32.mrf.mxu1  ;;  %v825_v58 = vmul.f32 0.70710677, %v704_v48  ;;  %2216 = verf.f32 %v820_v49  ;;  %v2688_v27 = vmul.f32 0.5, %v603_v44  ;;  %v2691_v35 = vmul.f32 0.5, %v704_v48 }
  0xf7   : > { %v609_v59 = vadd.f32 %v608_v50, %v2653_v29  ;;  %v710_v60 = vadd.f32 %v709_v51, %v2655_v30  ;;  %2218 = verf.f32 %v822_v52  ;;  %v824_v63 = vmul.f32 0.70710677, %v605_v53 }
  0xf8   : > { %v610_v56 = vpop.f32.mrf.mxu0  ;;  %v711_v57 = vpop.f32.mrf.mxu1  ;;  %2220 = verf.f32 %v823_v54  ;;  %v826_v1 = vmul.f32 0.70710677, %v706_v55  ;;  %v2693_v36 = vmul.f32 0.5, %v605_v53  ;;  %v2695_v37 = vmul.f32 0.5, %v706_v55 }
  0xf9   : > { %v611_v0 = vadd.f32 %v610_v56, %v2657_v33  ;;  %2222 = verf.f32 %v825_v58  ;;  %v827_v5 = vmul.f32 0.70710677, %v609_v59  ;;  %v712_v6 = vadd.f32 %v711_v57, %v2659_v34 }
  0xfa   : > { %v612_v61 = vpop.f32.mrf.mxu0  ;;  %v713_v62 = vpop.f32.mrf.mxu1  ;;  %v829_v7 = vmul.f32 0.70710677, %v710_v60  ;;  %2224 = verf.f32 %v824_v63  ;;  %v2702_v42 = vmul.f32 0.5, %v609_v59  ;;  %v2704_v43 = vmul.f32 0.5, %v710_v60 }
  0xfb   : > { %v828_v4 = vmul.f32 0.70710677, %v611_v0  ;;  %2226 = verf.f32 %v826_v1  ;;  %v613_v10 = vadd.f32 %v612_v61, %v2653_v29  ;;  %v830_v13 = vmul.f32 0.70710677, %v712_v6 }
  0xfc   : > { %v614_v2 = vpop.f32.mrf.mxu0  ;;  %v715_v3 = vpop.f32.mrf.mxu1  ;;  %2228 = verf.f32 %v827_v5  ;;  %v714_v14 = vadd.f32 %v713_v62, %v2655_v30  ;;  %v2707_v47 = vmul.f32 0.5, %v611_v0  ;;  %v2709_v48 = vmul.f32 0.5, %v712_v6 }
  0xfd   : > { %2230 = verf.f32 %v829_v7  ;;  %v615_v18 = vadd.f32 %v614_v2, %v2657_v33  ;;  %v831_v22 = vmul.f32 0.70710677, %v613_v10  ;;  %v716_v31 = vadd.f32 %v715_v3, %v2659_v34 }
  0xfe   : > { %v618_v8 = vpop.f32.mrf.mxu0  ;;  %v719_v9 = vpop.f32.mrf.mxu1  ;;  %2232 = verf.f32 %v828_v4  ;;  %v833_v28 = vmul.f32 0.70710677, %v714_v14  ;;  %v2711_v49 = vmul.f32 0.5, %v613_v10  ;;  %v2718_v58 = vmul.f32 0.5, %v714_v14 }
  0xff   : > { %2234 = verf.f32 %v830_v13  ;;  %v619_v38 = vadd.f32 %v618_v8, %v2653_v29  ;;  %v832_v44 = vmul.f32 0.70710677, %v615_v18  ;;  %v720_v45 = vadd.f32 %v719_v9, %v2655_v30 }
 0x100   : > { %v620_v11 = vpop.f32.mrf.mxu0  ;;  %v721_v12 = vpop.f32.mrf.mxu1  ;;  %2236 = verf.f32 %v831_v22  ;;  %v834_v54 = vmul.f32 0.70710677, %v716_v31  ;;  %v2720_v59 = vmul.f32 0.5, %v615_v18  ;;  %v2726_v5 = vmul.f32 0.5, %v716_v31 }
 0x101   : > { %v2213_v26 = vpop.eup %2212  ;;  %2238 = verf.f32 %v833_v28  ;;  %v621_v55 = vadd.f32 %v620_v11, %v2657_v33  ;;  %v835_v60 = vmul.f32 0.70710677, %v619_v38  ;;  %v837_v1 = vmul.f32 0.70710677, %v720_v45 }
 0x102   : > { %v2675_v15 = vpop.f32.mrf.mxu0  ;;  %v2677_v16 = vpop.f32.mrf.mxu1  ;;  %v923_v53 = vadd.f32 1.0, %v2213_v26  ;;  %2240 = verf.f32 %v832_v44  ;;  %v2728_v6 = vmul.f32 0.5, %v619_v38  ;;  %v722_v7 = vadd.f32 %v721_v12, %v2659_v34 }
 0x103   : > { %v2215_v32 = vpop.eup %2214  ;;  %2242 = verf.f32 %v834_v54  ;;  %v836_v13 = vmul.f32 0.70710677, %v621_v55  ;;  %v2739_v22 = vmul.f32 0.5, %v720_v45  ;;  %v623_v26 = vadd.f32 %v2675_v15, %v2653_v29 }
 0x104   : > { %v2684_v24 = vpop.f32.mrf.mxu0  ;;  %v2686_v25 = vpop.f32.mrf.mxu1  ;;  %v925_v57 = vadd.f32 1.0, %v2215_v32  ;;  %v2735_v10 = vmul.f32 %v923_v53, %v766_v17  ;;  %2244 = verf.f32 %v835_v60  ;;  %v2758_v15 = vmul.f32 0.5, %v621_v55 }
 0x105   : > { %v2217_v41 = vpop.eup %2216  ;;  %2246 = verf.f32 %v837_v1  ;;  %v838_v44 = vmul.f32 0.70710677, %v722_v7  ;;  %v625_v45 = vadd.f32 %v2684_v24, %v2657_v33  ;;  %v839_v55 = vmul.f32 0.70710677, %v623_v26 }
 0x106   : > { %v2698_v39 = vpop.f32.mrf.mxu0  ;;  %v2700_v40 = vpop.f32.mrf.mxu1  ;;  %v924_v63 = vadd.f32 1.0, %v2217_v41  ;;  %v2737_v18 = vmul.f32 %v925_v57, %v768_v19  ;;  %v724_v19 = vadd.f32 %v2677_v16, %v2655_v30  ;;  %2248 = verf.f32 %v836_v13 }
 0x107   : > { %v2219_v46 = vpop.eup %2218  ;;  %2250 = verf.f32 %v838_v44 }
 0x108   : > { %v2713_v50 = vpop.f32.mrf.mxu0  ;;  %v2715_v51 = vpop.f32.mrf.mxu1  ;;  %v926_v0 = vadd.f32 1.0, %v2219_v46  ;;  %v2748_v17 = vmul.f32 %v924_v63, %v2680_v20 }
 0x109   : > { %v2221_v52 = vpop.eup %2220  ;;  %2252 = verf.f32 %v839_v55 }
 0x10a   : > { %v2223_v56 = vpop.eup %2222  ;;  %v2722_v61 = vpop.f32.mrf.mxu0  ;;  %v927_v3 = vadd.f32 1.0, %v2221_v52  ;;  %v2751_v32 = vmul.f32 %v926_v0, %v2682_v21  ;;  %v2777_v0 = vmul.f32 0.5, %v623_v26 }
 0x10b   : > { %v2724_v62 = vpop.f32.mrf.mxu1  ;;  %v2225_v2 = vpop.eup %2224  ;;  %v929_v11 = vadd.f32 1.0, %v2223_v56  ;;  %v726_v56 = vadd.f32 %v2686_v25, %v2659_v34 }
 0x10c   : > { %v2731_v8 = vpop.f32.mrf.mxu0  ;;  %v2227_v4 = vpop.eup %2226  ;;  %v2756_v41 = vmul.f32 %v927_v3, %v2688_v27  ;;  %v928_v52 = vadd.f32 1.0, %v2225_v2  ;;  %v2769_v27 = vmul.f32 0.5, %v722_v7  ;;  %v840_v2 = vmul.f32 0.70710677, %v625_v45 }
 0x10d   : > { %v2733_v9 = vpop.f32.mrf.mxu1  ;;  %v2229_v14 = vpop.eup %2228  ;;  %v2767_v21 = vmul.f32 %v929_v11, %v2691_v35  ;;  %v930_v53 = vadd.f32 1.0, %v2227_v4  ;;  %v841_v35 = vmul.f32 0.70710677, %v724_v19  ;;  %v2783_v3 = vadd.f32 %v2713_v50, %v2657_v33 }
 0x10e   : > { %v2743_v12 = vpop.f32.mrf.mxu0  ;;  %v2231_v31 = vpop.eup %2230  ;;  %v931_v54 = vadd.f32 1.0, %v2229_v14  ;;  %v1027_v1 = vpack.c.bf16 %v2756_v41, %v2735_v10  ;;  %v980_v13 = vmul.f32 %v928_v52, %v2693_v36  ;;  %v842_v50 = vmul.f32 0.70710677, %v726_v56 }
 0x10f   : > { %v2745_v28 = vpop.f32.mrf.mxu1  ;;  %v2233_v38 = vpop.eup %2232  ;;  %v933_v60 = vadd.f32 1.0, %v2231_v31  ;;  %v1029_v11 = vpack.c.bf16 %v2767_v21, %v2737_v18  ;;  %v982_v14 = vmul.f32 %v930_v53, %v2695_v37  ;;  %2254 = verf.f32 %v841_v35 }
 0x110   : > { %v2762_v46 = vpop.f32.mrf.mxu0  ;;  %v2235_v16 = vpop.eup %2234  ;;  %v932_v63 = vadd.f32 1.0, %v2233_v38  ;;  %v2794_v31 = vmul.f32 %v931_v54, %v2702_v42  ;;  %v629_v38 = vadd.f32 %v2698_v39, %v2653_v29  ;;  %v730_v37 = vadd.f32 %v2700_v40, %v2655_v30 }
 0x111   : > { %v2764_v20 = vpop.f32.mrf.mxu1  ;;  %v2237_v4 = vpop.eup %2236  ;;  %v934_v26 = vadd.f32 1.0, %v2235_v16  ;;  %v2803_v18 = vmul.f32 %v933_v60, %v2704_v43  ;;  %2256 = verf.f32 %v840_v2  ;;  %v844_v52 = vmul.f32 0.70710677, %v2783_v3 }
 0x112   : > { %v2773_v57 = vpop.f32.mrf.mxu0  ;;  %v2239_v10 = vpop.eup %2238  ;;  %v2806_v36 = vmul.f32 %v932_v63, %v2707_v47  ;;  %v935_v21 = vadd.f32 1.0, %v2237_v4  ;;  %v2813_v39 = vadd.f32 %v2715_v51, %v2659_v34  ;;  %v2822_v54 = vmul.f32 0.5, %v724_v19 }
 0x113   : > { %v2775_v24 = vpop.f32.mrf.mxu1  ;;  %v2241_v42 = vpop.eup %2240  ;;  %v2820_v47 = vmul.f32 %v934_v26, %v2709_v48  ;;  %v937_v16 = vadd.f32 1.0, %v2239_v10  ;;  %v2826_v40 = vadd.f32 %v2722_v61, %v2653_v29  ;;  %v2828_v60 = vmul.f32 0.5, %v625_v45 }
 0x114   : > { %v2785_v7 = vpop.f32.mrf.mxu0  ;;  %v2243_v55 = vpop.eup %2242  ;;  %2258 = verf.f32 %v842_v50  ;;  %v843_v51 = vmul.f32 0.70710677, %v629_v38  ;;  %v2832_v63 = vadd.f32 %v2731_v8, %v2657_v33  ;;  %v936_v19 = vadd.f32 1.0, %v2241_v42 }
 0x115   : > { %v2787_v25 = vpop.f32.mrf.mxu1  ;;  %v2245_v2 = vpop.eup %2244  ;;  %v845_v4 = vmul.f32 0.70710677, %v730_v37  ;;  %v734_v61 = vadd.f32 %v2724_v62, %v2655_v30  ;;  %v1028_v26 = vpack.c.bf16 %v980_v13, %v2748_v17  ;;  %2260 = verf.f32 %v844_v52 }
 0x116   : > { %v2798_v41 = vpop.f32.mrf.mxu0  ;;  %v2247_v45 = vpop.eup %2246  ;;  %v846_v10 = vmul.f32 0.70710677, %v2813_v39  ;;  %v2844_v8 = vadd.f32 %v2733_v9, %v2659_v34  ;;  %v1030_v50 = vpack.c.bf16 %v982_v14, %v2751_v32  ;;  %v2852_v42 = vmul.f32 %v935_v21, %v2711_v49 }
 0x117   : > { %v2800_v44 = vpop.f32.mrf.mxu1  ;;  %v938_v62 = vadd.f32 1.0, %v2243_v55  ;;  %v847_v17 = vmul.f32 0.70710677, %v2826_v40  ;;  %1350 = vmatprep.mubr.bf16.mxu0 %v1028_v26  ;;  %v2249_v13 = vpop.eup %2248  ;;  %v2858_v52 = vmul.f32 %v937_v16, %v2718_v58  ;;  %v939_v9 = vadd.f32 1.0, %v2245_v2 }
 0x118   : > { %3238 = vst [vmem:[#allocation3_spill] sm:$0xff] %v2800_v44  ;;  %v2815_v53 = vpop.f32.mrf.mxu0  ;;  %v2854_v44 = vmul.f32 0.5, %v726_v56  ;;  %2262 = verf.f32 %v843_v51  ;;  %v848_v32 = vmul.f32 0.70710677, %v2832_v63  ;;  %1438 = vmatprep.mubr.bf16.mxu1 %v1030_v50  ;;  %1351 = vmatmul.mubr.bf16.vlgmr.msra.gmra.mxu0 %v1027_v1  ;;  %v988_v56 = vmul.f32 %v936_v19, %v2720_v59  ;;  %v2251_v26 = vpop.eup %2250 }
 0x119   : > { %v2817_v43 = vpop.f32.mrf.mxu1  ;;  %2264 = verf.f32 %v845_v4  ;;  %v849_v21 = vmul.f32 0.70710677, %v734_v61  ;;  %1439 = vmatmul.mubr.bf16.vlgmr.msra.gmra.mxu1 %v1029_v11  ;;  %v2868_v55 = vadd.f32 %v2762_v46, %v2657_v33  ;;  %v941_v58 = vadd.f32 1.0, %v2247_v45  ;;  %v2253_v50 = vpop.eup %2252 }
 0x11a   : > { %v2834_v35 = vpop.f32.mrf.mxu0  ;;  %v2870_v16 = vmul.f32 0.5, %v629_v38  ;;  %2266 = verf.f32 %v846_v10  ;;  %v850_v51 = vmul.f32 0.70710677, %v2844_v8  ;;  %v990_v59 = vmul.f32 %v938_v62, %v2726_v5 }
 0x11b   : > { %v2836_v48 = vpop.f32.mrf.mxu1  ;;  %v940_v19 = vadd.f32 1.0, %v2249_v13  ;;  %2268 = verf.f32 %v847_v17  ;;  %v2880_v11 = vadd.f32 %v2743_v12, %v2653_v29  ;;  %v2883_v46 = vmul.f32 %v939_v9, %v2728_v6 }
 0x11c   : > { %3239 = vst [vmem:[#allocation4_spill] sm:$0xff] %v2836_v48  ;;  %v2847_v23 = vpop.f32.mrf.mxu0  ;;  %v2885_v38 = vmul.f32 0.5, %v730_v37  ;;  %2270 = verf.f32 %v848_v32  ;;  %v2889_v4 = vadd.f32 %v2764_v20, %v2659_v34  ;;  %v2892_v5 = vmul.f32 0.5, %v2783_v3  ;;  %v2255_v37 = vpop.eup %2254 }
 0x11d   : > { %v2849_v48 = vpop.f32.mrf.mxu1  ;;  %2272 = verf.f32 %v849_v21  ;;  %v852_v12 = vmul.f32 0.70710677, %v2868_v55  ;;  %v2897_v6 = vadd.f32 %v2785_v7, %v2657_v33  ;;  %v2900_v62 = vmul.f32 %v941_v58, %v2739_v22 }
 0x11e   : > { %v2861_v14 = vpop.f32.mrf.mxu0  ;;  %v942_v17 = vadd.f32 1.0, %v2251_v26  ;;  %v2903_v20 = vmul.f32 0.5, %v2813_v39  ;;  %2274 = verf.f32 %v850_v51  ;;  %v2257_v3 = vpop.eup %2256  ;;  %v2906_v32 = vmul.f32 %v940_v19, %v2758_v15 }
 0x11f   : > { %v2863_v49 = vpop.f32.mrf.mxu1  ;;  %v2909_v21 = vmul.f32 0.5, %v2826_v40  ;;  %v851_v7 = vmul.f32 0.70710677, %v2880_v11  ;;  %v2914_v22 = vadd.f32 %v2745_v28, %v2655_v30  ;;  %v943_v58 = vadd.f32 1.0, %v2253_v50 }
 0x120   : > { %v2873_v1 = vpop.f32.mrf.mxu0  ;;  %v2916_v26 = vmul.f32 0.5, %v734_v61  ;;  %v854_v39 = vmul.f32 0.70710677, %v2889_v4  ;;  %v856_v51 = vmul.f32 0.70710677, %v2897_v6  ;;  %2276 = verf.f32 %v852_v12 }
 0x121   : > { %v2875_v2 = vpop.f32.mrf.mxu1  ;;  %v2922_v15 = vadd.f32 %v2787_v25, %v2659_v34  ;;  %v1032_v40 = vpack.c.bf16 %v988_v56, %v2806_v36  ;;  %v944_v19 = vadd.f32 1.0, %v2257_v3  ;;  %v2927_v28 = vadd.f32 %v2773_v57, %v2653_v29 }
 0x122   : > { %v662_v45 = vpop.f32.mrf.mxu0  ;;  %2278 = verf.f32 %v856_v51  ;;  %v1034_v61 = vpack.c.bf16 %v990_v59, %v2820_v47  ;;  %v2933_v12 = vadd.f32 %v2775_v24, %v2655_v30  ;;  %v2937_v36 = vmul.f32 %v942_v17, %v2769_v27 }
 0x123   : > { %v763_v10 = vpop.f32.mrf.mxu1  ;;  %v2259_v45 = vpop.eup %2258  ;;  %2280 = verf.f32 %v851_v7  ;;  %v858_v25 = vmul.f32 0.70710677, %v2922_v15  ;;  %1358 = vmatprep.mubr.bf16.mxu0 %v1032_v40  ;;  %v795_v57 = vmul.f32 0.5, %v2832_v63  ;;  %v2941_v59 = vmul.f32 %v943_v58, %v2777_v0 }
 0x124   : > { %v663_v13 = vpop.f32.mrf.mxu0  ;;  %v945_v10 = vadd.f32 1.0, %v2255_v37  ;;  %v2261_v50 = vpop.eup %2260  ;;  %v946_v56 = vadd.f32 1.0, %v2259_v45  ;;  %2282 = verf.f32 %v854_v39  ;;  %1446 = vmatprep.mubr.bf16.mxu1 %v1034_v61  ;;  %v2947_v24 = vmul.f32 0.5, %v2844_v8 }
 0x125   : > { %v764_v9 = vpop.f32.mrf.mxu1  ;;  %v853_v13 = vmul.f32 0.70710677, %v2914_v22  ;;  %v2263_v47 = vpop.eup %2262  ;;  %2284 = verf.f32 %v858_v25  ;;  %v996_v27 = vmul.f32 %v944_v19, %v2828_v60  ;;  %v948_v17 = vadd.f32 1.0, %v2261_v50 }
 0x126   : > { %v2944_v37 = vmul.f32 %v945_v10, %v2822_v54  ;;  %v2265_v9 = vpop.eup %2264  ;;  %v855_v3 = vmul.f32 0.70710677, %v2927_v28  ;;  %v1031_v63 = vpack.c.bf16 %v2852_v42, %v2794_v31  ;;  %v857_v0 = vmul.f32 0.70710677, %v2933_v12 }
 0x127   : > { %v2267_v7 = vpop.eup %2266  ;;  %2286 = verf.f32 %v853_v13  ;;  %v1033_v54 = vpack.c.bf16 %v2858_v52, %v2803_v18  ;;  %v2958_v8 = vadd.f32 %v2815_v53, %v2657_v33  ;;  %v998_v60 = vmul.f32 %v946_v56, %v2854_v44  ;;  %v3241_v13 = vld [vmem:[#allocation4_spill] sm:$0xff] }
 0x128   : > { %v2269_v58 = vpop.eup %2268  ;;  %v2962_v39 = vmul.f32 0.5, %v2868_v55  ;;  %1359 = vmatmul.mubr.bf16.gmra.mxu0 %v1031_v63  ;;  %v2966_v31 = vadd.f32 %v2817_v43, %v2659_v34  ;;  %v2970_v42 = vadd.f32 %v2834_v35, %v2653_v29  ;;  %v2972_v52 = vadd.f32 1.0, %v2263_v47 }
 0x129   : > { %v2271_v18 = vpop.eup %2270  ;;  %v2974_v53 = vadd.f32 1.0, %v2265_v9  ;;  %v2977_v51 = vmul.f32 0.5, %v2889_v4  ;;  %1447 = vmatmul.mubr.bf16.gmra.mxu1 %v1033_v54  ;;  %v860_v44 = vmul.f32 0.70710677, %v2958_v8  ;;  %v2981_v45 = vmul.f32 %v948_v17, %v2892_v5  ;;  %v3240_v4 = vld [vmem:[#allocation3_spill] sm:$0xff] }
 0x12a   : > { %v2273_v55 = vpop.eup %2272  ;;  %2288 = verf.f32 %v855_v3  ;;  %v803_v43 = vmul.f32 0.5, %v2897_v6  ;;  %v862_v35 = vmul.f32 0.70710677, %v2966_v31  ;;  %v950_v40 = vadd.f32 1.0, %v2267_v7 }
 0x12b   : > { %v2275_v10 = vpop.eup %2274  ;;  %2290 = verf.f32 %v857_v0  ;;  %v2987_v19 = vadd.f32 %v2798_v41, %v2653_v29  ;;  %v2991_v61 = vadd.f32 %v3240_v4, %v2655_v30  ;;  %v952_v50 = vadd.f32 1.0, %v2271_v18 }
 0x12c   : > { %v863_v5 = vmul.f32 0.70710677, %v2970_v42  ;;  %v2996_v25 = vadd.f32 %v3241_v13, %v2655_v30  ;;  %v3000_v6 = vadd.f32 %v2847_v23, %v2657_v33  ;;  %v951_v56 = vadd.f32 1.0, %v2269_v58 }
 0x12d   : > { %2292 = verf.f32 %v860_v44  ;;  %v3004_v41 = vadd.f32 %v2849_v48, %v2659_v34  ;;  %v1036_v47 = vpack.c.bf16 %v996_v27, %v2906_v32  ;;  %v2277_v9 = vpop.eup %2276  ;;  %v953_v17 = vadd.f32 1.0, %v2273_v55 }
 0x12e   : > { %v954_v3 = vadd.f32 1.0, %v2275_v10  ;;  %v805_v63 = vmul.f32 0.5, %v2922_v15  ;;  %2294 = verf.f32 %v862_v35  ;;  %v1002_v0 = vmul.f32 %v950_v40, %v2903_v20 }
 0x12f   : > { %v2279_v7 = vpop.eup %2278  ;;  %v859_v23 = vmul.f32 0.70710677, %v2987_v19  ;;  %v865_v54 = vmul.f32 0.70710677, %v2996_v25  ;;  %v864_v58 = vmul.f32 0.70710677, %v3000_v6  ;;  %1366 = vmatprep.mubr.bf16.mxu0 %v1036_v47  ;;  %v1004_v18 = vmul.f32 %v952_v50, %v795_v57 }
 0x130   : > { %v2281_v48 = vpop.eup %2280  ;;  %v861_v32 = vmul.f32 0.70710677, %v2991_v61  ;;  %2296 = verf.f32 %v863_v5  ;;  %v866_v27 = vmul.f32 0.70710677, %v3004_v41  ;;  %v960_v15 = vadd.f32 1.0, %v2279_v7 }
 0x131   : > { %v2283_v44 = vpop.eup %2282  ;;  %2298 = verf.f32 %v864_v58  ;;  %v1038_v55 = vpack.c.bf16 %v998_v60, %v2937_v36  ;;  %v3017_v20 = vadd.f32 %v2861_v14, %v2653_v29  ;;  %v1006_v10 = vmul.f32 %v954_v3, %v2947_v24 }
 0x132   : > { %v2285_v35 = vpop.eup %2284  ;;  %v956_v40 = vadd.f32 1.0, %v2277_v9  ;;  %2300 = verf.f32 %v866_v27  ;;  %v1035_v57 = vpack.c.bf16 %v2941_v59, %v2883_v46  ;;  %v3024_v50 = vadd.f32 %v2863_v49, %v2655_v30 }
 0x133   : > { %v962_v4 = vadd.f32 1.0, %v2285_v35  ;;  %2302 = verf.f32 %v865_v54  ;;  %1454 = vmatprep.mubr.bf16.mxu1 %v1038_v55  ;;  %v1037_v36 = vpack.c.bf16 %v2944_v37, %v2900_v62  ;;  %v958_v14 = vadd.f32 1.0, %v2283_v44 }
 0x134   : > { %v2287_v29 = vpop.eup %2286  ;;  %2304 = verf.f32 %v859_v23  ;;  %v867_v24 = vmul.f32 0.70710677, %v3017_v20  ;;  %1367 = vmatmul.mubr.bf16.gmra.mxu0 %v1035_v57  ;;  %v3031_v60 = vadd.f32 %v2873_v1, %v2657_v33  ;;  %v1012_v46 = vmul.f32 %v960_v15, %v803_v43 }
 0x135   : > { %2306 = verf.f32 %v861_v32  ;;  %1455 = vmatmul.mubr.bf16.gmra.mxu1 %v1037_v36  ;;  %v3035_v30 = vadd.f32 %v2875_v2, %v2659_v34  ;;  %v1040_v49 = vpack.c.bf16 %v1004_v18, %v2981_v45  ;;  %v1003_v62 = vmul.f32 %v951_v56, %v2909_v21 }
 0x136   : > { %v1005_v59 = vmul.f32 %v953_v17, %v2916_v26  ;;  %v1008_v37 = vmul.f32 %v956_v40, %v2962_v39  ;;  %v1014_v5 = vmul.f32 %v962_v4, %v805_v63  ;;  %v869_v33 = vmul.f32 0.70710677, %v3024_v50 }
 0x137   : > { %v2289_v13 = vpop.eup %2288  ;;  %v868_v1 = vmul.f32 0.70710677, %v3031_v60  ;;  %v870_v43 = vmul.f32 0.70710677, %v3035_v30  ;;  %1374 = vmatprep.mubr.bf16.mxu0 %v1040_v49  ;;  %v1042_v47 = vpack.c.bf16 %v1006_v10, %v1002_v0  ;;  %v999_v2 = vmul.f32 %v2972_v52, %v2870_v16 }
 0x138   : > { %v2291_v34 = vpop.eup %2290  ;;  %v1010_v21 = vmul.f32 %v958_v14, %v2977_v51  ;;  %2308 = verf.f32 %v867_v24  ;;  %v1001_v26 = vmul.f32 %v2974_v53, %v2885_v38  ;;  %v1044_v39 = vpack.c.bf16 %v1012_v46, %v1008_v37 }
 0x139   : > { %2310 = verf.f32 %v868_v1  ;;  %1462 = vmatprep.mubr.bf16.mxu1 %v1042_v47  ;;  %v959_v56 = vadd.f32 1.0, %v2289_v13  ;;  %v1039_v9 = vpack.c.bf16 %v1003_v62, %v999_v2  ;;  %v961_v63 = vadd.f32 1.0, %v2291_v34 }
 0x13a   : > { %v2293_v45 = vpop.eup %2292  ;;  %2312 = verf.f32 %v870_v43  ;;  %v1046_v17 = vpack.c.bf16 %v1014_v5, %v1010_v21  ;;  %v1041_v7 = vpack.c.bf16 %v1005_v59, %v1001_v26  ;;  %v955_v0 = vadd.f32 1.0, %v2281_v48 }
 0x13b   : > { %v2295_v3 = vpop.eup %2294  ;;  %2314 = verf.f32 %v869_v33  ;;  %v802_v16 = vmul.f32 0.5, %v2927_v28  ;;  %v957_v51 = vadd.f32 1.0, %v2287_v29  ;;  %v804_v38 = vmul.f32 0.5, %v2933_v12 }
 0x13c   : > { %1375 = vmatmul.mubr.bf16.gmra.mxu0 %v1039_v9  ;;  %v964_v53 = vadd.f32 1.0, %v2293_v45  ;;  %v798_v54 = vmul.f32 0.5, %v2880_v11  ;;  %v800_v58 = vmul.f32 0.5, %v2914_v22  ;;  %v966_v32 = vadd.f32 1.0, %v2295_v3 }
 0x13d   : > { %v2297_v52 = vpop.eup %2296  ;;  %1463 = vmatmul.mubr.bf16.gmra.mxu1 %v1041_v7  ;;  %1382 = vmatprep.mubr.bf16.mxu0 %v1044_v39  ;;  %v1011_v18 = vmul.f32 %v959_v56, %v802_v16  ;;  %v1013_v48 = vmul.f32 %v961_v63, %v804_v38  ;;  %v807_v28 = vmul.f32 0.5, %v2958_v8  ;;  %v811_v44 = vmul.f32 0.5, %v3000_v6 }
 0x13e   : > { %v2299_v23 = vpop.eup %2298  ;;  %1470 = vmatprep.mubr.bf16.mxu1 %v1046_v17  ;;  %v1007_v12 = vmul.f32 %v955_v0, %v798_v54  ;;  %v809_v35 = vmul.f32 0.5, %v2966_v31  ;;  %v813_v10 = vmul.f32 0.5, %v3004_v41  ;;  %v1009_v57 = vmul.f32 %v957_v51, %v800_v58 }
 0x13f   : > { %v2301_v27 = vpop.eup %2300  ;;  %v968_v15 = vadd.f32 1.0, %v2299_v23  ;;  %v1016_v22 = vmul.f32 %v964_v53, %v807_v28  ;;  %v967_v14 = vadd.f32 1.0, %v2297_v52  ;;  %v810_v59 = vmul.f32 0.5, %v2970_v42 }
 0x140   : > { %v2303_v55 = vpop.eup %2302  ;;  %v970_v40 = vadd.f32 1.0, %v2301_v27  ;;  %v1018_v29 = vmul.f32 %v966_v32, %v809_v35  ;;  %v1043_v46 = vpack.c.bf16 %v1011_v18, %v1007_v12  ;;  %v1045_v49 = vpack.c.bf16 %v1013_v48, %v1009_v57 }
 0x141   : > { %v2305_v11 = vpop.eup %2304  ;;  %v1020_v4 = vmul.f32 %v968_v15, %v811_v44  ;;  %v969_v8 = vadd.f32 1.0, %v2303_v55  ;;  %v812_v5 = vmul.f32 0.5, %v2996_v25  ;;  %v806_v33 = vmul.f32 0.5, %v2987_v19 }
 0x142   : > { %v2307_v36 = vpop.eup %2306  ;;  %v1022_v24 = vmul.f32 %v970_v40, %v813_v10  ;;  %v963_v62 = vadd.f32 1.0, %v2305_v11  ;;  %v1019_v1 = vmul.f32 %v967_v14, %v810_v59  ;;  %v808_v47 = vmul.f32 0.5, %v2991_v61 }
 0x143   : > { %v1048_v6 = vpack.c.bf16 %v1020_v4, %v1016_v22  ;;  %v965_v41 = vadd.f32 1.0, %v2307_v36  ;;  %v1021_v34 = vmul.f32 %v969_v8, %v812_v5  ;;  %v815_v2 = vmul.f32 0.5, %v3031_v60 }
 0x144   : > { %1383 = vmatmul.mubr.bf16.gmra.mxu0 %v1043_v46  ;;  %v1050_v31 = vpack.c.bf16 %v1022_v24, %v1018_v29  ;;  %v1015_v26 = vmul.f32 %v963_v62, %v806_v33  ;;  %v817_v39 = vmul.f32 0.5, %v3035_v30  ;;  %v814_v61 = vmul.f32 0.5, %v3017_v20 }
 0x145   : > { %v2309_v37 = vpop.eup %2308  ;;  %1471 = vmatmul.mubr.bf16.gmra.mxu1 %v1045_v49  ;;  %1390 = vmatprep.mubr.bf16.mxu0 %v1048_v6  ;;  %v1017_v25 = vmul.f32 %v965_v41, %v808_v47  ;;  %v816_v0 = vmul.f32 0.5, %v3024_v50  ;;  %v3073_v50 = vld [vmem:[%s3231_s4] ss:$0 sm:$0xff] }
 0x146   : > { %v2311_v13 = vpop.eup %2310  ;;  %1478 = vmatprep.mubr.bf16.mxu1 %v1050_v31  ;;  %v1047_v9 = vpack.c.bf16 %v1019_v1, %v1015_v26  ;;  %v971_v3 = vadd.f32 1.0, %v2309_v37 }
 0x147   : > { %v2313_v43 = vpop.eup %2312  ;;  %v972_v42 = vadd.f32 1.0, %v2311_v13  ;;  %v1049_v19 = vpack.c.bf16 %v1021_v34, %v1017_v25 }
 0x148   : > { %v2315_v21 = vpop.eup %2314  ;;  %v974_v45 = vadd.f32 1.0, %v2313_v43  ;;  %v1023_v30 = vmul.f32 %v971_v3, %v814_v61 }
 0x149   : > { %v1024_v56 = vmul.f32 %v972_v42, %v815_v2  ;;  %v973_v7 = vadd.f32 1.0, %v2315_v21 }
 0x14a   : > { %v1026_v17 = vmul.f32 %v974_v45, %v817_v39  ;;  %v1051_v52 = vpack.c.bf16 %v1023_v30, %v1023_v30 }
 0x14b   : > { %v1052_v63 = vpack.c.bf16 %v1024_v56, %v1024_v56  ;;  %v1025_v16 = vmul.f32 %v973_v7, %v816_v0 }
 0x14c   : > { %1391 = vmatmul.mubr.bf16.gmra.mxu0 %v1047_v9  ;;  %v1054_v60 = vpack.c.bf16 %v1026_v17, %v1026_v17 }
 0x14d   : > { %1479 = vmatmul.mubr.bf16.gmra.mxu1 %v1049_v19  ;;  %1398 = vmatprep.mubr.bf16.mxu0 %v1052_v63  ;;  %v1053_v51 = vpack.c.bf16 %v1025_v16, %v1025_v16 }
 0x14e   : > { %1486 = vmatprep.mubr.bf16.mxu1 %v1054_v60 }
 0x154   : > { %1399 = vmatmul.mubr.bf16.gmra.mxu0 %v1051_v52 }
 0x155   : > { %1487 = vmatmul.mubr.bf16.gmra.mxu1 %v1053_v51 }
 0x1d8   : > { %v2006_v38 = vpop.f32.mrf.mxu0 }
 0x1d9   : > { %v2064_v20 = vpop.f32.mrf.mxu1 }
 0x1da   : > { %v2007_v53 = vpop.f32.mrf.mxu0 }
 0x1db   : > { %v2008_v23 = vadd.f32 %v2007_v53, %v2006_v38  ;;  %v2065_v54 = vpop.f32.mrf.mxu1 }
 0x1dc   : > { %v2009_v58 = vpop.f32.mrf.mxu0  ;;  %v2066_v44 = vadd.f32 %v2065_v54, %v2064_v20 }
 0x1dd   : > { %v2067_v18 = vpop.f32.mrf.mxu1  ;;  %v1353_v27 = vadd.f32 %v2008_v23, %v3073_v50 }
 0x1de   : > { %v2010_v32 = vpop.f32.mrf.mxu0 }
 0x1df   : > { %v2011_v48 = vadd.f32 %v2010_v32, %v2009_v58  ;;  %v2068_v28 = vpop.f32.mrf.mxu1  ;;  %v3078_v12 = vadd.f32 %v2066_v44, %v1353_v27 }
 0x1e0   : > { %v2069_v55 = vadd.f32 %v2068_v28, %v2067_v18 }
 0x1e1   : > { %v1356_v15 = vadd.f32 %v2011_v48, %v3073_v50 }
 0x1e3   : > { %v3080_v35 = vadd.f32 %v2069_v55, %v1356_v15 }
 0x1e5   : > { %v1958_v10 = vpack.c.bf16 %v3080_v35, %v3078_v12 }
 0x1e7   : > { %1959 = vst [vmem:[%s3085_s8] sm:$0xff] %v1958_v10  }
 0x1e8   : > { %v2012_v40 = vpop.f32.mrf.mxu0 }
 0x1e9   : > { %v2070_v11 = vpop.f32.mrf.mxu1 }
 0x1ea   : > { %v2013_v57 = vpop.f32.mrf.mxu0 }
 0x1eb   : > { %v2014_v22 = vadd.f32 %v2013_v57, %v2012_v40  ;;  %v2071_v4 = vpop.f32.mrf.mxu1 }
 0x1ec   : > { %v2015_v36 = vpop.f32.mrf.mxu0  ;;  %v2072_v49 = vadd.f32 %v2071_v4, %v2070_v11 }
 0x1ed   : > { %v2073_v29 = vpop.f32.mrf.mxu1  ;;  %v1361_v24 = vadd.f32 %v2014_v22, %v3073_v50 }
 0x1ee   : > { %v2016_v14 = vpop.f32.mrf.mxu0 }
 0x1ef   : > { %v2017_v46 = vadd.f32 %v2016_v14, %v2015_v36  ;;  %v2074_v8 = vpop.f32.mrf.mxu1  ;;  %v3092_v59 = vadd.f32 %v2072_v49, %v1361_v24 }
 0x1f0   : > { %v2075_v62 = vadd.f32 %v2074_v8, %v2073_v29 }
 0x1f1   : > { %v1364_v6 = vadd.f32 %v2017_v46, %v3073_v50 }
 0x1f3   : > { %v3094_v31 = vadd.f32 %v2075_v62, %v1364_v6 }
 0x1f4   : > { %v2018_v37 = vpop.f32.mrf.mxu0 }
 0x1f5   : > { %v1963_v41 = vpack.c.bf16 %v3094_v31, %v3092_v59  ;;  %v2076_v5 = vpop.f32.mrf.mxu1 }
 0x1f6   : > { %v2019_v13 = vpop.f32.mrf.mxu0 }
 0x1f7   : > { %1985 = vst [vmem:[%s3085_s8 + $0x8] sm:$0xff] %v1963_v41   ;;  %v2020_v33 = vadd.f32 %v2019_v13, %v2018_v37  ;;  %v2077_v1 = vpop.f32.mrf.mxu1 }
 0x1f8   : > { %v2021_v43 = vpop.f32.mrf.mxu0  ;;  %v2078_v39 = vadd.f32 %v2077_v1, %v2076_v5 }
 0x1f9   : > { %v2079_v47 = vpop.f32.mrf.mxu1  ;;  %v1369_v2 = vadd.f32 %v2020_v33, %v3073_v50 }
 0x1fa   : > { %v2022_v34 = vpop.f32.mrf.mxu0 }
 0x1fb   : > { %v2023_v42 = vadd.f32 %v2022_v34, %v2021_v43  ;;  %v2080_v21 = vpop.f32.mrf.mxu1  ;;  %v3101_v17 = vadd.f32 %v2078_v39, %v1369_v2 }
 0x1fc   : > { %v2024_v26 = vpop.f32.mrf.mxu0  ;;  %v2081_v25 = vadd.f32 %v2080_v21, %v2079_v47 }
 0x1fd   : > { %v1372_v45 = vadd.f32 %v2023_v42, %v3073_v50  ;;  %v2082_v56 = vpop.f32.mrf.mxu1 }
 0x1fe   : > { %v2025_v9 = vpop.f32.mrf.mxu0 }
 0x1ff   : > { %v3103_v3 = vadd.f32 %v2081_v25, %v1372_v45  ;;  %v2026_v19 = vadd.f32 %v2025_v9, %v2024_v26  ;;  %v2083_v63 = vpop.f32.mrf.mxu1 }
 0x200   : > { %v2027_v7 = vpop.f32.mrf.mxu0  ;;  %v2084_v38 = vadd.f32 %v2083_v63, %v2082_v56 }
 0x201   : > { %v1968_v61 = vpack.c.bf16 %v3103_v3, %v3101_v17  ;;  %v2085_v60 = vpop.f32.mrf.mxu1  ;;  %v1377_v30 = vadd.f32 %v2026_v19, %v3073_v50 }
 0x202   : > { %v2028_v0 = vpop.f32.mrf.mxu0 }
 0x203   : > { %1986 = vst [vmem:[%s3085_s8 + $0x10] sm:$0xff] %v1968_v61   ;;  %v2029_v16 = vadd.f32 %v2028_v0, %v2027_v7  ;;  %v2086_v52 = vpop.f32.mrf.mxu1  ;;  %v3110_v58 = vadd.f32 %v2084_v38, %v1377_v30 }
 0x204   : > { %v2030_v51 = vpop.f32.mrf.mxu0  ;;  %v2087_v53 = vadd.f32 %v2086_v52, %v2085_v60 }
 0x205   : > { %v1380_v20 = vadd.f32 %v2029_v16, %v3073_v50  ;;  %v2088_v23 = vpop.f32.mrf.mxu1 }
 0x206   : > { %v2031_v54 = vpop.f32.mrf.mxu0 }
 0x207   : > { %v3112_v18 = vadd.f32 %v2087_v53, %v1380_v20  ;;  %v2032_v32 = vadd.f32 %v2031_v54, %v2030_v51  ;;  %v2089_v27 = vpop.f32.mrf.mxu1 }
 0x208   : > { %v2033_v48 = vpop.f32.mrf.mxu0  ;;  %v2090_v57 = vadd.f32 %v2089_v27, %v2088_v23 }
 0x209   : > { %v1973_v28 = vpack.c.bf16 %v3112_v18, %v3110_v58  ;;  %v2091_v44 = vpop.f32.mrf.mxu1  ;;  %v1385_v55 = vadd.f32 %v2032_v32, %v3073_v50 }
 0x20a   : > { %v2034_v15 = vpop.f32.mrf.mxu0 }
 0x20b   : > { %1987 = vst [vmem:[%s3085_s8 + $0x18] sm:$0xff] %v1973_v28   ;;  %v2035_v10 = vadd.f32 %v2034_v15, %v2033_v48  ;;  %v2092_v40 = vpop.f32.mrf.mxu1  ;;  %v3119_v14 = vadd.f32 %v2090_v57, %v1385_v55 }
 0x20c   : > { %v2036_v11 = vpop.f32.mrf.mxu0  ;;  %v2093_v4 = vadd.f32 %v2092_v40, %v2091_v44 }
 0x20d   : > { %v1388_v22 = vadd.f32 %v2035_v10, %v3073_v50  ;;  %v2094_v36 = vpop.f32.mrf.mxu1 }
 0x20e   : > { %v2037_v29 = vpop.f32.mrf.mxu0 }
 0x20f   : > { %v3121_v24 = vadd.f32 %v2093_v4, %v1388_v22  ;;  %v2038_v46 = vadd.f32 %v2037_v29, %v2036_v11  ;;  %v2095_v8 = vpop.f32.mrf.mxu1 }
 0x210   : > { %v2039_v49 = vpop.f32.mrf.mxu0  ;;  %v2096_v1 = vadd.f32 %v2095_v8, %v2094_v36 }
 0x211   : > { %v1978_v6 = vpack.c.bf16 %v3121_v24, %v3119_v14  ;;  %v2097_v62 = vpop.f32.mrf.mxu1  ;;  %v1393_v41 = vadd.f32 %v2038_v46, %v3073_v50 }
 0x212   : > { %v2040_v37 = vpop.f32.mrf.mxu0 }
 0x213   : > { %1988 = vst [vmem:[%s3085_s8 + $0x20] sm:$0xff] %v1978_v6   ;;  %v2041_v5 = vadd.f32 %v2040_v37, %v2039_v49  ;;  %v2098_v13 = vpop.f32.mrf.mxu1  ;;  %v3128_v42 = vadd.f32 %v2096_v1, %v1393_v41 }
 0x214   : > { %v2042_v33 = vpop.f32.mrf.mxu0  ;;  %v2099_v47 = vadd.f32 %v2098_v13, %v2097_v62 }
 0x215   : > { %v1396_v43 = vadd.f32 %v2041_v5, %v3073_v50  ;;  %v2100_v34 = vpop.f32.mrf.mxu1 }
 0x216   : > { %v2043_v2 = vpop.f32.mrf.mxu0 }
 0x217   : > { %v3130_v21 = vadd.f32 %v2099_v47, %v1396_v43  ;;  %v2044_v26 = vadd.f32 %v2043_v2, %v2042_v33  ;;  %v2101_v39 = vpop.f32.mrf.mxu1 }
 0x218   : > { %v2045_v45 = vpop.f32.mrf.mxu0  ;;  %v2102_v9 = vadd.f32 %v2101_v39, %v2100_v34 }
 0x219   : > { %v1983_v25 = vpack.c.bf16 %v3130_v21, %v3128_v42  ;;  %v1401_v56 = vadd.f32 %v2044_v26, %v3073_v50  ;;  %v2103_v19 = vpop.f32.mrf.mxu1 }
 0x21a   : > { %v2046_v63 = vpop.f32.mrf.mxu0 }
 0x21b   : > { %1989 = vst [vmem:[%s3085_s8 + $0x28] sm:$0xff] %v1983_v25   ;;  %v3136_v7 = vadd.f32 %v2102_v9, %v1401_v56  ;;  %v2104_v61 = vpop.f32.mrf.mxu1  ;;  %1566 = sbr.rel (%p1938_p6) target bundleno = 585 (0x249), region = 48 }
 0x21d   : > { %v1954_v60 = vpack.c.bf16 %v3136_v7, %v3136_v7 }
 0x21f   : > { %1559 = vst [vmem:[%s3085_s8 + $0x30] sm:$0xf] %v1954_v60 }
 0x220   : > { %v1568_v0 = vadd.f32 %v3080_v35, %v3078_v12  ;;  %v1589_v50 = vmul.f32 %v3078_v12, %v3078_v12  ;;  %v1590_v30 = vmul.f32 %v3080_v35, %v3080_v35  ;;  %v1591_v16 = vmul.f32 %v3092_v59, %v3092_v59  ;;  %v1567_v56 = vld [vmem:[%s2424_s18] sm:$0x1] }
 0x221   : > { %v1592_v51 = vmul.f32 %v3094_v31, %v3094_v31  ;;  %v1593_v53 = vmul.f32 %v3101_v17, %v3101_v17  ;;  %v1594_v32 = vmul.f32 %v3103_v3, %v3103_v3  ;;  %v1595_v28 = vmul.f32 %v3110_v58, %v3110_v58  ;;  %v1588_v60 = vld [vmem:[%s2429_s21] sm:$0x1] }
 0x222   : > { %v1569_v52 = vadd.f32 %v1568_v0, %v3092_v59  ;;  %v1602_v38 = vadd.f32 %v1590_v30, %v1589_v50  ;;  %v1596_v55 = vmul.f32 %v3112_v18, %v3112_v18  ;;  %v1597_v11 = vmul.f32 %v3119_v14, %v3119_v14 }
 0x223   : > { %v1598_v4 = vmul.f32 %v3121_v24, %v3121_v24  ;;  %v1599_v46 = vmul.f32 %v3128_v42, %v3128_v42  ;;  %v1600_v6 = vmul.f32 %v3130_v21, %v3130_v21  ;;  %v1601_v41 = vmul.f32 %v3136_v7, %v3136_v7 }
 0x224   : > { %v1570_v20 = vadd.f32 %v1569_v52, %v3094_v31  ;;  %v1603_v23 = vadd.f32 %v1602_v38, %v1591_v16 }
 0x226   : > { %v1571_v54 = vadd.f32 %v1570_v20, %v3101_v17  ;;  %v1604_v27 = vadd.f32 %v1603_v23, %v1592_v51 }
 0x228   : > { %v1572_v48 = vadd.f32 %v1571_v54, %v3103_v3  ;;  %v1605_v44 = vadd.f32 %v1604_v27, %v1593_v53 }
 0x22a   : > { %v1573_v15 = vadd.f32 %v1572_v48, %v3110_v58  ;;  %v1606_v10 = vadd.f32 %v1605_v44, %v1594_v32 }
 0x22c   : > { %v1574_v40 = vadd.f32 %v1573_v15, %v3112_v18  ;;  %v1607_v57 = vadd.f32 %v1606_v10, %v1595_v28 }
 0x22e   : > { %v1575_v22 = vadd.f32 %v1574_v40, %v3119_v14  ;;  %v1608_v36 = vadd.f32 %v1607_v57, %v1596_v55 }
 0x230   : > { %v1576_v29 = vadd.f32 %v1575_v22, %v3121_v24  ;;  %v1609_v8 = vadd.f32 %v1608_v36, %v1597_v11 }
 0x232   : > { %v1577_v49 = vadd.f32 %v1576_v29, %v3128_v42  ;;  %v1610_v62 = vadd.f32 %v1609_v8, %v1598_v4 }
 0x234   : > { %v1578_v37 = vadd.f32 %v1577_v49, %v3130_v21  ;;  %v1611_v5 = vadd.f32 %v1610_v62, %v1599_v46 }
 0x236   : > { %v1579_v13 = vadd.f32 %v1578_v37, %v3136_v7  ;;  %v1612_v33 = vadd.f32 %v1611_v5, %v1600_v6 }
 0x238   : > { %v1580_v1 = vrot.slane %v1579_v13, 4  ;;  %v1613_v43 = vadd.f32 %v1612_v33, %v1601_v41 }
 0x23a   : > { %v1581_v47 = vadd.f32 %v1580_v1, %v1579_v13  ;;  %v1614_v34 = vrot.slane %v1613_v43, 4 }
 0x23c   : > { %v1582_v2 = vrot.slane %v1581_v47, 2  ;;  %v1615_v26 = vadd.f32 %v1614_v34, %v1613_v43 }
 0x23e   : > { %v1583_v39 = vadd.f32 %v1582_v2, %v1581_v47  ;;  %v1616_v45 = vrot.slane %v1615_v26, 2 }
 0x240   : > { %v1584_v25 = vrot.slane %v1583_v39, 1  ;;  %v1617_v9 = vadd.f32 %v1616_v45, %v1615_v26 }
 0x242   : > { %v1585_v19 = vadd.f32 %v1584_v25, %v1583_v39  ;;  %v1618_v63 = vrot.slane %v1617_v9, 1 }
 0x244   : > { %v1586_v61 = vadd.f32 %v1585_v19, %v1567_v56  ;;  %v1619_v0 = vadd.f32 %v1618_v63, %v1617_v9 }
 0x246   : > { %1587 = vst [vmem:[%s2424_s18] sm:$0x1] %v1586_v61  ;;  %v1620_v50 = vadd.f32 %v1619_v0, %v1588_v60 }
 0x248   : > { %1621 = vst [vmem:[%s2429_s21] sm:$0x1] %v1620_v50 }
 0x249 PF: > { %p1939_p7 = scmp.le.s32.totalorder %s3068_s22, 200 }
 0x24b   : > { %1625 = sbr.rel (%p1939_p7) target bundleno = 641 (0x281), region = 52 }
 0x250   : > { %v3242_v30 = vld [vmem:[#allocation2_spill] sm:$0xff]  ;;  %v1640_v38 = vstv %s1561_s19 }
 0x251   : > { %v1628_v16 = vadd.s32 8, %v3242_v30  ;;  %v1629_v52 = vadd.s32 16, %v3242_v30  ;;  %v1630_v51 = vadd.s32 24, %v3242_v30  ;;  %v1641_v20 = vadd.s32 %v1640_v38, %v3242_v30 }
 0x252   : > { %v1631_v23 = vadd.s32 32, %v3242_v30  ;;  %v1632_v32 = vadd.s32 40, %v3242_v30  ;;  %v1633_v48 = vadd.s32 48, %v3242_v30  ;;  %v1634_v44 = vadd.s32 56, %v3242_v30 }
 0x253   : > { %v1642_v53 = vadd.s32 %v1640_v38, %v1628_v16  ;;  %v1643_v54 = vadd.s32 %v1640_v38, %v1629_v52  ;;  %v1644_v27 = vadd.s32 %v1640_v38, %v1630_v51  ;;  %vm1654_vm0 = vcmp.lt.s32.totalorder %v1641_v20, 200 }
 0x254   : > { %v1645_v28 = vadd.s32 %v1640_v38, %v1631_v23  ;;  %v1646_v15 = vadd.s32 %v1640_v38, %v1632_v32  ;;  %v1667_v55 = vsel %vm1654_vm0, %v3078_v12, 0.0  ;;  %v1635_v40 = vadd.s32 64, %v3242_v30 }
 0x255   : > { %vm1655_vm1 = vcmp.lt.s32.totalorder %v1642_v53, 200  ;;  %vm1656_vm2 = vcmp.lt.s32.totalorder %v1643_v54, 200  ;;  %vm1657_vm3 = vcmp.lt.s32.totalorder %v1644_v27, 200  ;;  %v1647_v57 = vadd.s32 %v1640_v38, %v1633_v48 }
 0x256   : > { %v1668_v10 = vsel %vm1655_vm1, %v3080_v35, 0.0  ;;  %v1669_v11 = vsel %vm1656_vm2, %v3092_v59, 0.0  ;;  %vm1658_vm4 = vcmp.lt.s32.totalorder %v1645_v28, 200  ;;  %v1636_v4 = vadd.s32 72, %v3242_v30 }
 0x257   : > { %v1681_v22 = vadd.f32 %v1668_v10, %v1667_v55  ;;  %v1670_v36 = vsel %vm1657_vm3, %v3094_v31, 0.0  ;;  %v1702_v29 = vmul.f32 %v1667_v55, %v1667_v55  ;;  %v1703_v46 = vmul.f32 %v1668_v10, %v1668_v10 }
 0x258   : > { %v1648_v8 = vadd.s32 %v1640_v38, %v1634_v44  ;;  %vm1659_vm5 = vcmp.lt.s32.totalorder %v1646_v15, 200  ;;  %v1704_v6 = vmul.f32 %v1669_v11, %v1669_v11  ;;  %v1637_v12 = vadd.s32 80, %v3242_v30 }
 0x259   : > { %v1682_v49 = vadd.f32 %v1681_v22, %v1669_v11  ;;  %v1649_v35 = vadd.s32 %v1640_v38, %v1635_v40  ;;  %v1671_v62 = vsel %vm1658_vm4, %v3101_v17, 0.0  ;;  %vm1660_vm6 = vcmp.lt.s32.totalorder %v1647_v57, 200 }
 0x25a   : > { %v1705_v37 = vmul.f32 %v1670_v36, %v1670_v36  ;;  %v1715_v41 = vadd.f32 %v1703_v46, %v1702_v29  ;;  %v1638_v5 = vadd.s32 88, %v3242_v30  ;;  %v1650_v13 = vadd.s32 %v1640_v38, %v1636_v4  ;;  %v1680_v4 = vld [vmem:[%s2424_s18] sm:$0x1] }
 0x25b   : > { %v1683_v59 = vadd.f32 %v1682_v49, %v1670_v36  ;;  %v1672_v31 = vsel %vm1659_vm5, %v3103_v3, 0.0  ;;  %vm1661_vm7 = vcmp.lt.s32.totalorder %v1648_v8, 200  ;;  %v1706_v1 = vmul.f32 %v1671_v62, %v1671_v62  ;;  %v1701_v49 = vld [vmem:[%s2429_s21] sm:$0x1] }
 0x25c   : > { %v1716_v43 = vadd.f32 %v1715_v41, %v1704_v6  ;;  %v1639_v47 = vadd.s32 96, %v3242_v30  ;;  %v1651_v34 = vadd.s32 %v1640_v38, %v1637_v12  ;;  %v1673_v2 = vsel %vm1660_vm6, %v3110_v58, 0.0 }
 0x25d   : > { %v1684_v33 = vadd.f32 %v1683_v59, %v1671_v62  ;;  %vm1662_vm8 = vcmp.lt.s32.totalorder %v1649_v35, 200  ;;  %v1707_v26 = vmul.f32 %v1672_v31, %v1672_v31  ;;  %v1652_v45 = vadd.s32 %v1640_v38, %v1638_v5 }
 0x25e   : > { %v1717_v39 = vadd.f32 %v1716_v43, %v1705_v37  ;;  %v1674_v25 = vsel %vm1661_vm7, %v3112_v18, 0.0  ;;  %vm1663_vm9 = vcmp.lt.s32.totalorder %v1650_v13, 200  ;;  %v1708_v9 = vmul.f32 %v1673_v2, %v1673_v2 }
 0x25f   : > { %v1685_v17 = vadd.f32 %v1684_v33, %v1672_v31  ;;  %v1653_v19 = vadd.s32 %v1640_v38, %v1639_v47  ;;  %v1675_v63 = vsel %vm1662_vm8, %v3119_v14, 0.0  ;;  %vm1664_vm10 = vcmp.lt.s32.totalorder %v1651_v34, 200 }
 0x260   : > { %v1718_v3 = vadd.f32 %v1717_v39, %v1706_v1  ;;  %v1709_v60 = vmul.f32 %v1674_v25, %v1674_v25  ;;  %v1676_v58 = vsel %vm1663_vm9, %v3121_v24, 0.0  ;;  %vm1665_vm11 = vcmp.lt.s32.totalorder %v1652_v45, 200 }
 0x261   : > { %v1686_v56 = vadd.f32 %v1685_v17, %v1673_v2  ;;  %v1710_v30 = vmul.f32 %v1675_v63, %v1675_v63  ;;  %v1677_v52 = vsel %vm1664_vm10, %v3128_v42, 0.0  ;;  %vm1666_vm12 = vcmp.lt.s32.totalorder %v1653_v19, 200 }
 0x262   : > { %v1719_v0 = vadd.f32 %v1718_v3, %v1707_v26  ;;  %v1711_v51 = vmul.f32 %v1676_v58, %v1676_v58  ;;  %v1678_v38 = vsel %vm1665_vm11, %v3130_v21, 0.0  ;;  %v1712_v14 = vmul.f32 %v1677_v52, %v1677_v52 }
 0x263   : > { %v1687_v61 = vadd.f32 %v1686_v56, %v1674_v25  ;;  %v1679_v54 = vsel %vm1666_vm12, %v3136_v7, 0.0  ;;  %v1713_v24 = vmul.f32 %v1678_v38, %v1678_v38 }
 0x264   : > { %v1720_v16 = vadd.f32 %v1719_v0, %v1708_v9  ;;  %v1714_v28 = vmul.f32 %v1679_v54, %v1679_v54 }
 0x265   : > { %v1688_v50 = vadd.f32 %v1687_v61, %v1675_v63 }
 0x266   : > { %v1721_v20 = vadd.f32 %v1720_v16, %v1709_v60 }
 0x267   : > { %v1689_v18 = vadd.f32 %v1688_v50, %v1676_v58 }
 0x268   : > { %v1722_v23 = vadd.f32 %v1721_v20, %v1710_v30 }
 0x269   : > { %v1690_v53 = vadd.f32 %v1689_v18, %v1677_v52 }
 0x26a   : > { %v1723_v27 = vadd.f32 %v1722_v23, %v1711_v51 }
 0x26b   : > { %v1691_v32 = vadd.f32 %v1690_v53, %v1678_v38 }
 0x26c   : > { %v1724_v44 = vadd.f32 %v1723_v27, %v1712_v14 }
 0x26d   : > { %v1692_v48 = vadd.f32 %v1691_v32, %v1679_v54 }
 0x26e   : > { %v1725_v15 = vadd.f32 %v1724_v44, %v1713_v24 }
 0x26f   : > { %v1693_v42 = vrot.slane %v1692_v48, 4 }
 0x270   : > { %v1726_v10 = vadd.f32 %v1725_v15, %v1714_v28 }
 0x271   : > { %v1694_v55 = vadd.f32 %v1693_v42, %v1692_v48 }
 0x272   : > { %v1727_v40 = vrot.slane %v1726_v10, 4 }
 0x273   : > { %v1695_v21 = vrot.slane %v1694_v55, 2 }
 0x274   : > { %v1728_v57 = vadd.f32 %v1727_v40, %v1726_v10 }
 0x275   : > { %v1696_v11 = vadd.f32 %v1695_v21, %v1694_v55 }
 0x276   : > { %v1729_v7 = vrot.slane %v1728_v57, 2 }
 0x277   : > { %v1697_v22 = vrot.slane %v1696_v11, 1 }
 0x278   : > { %v1730_v29 = vadd.f32 %v1729_v7, %v1728_v57 }
 0x279   : > { %v1698_v36 = vadd.f32 %v1697_v22, %v1696_v11 }
 0x27a   : > { %v1731_v8 = vrot.slane %v1730_v29, 1 }
 0x27b   : > { %v1699_v46 = vadd.f32 %v1698_v36, %v1680_v4 }
 0x27c   : > { %v1732_v6 = vadd.f32 %v1731_v8, %v1730_v29 }
 0x27d   : > { %1700 = vst [vmem:[%s2424_s18] sm:$0x1] %v1699_v46 }
 0x27e   : > { %v1733_v12 = vadd.f32 %v1732_v6, %v1701_v49 }
 0x280   : > { %1734 = vst [vmem:[%s2429_s21] sm:$0x1] %v1733_v12 }
 0x281 PF: > { %s18_s26 = sadd.s32 1, %s2338_s26   ;;  %s3243_s24 = smov %s2334_s25 }
 0x282   : > { %p15_p8 = scmp.ge.s32.totalorder %s18_s26, 4   ;;  %s3244_s25 = smov %s3246_s27 }
 0x284   :  { %17 = sbr.rel (!%p15_p8) target bundleno = 2 (0x2), region = 106 }

</bundles_post_ra>
